<compile_context>
chip_gen: v7x
topology: tpu7x:2x2x1
jax: 0.10.0
libtpu: 0.0.40
codegen_flags: <defaults>
</compile_context>

<pallas_src>
import jax
import jax.numpy as jnp
from jax.experimental import pallas as pl
from jax.experimental.pallas import tpu as pltpu

_VMEM_LIMIT = 32 * 1024 * 1024


# ---------------------------------------------------------------------------
# Pallas kernels
# ---------------------------------------------------------------------------
def _conv1_kernel(x_ref, w_ref, b_ref, o_ref):
    """Fused Conv2d(3->32, k=3, pad=1) + bias + ReLU + MaxPool(2,2) for nb images.

    x_ref: (nb, 4, 4, 64, 32) bf16  im2col rows: (image, output-parity group g=(a,b),
                                    pool-window offset o=(i,j), 8x8 positions, K=27 padded to 32)
    w_ref: (32, 32) bf16            conv1 weight rows ordered (dh,dw,cin), K padded 27->32; cols=cout
    b_ref: (1, 32) f32
    o_ref: (nb, 4, 9, 9, 32) bf16   parity planes of the ZERO-PADDED conv1 output -- exactly the
                                    layout conv2 consumes, so no HBM repack between the conv layers.
    """
    nb = x_ref.shape[0]
    w = w_ref[...]
    bias = b_ref[...]
    for img in range(nb):
        # Zero the whole per-image plane block once (covers the pad=1 borders for conv2).
        o_ref[img] = jnp.zeros(o_ref.shape[1:], o_ref.dtype)
        for g in range(4):                       # parity group (a,b) of the pooled-output position
            a, b = g // 2, g % 2
            pooled = None
            for o in range(4):                   # conv1's own 2x2 max-pool window offset
                acc = jnp.dot(x_ref[img, g, o], w,
                              preferred_element_type=jnp.float32)        # (64, 32) f32
                pooled = acc if pooled is None else jnp.maximum(pooled, acc)
            # bias-add + ReLU commute with the (monotone) max-pool.
            y = jnp.maximum(pooled + bias, 0.0).astype(o_ref.dtype).reshape(8, 8, 32)
            # pooled position (2p+a, 2q+b) lands in parity plane (1-a, 1-b) of the padded input
            # at rows a:a+8 / cols b:b+8; the remaining row/col stays zero (= conv2's padding).
            o_ref[img, 2 * (1 - a) + (1 - b), a:a + 8, b:b + 8, :] = y


def _conv2_kernel(xp_ref, w_ref, b_ref, o_ref):
    """Fused Conv2d(32->64, k=3, pad=1) + bias + ReLU + MaxPool(2,2) for nb images.

    xp_ref: (nb, 4, 9, 9, 32) bf16  parity planes of the zero-padded conv1 output
    w_ref:  (512, 256) bf16         K = 16 window slots (u,v) * 32 cin; N = 4 pool offsets * 64 cout
    b_ref:  (1, 64) f32
    o_ref:  (nb, 64, 64) bf16       pooled output, (8x8 spatial)-major, 64 channels (no zero pad)
    """
    nb = xp_ref.shape[0]
    w = w_ref[...]
    bias = b_ref[...]
    for img in range(nb):
        # 16 distinct input windows, each sliced exactly once (dedup), folded into K via lane concat.
        pieces = []
        for u in range(4):
            for v in range(4):
                p = xp_ref[img, 2 * (u % 2) + (v % 2),
                           u // 2:u // 2 + 8, v // 2:v // 2 + 8, :]
                pieces.append(p.reshape(64, 32))
        lhs = jnp.concatenate(pieces, axis=-1)                             # (64, 512)
        acc = jnp.dot(lhs, w, preferred_element_type=jnp.float32)          # (64, 256)
        # 2x2 max-pool == max over the 4 pooling-offset column groups.
        pooled = jnp.maximum(jnp.maximum(acc[:, 0:64], acc[:, 64:128]),
                             jnp.maximum(acc[:, 128:192], acc[:, 192:256]))
        o_ref[img] = jnp.maximum(pooled + bias, 0.0).astype(o_ref.dtype)   # (64, 64)


def _fc_head_kernel(x_ref, w1_ref, b1_ref, w2_ref, b2_ref, o_ref):
    """Fused fc1 + ReLU + (eval) dropout + fc2 for one row tile, chunked by 128 rows internally."""
    tm = x_ref.shape[0]
    w1 = w1_ref[...]
    w2 = w2_ref[...]
    b1 = b1_ref[...]
    b2 = b2_ref[...]
    rc = 128
    for r in range(0, tm, rc):
        m = min(rc, tm - r)
        h = jnp.dot(x_ref[r:r + m, :], w1, preferred_element_type=jnp.float32)
        h = jnp.maximum(h + b1, 0.0)
        # TODO(synk): nn.Dropout(0.5) is identity at inference (eval); training-mode RNG masking not replicated.
        y = jnp.dot(h.astype(w2.dtype), w2, preferred_element_type=jnp.float32) + b2
        o_ref[r:r + m, :] = y


# ---------------------------------------------------------------------------
# Wrappers (cheap layout glue only)
# ---------------------------------------------------------------------------
def _pick_nb(n, target=8):
    """Images per conv grid step: amortize step overhead, keep >= 2 steps when possible (megacore)."""
    nb = min(target, max(1, n // 2))
    while n % nb:
        nb -= 1
    return nb


def _conv1_im2col(x_nhwc):
    """(N,32,32,3) bf16 -> (N, 4, 4, 64, 32) conv1 im2col, grouped by output parity / pool offset."""
    n = x_nhwc.shape[0]
    xp = jnp.pad(x_nhwc, ((0, 0), (1, 1), (1, 1), (0, 0)))                 # (N, 34, 34, 3)
    blocks = []
    for a in range(2):
        for b in range(2):                                                 # parity (a,b) of pooled pos
            for i in range(2):
                for j in range(2):                                         # pool-window offset (i,j)
                    taps = []
                    for dh in range(3):
                        for dw in range(3):
                            r0 = 2 * a + i + dh
                            c0 = 2 * b + j + dw
                            taps.append(xp[:, r0:r0 + 29:4, c0:c0 + 29:4, :])   # (N,8,8,3)
                    blocks.append(jnp.concatenate(taps, axis=-1).reshape(n, 64, 27))
    cols = jnp.stack(blocks, axis=1).reshape(n, 4, 4, 64, 27)
    return jnp.pad(cols, ((0, 0), (0, 0), (0, 0), (0, 0), (0, 5)))          # K 27 -> 32


def conv1_relu_pool(cols, w, b):
    n = cols.shape[0]
    nb = _pick_nb(n)
    return pl.pallas_call(
        _conv1_kernel,
        out_shape=jax.ShapeDtypeStruct((n, 4, 9, 9, 32), jnp.bfloat16),
        grid=(n // nb,),
        in_specs=[
            pl.BlockSpec((nb, 4, 4, 64, 32), lambda t: (t, 0, 0, 0, 0)),
            pl.BlockSpec((32, 32), lambda t: (0, 0)),
            pl.BlockSpec((1, 32), lambda t: (0, 0)),
        ],
        out_specs=pl.BlockSpec((nb, 4, 9, 9, 32), lambda t: (t, 0, 0, 0, 0)),
        compiler_params=pltpu.CompilerParams(
            dimension_semantics=("parallel",),
            vmem_limit_bytes=_VMEM_LIMIT,
        ),
    )(cols, w, b)


def conv2_relu_pool(planes, w, b):
    n = planes.shape[0]
    nb = _pick_nb(n)
    return pl.pallas_call(
        _conv2_kernel,
        out_shape=jax.ShapeDtypeStruct((n, 64, 64), jnp.bfloat16),
        grid=(n // nb,),
        in_specs=[
            pl.BlockSpec((nb, 4, 9, 9, 32), lambda t: (t, 0, 0, 0, 0)),
            pl.BlockSpec((512, 256), lambda t: (0, 0)),
            pl.BlockSpec((1, 64), lambda t: (0, 0)),
        ],
        out_specs=pl.BlockSpec((nb, 64, 64), lambda t: (t, 0, 0)),
        compiler_params=pltpu.CompilerParams(
            dimension_semantics=("parallel",),
            vmem_limit_bytes=_VMEM_LIMIT,
        ),
    )(planes, w, b)


def fc_head(x2d, w1, b1, w2, b2):
    """Fused fc1(+ReLU, eval-dropout) + fc2: (N, 4096) bf16 -> (N, 128) f32 (logits in [:, :10])."""
    n, k = x2d.shape
    tm = 512 if n >= 512 else n
    n_pad = ((n + tm - 1) // tm) * tm
    if n_pad != n:
        x2d = jnp.pad(x2d, ((0, n_pad - n), (0, 0)))
    out = pl.pallas_call(
        _fc_head_kernel,
        out_shape=jax.ShapeDtypeStruct((n_pad, 128), jnp.float32),
        grid=(n_pad // tm,),
        in_specs=[
            pl.BlockSpec((tm, k), lambda i: (i, 0)),
            pl.BlockSpec((k, 128), lambda i: (0, 0)),
            pl.BlockSpec((1, 128), lambda i: (0, 0)),
            pl.BlockSpec((128, 128), lambda i: (0, 0)),
            pl.BlockSpec((1, 128), lambda i: (0, 0)),
        ],
        out_specs=pl.BlockSpec((tm, 128), lambda i: (i, 0)),
        compiler_params=pltpu.CompilerParams(
            dimension_semantics=("parallel",),
            vmem_limit_bytes=_VMEM_LIMIT,
        ),
    )(x2d, w1, b1, w2, b2)
    return out[:n]


# ---------------------------------------------------------------------------
# Params + forward
# ---------------------------------------------------------------------------
def init_params(key):
    ks = jax.random.split(key, 8)

    def u(k, shape, fan_in):
        bound = 1.0 / jnp.sqrt(jnp.float32(fan_in))
        return jax.random.uniform(k, shape, jnp.float32, -bound, bound)

    # conv1: HWIO (3,3,3,32) -> rows ordered (dh,dw,cin), K zero-padded 27 -> 32.
    c1w = jnp.pad(u(ks[0], (3, 3, 3, 32), 3 * 9).reshape(27, 32), ((0, 5), (0, 0)))
    c1w = c1w.astype(jnp.bfloat16)
    c1b = u(ks[1], (32,), 3 * 9).reshape(1, 32).astype(jnp.float32)

    # conv2: HWIO (3,3,32,64) scattered into the taps+offsets-folded (512, 256) layout:
    #   row = (u*4+v)*32 + cin  for input-window slot (u,v);  col = (2i+j)*64 + cout.
    c2 = u(ks[2], (3, 3, 32, 64), 32 * 9)
    w_all = jnp.zeros((16, 32, 4, 64), jnp.float32)
    for i in range(2):
        for j in range(2):
            for dh in range(3):
                for dw in range(3):
                    w_all = w_all.at[(i + dh) * 4 + (j + dw), :, 2 * i + j, :].set(c2[dh, dw])
    c2w = w_all.reshape(512, 256).astype(jnp.bfloat16)
    c2b = u(ks[3], (64,), 32 * 9).reshape(1, 64).astype(jnp.float32)

    # fc1: rows in ((spatial p*8+q)*64 + channel) order, matching conv2's output layout.
    # (To port PyTorch weights, permute torch's NCHW-flatten rows (c*64 + p*8+q) into this order.)
    f1w = u(ks[4], (64 * 64, 128), 64 * 8 * 8).astype(jnp.bfloat16)
    f1b = u(ks[5], (128,), 64 * 8 * 8).reshape(1, 128).astype(jnp.float32)

    # fc2: (128, 10) -> output zero-padded 10 -> 128 (sliced back to 10 in the forward).
    f2w = jnp.pad(u(ks[6], (128, 10), 128), ((0, 0), (0, 118))).astype(jnp.bfloat16)
    f2b = jnp.pad(u(ks[7], (10,), 128), (0, 118)).reshape(1, 128).astype(jnp.float32)

    return {"conv1_w": c1w, "conv1_b": c1b, "conv2_w": c2w, "conv2_b": c2b,
            "fc1_w": f1w, "fc1_b": f1b, "fc2_w": f2w, "fc2_b": f2b}


@jax.jit
def cnn_forward(params, x_nchw):
    x = jnp.transpose(x_nchw, (0, 2, 3, 1)).astype(jnp.bfloat16)            # NCHW -> NHWC, bf16
    cols = _conv1_im2col(x)                                                 # (N, 4, 4, 64, 32)
    planes = conv1_relu_pool(cols, params["conv1_w"], params["conv1_b"])    # (N, 4, 9, 9, 32)
    feat = conv2_relu_pool(planes, params["conv2_w"], params["conv2_b"])    # (N, 64, 64)
    x2d = feat.reshape(feat.shape[0], 64 * 64)                              # (N, 4096), no zero rows
    y = fc_head(x2d, params["fc1_w"], params["fc1_b"],
                params["fc2_w"], params["fc2_b"])                           # (N, 128) f32
    return y[:, :10]                                                        # logits


if __name__ == "__main__":
    key = jax.random.PRNGKey(0)
    pkey, xkey = jax.random.split(key)
    params = init_params(pkey)
    # fc1 = Linear(64*8*8, 128) after two 2x2 pools implies a 32x32 spatial input.
    x = jax.random.normal(xkey, (2, 3, 32, 32), jnp.float32)
    out = cnn_forward(params, x)
    out = jax.block_until_ready(out)
    assert out.shape == (2, 10), out.shape
    assert bool(jnp.all(jnp.isfinite(out)))
    print("KERNEL_OK")
</pallas_src>

<mosaic_0001>
module attributes {stable_mosaic.version = 11 : i64} {
  func.func @_conv2_kernel(%arg0: i32, %arg1: memref<1x4x9x9x32xbf16, #tpu.memory_space<vmem>>, %arg2: memref<512x256xbf16, #tpu.memory_space<vmem>>, %arg3: memref<1x64xf32, #tpu.memory_space<vmem>>, %arg4: memref<1x64x64xbf16, #tpu.memory_space<vmem>>) attributes {dimension_semantics = [#tpu.dimension_semantics<parallel>], iteration_bounds = array<i64: 2>, scalar_prefetch = 0 : i64, scratch_operands = 0 : i64, tpu.core_type = #tpu.core_type<tc>, window_params = [{transform_indices = @transform_0, window_bounds = array<i64: 1, 4, 9, 9, 32>}, {pipeline_mode = #tpu.pipeline_mode<synchronous>, transform_indices = @transform_1, window_bounds = array<i64: 512, 256>}, {pipeline_mode = #tpu.pipeline_mode<synchronous>, transform_indices = @transform_2, window_bounds = array<i64: 1, 64>}, {transform_indices = @transform_3, window_bounds = array<i64: 1, 64, 64>}]} {
    %c0 = arith.constant 0 : index
    %c0_0 = arith.constant 0 : index
    %0 = vector.load %arg2[%c0, %c0_0] : memref<512x256xbf16, #tpu.memory_space<vmem>>, vector<512x256xbf16>
    %c0_1 = arith.constant 0 : index
    %c0_2 = arith.constant 0 : index
    %1 = vector.load %arg3[%c0_1, %c0_2] : memref<1x64xf32, #tpu.memory_space<vmem>>, vector<1x64xf32>
    %c0_3 = arith.constant 0 : index
    %c0_4 = arith.constant 0 : index
    %c0_5 = arith.constant 0 : index
    %c0_6 = arith.constant 0 : index
    %c0_7 = arith.constant 0 : index
    %2 = vector.load %arg1[%c0_3, %c0_4, %c0_5, %c0_6, %c0_7] : memref<1x4x9x9x32xbf16, #tpu.memory_space<vmem>>, vector<1x1x8x8x32xbf16>
    %3 = vector.shape_cast %2 : vector<1x1x8x8x32xbf16> to vector<8x8x32xbf16>
    %4 = vector.shape_cast %3 : vector<8x8x32xbf16> to vector<64x32xbf16>
    %c0_8 = arith.constant 0 : index
    %c1 = arith.constant 1 : index
    %c0_9 = arith.constant 0 : index
    %c0_10 = arith.constant 0 : index
    %c0_11 = arith.constant 0 : index
    %5 = vector.load %arg1[%c0_8, %c1, %c0_9, %c0_10, %c0_11] : memref<1x4x9x9x32xbf16, #tpu.memory_space<vmem>>, vector<1x1x8x8x32xbf16>
    %6 = vector.shape_cast %5 : vector<1x1x8x8x32xbf16> to vector<8x8x32xbf16>
    %7 = vector.shape_cast %6 : vector<8x8x32xbf16> to vector<64x32xbf16>
    %c0_12 = arith.constant 0 : index
    %c0_13 = arith.constant 0 : index
    %c0_14 = arith.constant 0 : index
    %c1_15 = arith.constant 1 : index
    %c0_16 = arith.constant 0 : index
    %8 = vector.load %arg1[%c0_12, %c0_13, %c0_14, %c1_15, %c0_16] : memref<1x4x9x9x32xbf16, #tpu.memory_space<vmem>>, vector<1x1x8x8x32xbf16>
    %9 = vector.shape_cast %8 : vector<1x1x8x8x32xbf16> to vector<8x8x32xbf16>
    %10 = vector.shape_cast %9 : vector<8x8x32xbf16> to vector<64x32xbf16>
    %c0_17 = arith.constant 0 : index
    %c1_18 = arith.constant 1 : index
    %c0_19 = arith.constant 0 : index
    %c1_20 = arith.constant 1 : index
    %c0_21 = arith.constant 0 : index
    %11 = vector.load %arg1[%c0_17, %c1_18, %c0_19, %c1_20, %c0_21] : memref<1x4x9x9x32xbf16, #tpu.memory_space<vmem>>, vector<1x1x8x8x32xbf16>
    %12 = vector.shape_cast %11 : vector<1x1x8x8x32xbf16> to vector<8x8x32xbf16>
    %13 = vector.shape_cast %12 : vector<8x8x32xbf16> to vector<64x32xbf16>
    %c0_22 = arith.constant 0 : index
    %c2 = arith.constant 2 : index
    %c0_23 = arith.constant 0 : index
    %c0_24 = arith.constant 0 : index
    %c0_25 = arith.constant 0 : index
    %14 = vector.load %arg1[%c0_22, %c2, %c0_23, %c0_24, %c0_25] : memref<1x4x9x9x32xbf16, #tpu.memory_space<vmem>>, vector<1x1x8x8x32xbf16>
    %15 = vector.shape_cast %14 : vector<1x1x8x8x32xbf16> to vector<8x8x32xbf16>
    %16 = vector.shape_cast %15 : vector<8x8x32xbf16> to vector<64x32xbf16>
    %c0_26 = arith.constant 0 : index
    %c3 = arith.constant 3 : index
    %c0_27 = arith.constant 0 : index
    %c0_28 = arith.constant 0 : index
    %c0_29 = arith.constant 0 : index
    %17 = vector.load %arg1[%c0_26, %c3, %c0_27, %c0_28, %c0_29] : memref<1x4x9x9x32xbf16, #tpu.memory_space<vmem>>, vector<1x1x8x8x32xbf16>
    %18 = vector.shape_cast %17 : vector<1x1x8x8x32xbf16> to vector<8x8x32xbf16>
    %19 = vector.shape_cast %18 : vector<8x8x32xbf16> to vector<64x32xbf16>
    %c0_30 = arith.constant 0 : index
    %c2_31 = arith.constant 2 : index
    %c0_32 = arith.constant 0 : index
    %c1_33 = arith.constant 1 : index
    %c0_34 = arith.constant 0 : index
    %20 = vector.load %arg1[%c0_30, %c2_31, %c0_32, %c1_33, %c0_34] : memref<1x4x9x9x32xbf16, #tpu.memory_space<vmem>>, vector<1x1x8x8x32xbf16>
    %21 = vector.shape_cast %20 : vector<1x1x8x8x32xbf16> to vector<8x8x32xbf16>
    %22 = vector.shape_cast %21 : vector<8x8x32xbf16> to vector<64x32xbf16>
    %c0_35 = arith.constant 0 : index
    %c3_36 = arith.constant 3 : index
    %c0_37 = arith.constant 0 : index
    %c1_38 = arith.constant 1 : index
    %c0_39 = arith.constant 0 : index
    %23 = vector.load %arg1[%c0_35, %c3_36, %c0_37, %c1_38, %c0_39] : memref<1x4x9x9x32xbf16, #tpu.memory_space<vmem>>, vector<1x1x8x8x32xbf16>
    %24 = vector.shape_cast %23 : vector<1x1x8x8x32xbf16> to vector<8x8x32xbf16>
    %25 = vector.shape_cast %24 : vector<8x8x32xbf16> to vector<64x32xbf16>
    %c0_40 = arith.constant 0 : index
    %c0_41 = arith.constant 0 : index
    %c1_42 = arith.constant 1 : index
    %c0_43 = arith.constant 0 : index
    %c0_44 = arith.constant 0 : index
    %26 = vector.load %arg1[%c0_40, %c0_41, %c1_42, %c0_43, %c0_44] : memref<1x4x9x9x32xbf16, #tpu.memory_space<vmem>>, vector<1x1x8x8x32xbf16>
    %27 = vector.shape_cast %26 : vector<1x1x8x8x32xbf16> to vector<8x8x32xbf16>
    %28 = vector.shape_cast %27 : vector<8x8x32xbf16> to vector<64x32xbf16>
    %c0_45 = arith.constant 0 : index
    %c1_46 = arith.constant 1 : index
    %c1_47 = arith.constant 1 : index
    %c0_48 = arith.constant 0 : index
    %c0_49 = arith.constant 0 : index
    %29 = vector.load %arg1[%c0_45, %c1_46, %c1_47, %c0_48, %c0_49] : memref<1x4x9x9x32xbf16, #tpu.memory_space<vmem>>, vector<1x1x8x8x32xbf16>
    %30 = vector.shape_cast %29 : vector<1x1x8x8x32xbf16> to vector<8x8x32xbf16>
    %31 = vector.shape_cast %30 : vector<8x8x32xbf16> to vector<64x32xbf16>
    %c0_50 = arith.constant 0 : index
    %c0_51 = arith.constant 0 : index
    %c1_52 = arith.constant 1 : index
    %c1_53 = arith.constant 1 : index
    %c0_54 = arith.constant 0 : index
    %32 = vector.load %arg1[%c0_50, %c0_51, %c1_52, %c1_53, %c0_54] : memref<1x4x9x9x32xbf16, #tpu.memory_space<vmem>>, vector<1x1x8x8x32xbf16>
    %33 = vector.shape_cast %32 : vector<1x1x8x8x32xbf16> to vector<8x8x32xbf16>
    %34 = vector.shape_cast %33 : vector<8x8x32xbf16> to vector<64x32xbf16>
    %c0_55 = arith.constant 0 : index
    %c1_56 = arith.constant 1 : index
    %c1_57 = arith.constant 1 : index
    %c1_58 = arith.constant 1 : index
    %c0_59 = arith.constant 0 : index
    %35 = vector.load %arg1[%c0_55, %c1_56, %c1_57, %c1_58, %c0_59] : memref<1x4x9x9x32xbf16, #tpu.memory_space<vmem>>, vector<1x1x8x8x32xbf16>
    %36 = vector.shape_cast %35 : vector<1x1x8x8x32xbf16> to vector<8x8x32xbf16>
    %37 = vector.shape_cast %36 : vector<8x8x32xbf16> to vector<64x32xbf16>
    %c0_60 = arith.constant 0 : index
    %c2_61 = arith.constant 2 : index
    %c1_62 = arith.constant 1 : index
    %c0_63 = arith.constant 0 : index
    %c0_64 = arith.constant 0 : index
    %38 = vector.load %arg1[%c0_60, %c2_61, %c1_62, %c0_63, %c0_64] : memref<1x4x9x9x32xbf16, #tpu.memory_space<vmem>>, vector<1x1x8x8x32xbf16>
    %39 = vector.shape_cast %38 : vector<1x1x8x8x32xbf16> to vector<8x8x32xbf16>
    %40 = vector.shape_cast %39 : vector<8x8x32xbf16> to vector<64x32xbf16>
    %c0_65 = arith.constant 0 : index
    %c3_66 = arith.constant 3 : index
    %c1_67 = arith.constant 1 : index
    %c0_68 = arith.constant 0 : index
    %c0_69 = arith.constant 0 : index
    %41 = vector.load %arg1[%c0_65, %c3_66, %c1_67, %c0_68, %c0_69] : memref<1x4x9x9x32xbf16, #tpu.memory_space<vmem>>, vector<1x1x8x8x32xbf16>
    %42 = vector.shape_cast %41 : vector<1x1x8x8x32xbf16> to vector<8x8x32xbf16>
    %43 = vector.shape_cast %42 : vector<8x8x32xbf16> to vector<64x32xbf16>
    %c0_70 = arith.constant 0 : index
    %c2_71 = arith.constant 2 : index
    %c1_72 = arith.constant 1 : index
    %c1_73 = arith.constant 1 : index
    %c0_74 = arith.constant 0 : index
    %44 = vector.load %arg1[%c0_70, %c2_71, %c1_72, %c1_73, %c0_74] : memref<1x4x9x9x32xbf16, #tpu.memory_space<vmem>>, vector<1x1x8x8x32xbf16>
    %45 = vector.shape_cast %44 : vector<1x1x8x8x32xbf16> to vector<8x8x32xbf16>
    %46 = vector.shape_cast %45 : vector<8x8x32xbf16> to vector<64x32xbf16>
    %c0_75 = arith.constant 0 : index
    %c3_76 = arith.constant 3 : index
    %c1_77 = arith.constant 1 : index
    %c1_78 = arith.constant 1 : index
    %c0_79 = arith.constant 0 : index
    %47 = vector.load %arg1[%c0_75, %c3_76, %c1_77, %c1_78, %c0_79] : memref<1x4x9x9x32xbf16, #tpu.memory_space<vmem>>, vector<1x1x8x8x32xbf16>
    %48 = vector.shape_cast %47 : vector<1x1x8x8x32xbf16> to vector<8x8x32xbf16>
    %49 = vector.shape_cast %48 : vector<8x8x32xbf16> to vector<64x32xbf16>
    %50 = tpu.concatenate %4, %7, %10, %13, %16, %19, %22, %25, %28, %31, %34, %37, %40, %43, %46, %49 in 1 : vector<64x32xbf16>, vector<64x32xbf16>, vector<64x32xbf16>, vector<64x32xbf16>, vector<64x32xbf16>, vector<64x32xbf16>, vector<64x32xbf16>, vector<64x32xbf16>, vector<64x32xbf16>, vector<64x32xbf16>, vector<64x32xbf16>, vector<64x32xbf16>, vector<64x32xbf16>, vector<64x32xbf16>, vector<64x32xbf16>, vector<64x32xbf16> -> vector<64x512xbf16>
    %cst = arith.constant dense<0.000000e+00> : vector<64x256xf32>
    %51 = tpu.matmul %50, %0, %cst {dimension_numbers = #tpu.dot_dimension_numbers<[1], [0], [0], [1], [0, 0, 1, 1], [], []>} : vector<64x512xbf16>, vector<512x256xbf16>, vector<64x256xf32> -> vector<64x256xf32>
    %52 = vector.extract_strided_slice %51 {offsets = [0, 0], sizes = [64, 64], strides = [1, 1]} : vector<64x256xf32> to vector<64x64xf32>
    %53 = vector.extract_strided_slice %51 {offsets = [0, 64], sizes = [64, 64], strides = [1, 1]} : vector<64x256xf32> to vector<64x64xf32>
    %54 = arith.maximumf %52, %53 : vector<64x64xf32>
    %55 = vector.extract_strided_slice %51 {offsets = [0, 128], sizes = [64, 64], strides = [1, 1]} : vector<64x256xf32> to vector<64x64xf32>
    %56 = vector.extract_strided_slice %51 {offsets = [0, 192], sizes = [64, 64], strides = [1, 1]} : vector<64x256xf32> to vector<64x64xf32>
    %57 = arith.maximumf %55, %56 : vector<64x64xf32>
    %58 = arith.maximumf %54, %57 : vector<64x64xf32>
    %59 = vector.broadcast %1 : vector<1x64xf32> to vector<64x64xf32>
    %60 = arith.addf %58, %59 : vector<64x64xf32>
    %cst_80 = arith.constant 0.000000e+00 : f32
    %61 = vector.broadcast %cst_80 : f32 to vector<64x64xf32>
    %62 = arith.maximumf %60, %61 : vector<64x64xf32>
    %63 = arith.truncf %62 : vector<64x64xf32> to vector<64x64xbf16>
    %c0_81 = arith.constant 0 : index
    %c0_82 = arith.constant 0 : index
    %c0_83 = arith.constant 0 : index
    %64 = vector.load %arg4[%c0_81, %c0_82, %c0_83] : memref<1x64x64xbf16, #tpu.memory_space<vmem>>, vector<1x64x64xbf16>
    %65 = vector.shape_cast %64 : vector<1x64x64xbf16> to vector<64x64xbf16>
    %66 = vector.shape_cast %63 : vector<64x64xbf16> to vector<1x64x64xbf16>
    tpu.vector_store %arg4[%c0_81, %c0_82, %c0_83], %66 {strides = array<i32>} : memref<1x64x64xbf16, #tpu.memory_space<vmem>>, vector<1x64x64xbf16>,
    return
  }
  func.func @transform_0(%arg0: i32) -> (i32, i32, i32, i32, i32) {
    %c0_i32 = arith.constant 0 : i32
    %c0_i32_0 = arith.constant 0 : i32
    %c0_i32_1 = arith.constant 0 : i32
    %c0_i32_2 = arith.constant 0 : i32
    %c0_i32_3 = arith.constant 0 : i32
    return %arg0, %c0_i32, %c0_i32_0, %c0_i32_1, %c0_i32_2 : i32, i32, i32, i32, i32
  }
  func.func @transform_1(%arg0: i32) -> (i32, i32) {
    %c0_i32 = arith.constant 0 : i32
    %c0_i32_0 = arith.constant 0 : i32
    %c0_i32_1 = arith.constant 0 : i32
    return %c0_i32, %c0_i32_0 : i32, i32
  }
  func.func @transform_2(%arg0: i32) -> (i32, i32) {
    %c0_i32 = arith.constant 0 : i32
    %c0_i32_0 = arith.constant 0 : i32
    %c0_i32_1 = arith.constant 0 : i32
    return %c0_i32, %c0_i32_0 : i32, i32
  }
  func.func @transform_3(%arg0: i32) -> (i32, i32, i32) {
    %c0_i32 = arith.constant 0 : i32
    %c0_i32_0 = arith.constant 0 : i32
    %c0_i32_1 = arith.constant 0 : i32
    return %arg0, %c0_i32, %c0_i32_0 : i32, i32, i32
  }
}

module attributes {stable_mosaic.version = 11 : i64} {
  func.func @_conv1_kernel(%arg0: i32, %arg1: memref<1x4x4x64x32xbf16, #tpu.memory_space<vmem>>, %arg2: memref<32x32xbf16, #tpu.memory_space<vmem>>, %arg3: memref<1x32xf32, #tpu.memory_space<vmem>>, %arg4: memref<1x4x9x9x32xbf16, #tpu.memory_space<vmem>>) attributes {dimension_semantics = [#tpu.dimension_semantics<parallel>], iteration_bounds = array<i64: 2>, scalar_prefetch = 0 : i64, scratch_operands = 0 : i64, tpu.core_type = #tpu.core_type<tc>, window_params = [{transform_indices = @transform_0, window_bounds = array<i64: 1, 4, 4, 64, 32>}, {pipeline_mode = #tpu.pipeline_mode<synchronous>, transform_indices = @transform_1, window_bounds = array<i64: 32, 32>}, {pipeline_mode = #tpu.pipeline_mode<synchronous>, transform_indices = @transform_2, window_bounds = array<i64: 1, 32>}, {transform_indices = @transform_3, window_bounds = array<i64: 1, 4, 9, 9, 32>}]} {
    %c0 = arith.constant 0 : index
    %c0_0 = arith.constant 0 : index
    %0 = vector.load %arg2[%c0, %c0_0] : memref<32x32xbf16, #tpu.memory_space<vmem>>, vector<32x32xbf16>
    %c0_1 = arith.constant 0 : index
    %c0_2 = arith.constant 0 : index
    %1 = vector.load %arg3[%c0_1, %c0_2] : memref<1x32xf32, #tpu.memory_space<vmem>>, vector<1x32xf32>
    %cst = arith.constant 0.000000e+00 : bf16
    %2 = vector.broadcast %cst : bf16 to vector<4x9x9x32xbf16>
    %c0_3 = arith.constant 0 : index
    %c0_4 = arith.constant 0 : index
    %c0_5 = arith.constant 0 : index
    %c0_6 = arith.constant 0 : index
    %c0_7 = arith.constant 0 : index
    %3 = vector.load %arg4[%c0_3, %c0_4, %c0_5, %c0_6, %c0_7] : memref<1x4x9x9x32xbf16, #tpu.memory_space<vmem>>, vector<1x4x9x9x32xbf16>
    %4 = vector.shape_cast %3 : vector<1x4x9x9x32xbf16> to vector<4x9x9x32xbf16>
    %5 = vector.shape_cast %2 : vector<4x9x9x32xbf16> to vector<1x4x9x9x32xbf16>
    tpu.vector_store %arg4[%c0_3, %c0_4, %c0_5, %c0_6, %c0_7], %5 {strides = array<i32>} : memref<1x4x9x9x32xbf16, #tpu.memory_space<vmem>>, vector<1x4x9x9x32xbf16>,
    %c0_8 = arith.constant 0 : index
    %c0_9 = arith.constant 0 : index
    %c0_10 = arith.constant 0 : index
    %c0_11 = arith.constant 0 : index
    %c0_12 = arith.constant 0 : index
    %6 = vector.load %arg1[%c0_8, %c0_9, %c0_10, %c0_11, %c0_12] : memref<1x4x4x64x32xbf16, #tpu.memory_space<vmem>>, vector<1x1x1x64x32xbf16>
    %7 = vector.shape_cast %6 : vector<1x1x1x64x32xbf16> to vector<64x32xbf16>
    %cst_13 = arith.constant dense<0.000000e+00> : vector<64x32xf32>
    %8 = tpu.matmul %7, %0, %cst_13 {dimension_numbers = #tpu.dot_dimension_numbers<[1], [0], [0], [1], [0, 0, 1, 1], [], []>} : vector<64x32xbf16>, vector<32x32xbf16>, vector<64x32xf32> -> vector<64x32xf32>
    %c0_14 = arith.constant 0 : index
    %c0_15 = arith.constant 0 : index
    %c1 = arith.constant 1 : index
    %c0_16 = arith.constant 0 : index
    %c0_17 = arith.constant 0 : index
    %9 = vector.load %arg1[%c0_14, %c0_15, %c1, %c0_16, %c0_17] : memref<1x4x4x64x32xbf16, #tpu.memory_space<vmem>>, vector<1x1x1x64x32xbf16>
    %10 = vector.shape_cast %9 : vector<1x1x1x64x32xbf16> to vector<64x32xbf16>
    %cst_18 = arith.constant dense<0.000000e+00> : vector<64x32xf32>
    %11 = tpu.matmul %10, %0, %cst_18 {dimension_numbers = #tpu.dot_dimension_numbers<[1], [0], [0], [1], [0, 0, 1, 1], [], []>} : vector<64x32xbf16>, vector<32x32xbf16>, vector<64x32xf32> -> vector<64x32xf32>
    %12 = arith.maximumf %8, %11 : vector<64x32xf32>
    %c0_19 = arith.constant 0 : index
    %c0_20 = arith.constant 0 : index
    %c2 = arith.constant 2 : index
    %c0_21 = arith.constant 0 : index
    %c0_22 = arith.constant 0 : index
    %13 = vector.load %arg1[%c0_19, %c0_20, %c2, %c0_21, %c0_22] : memref<1x4x4x64x32xbf16, #tpu.memory_space<vmem>>, vector<1x1x1x64x32xbf16>
    %14 = vector.shape_cast %13 : vector<1x1x1x64x32xbf16> to vector<64x32xbf16>
    %cst_23 = arith.constant dense<0.000000e+00> : vector<64x32xf32>
    %15 = tpu.matmul %14, %0, %cst_23 {dimension_numbers = #tpu.dot_dimension_numbers<[1], [0], [0], [1], [0, 0, 1, 1], [], []>} : vector<64x32xbf16>, vector<32x32xbf16>, vector<64x32xf32> -> vector<64x32xf32>
    %16 = arith.maximumf %12, %15 : vector<64x32xf32>
    %c0_24 = arith.constant 0 : index
    %c0_25 = arith.constant 0 : index
    %c3 = arith.constant 3 : index
    %c0_26 = arith.constant 0 : index
    %c0_27 = arith.constant 0 : index
    %17 = vector.load %arg1[%c0_24, %c0_25, %c3, %c0_26, %c0_27] : memref<1x4x4x64x32xbf16, #tpu.memory_space<vmem>>, vector<1x1x1x64x32xbf16>
    %18 = vector.shape_cast %17 : vector<1x1x1x64x32xbf16> to vector<64x32xbf16>
    %cst_28 = arith.constant dense<0.000000e+00> : vector<64x32xf32>
    %19 = tpu.matmul %18, %0, %cst_28 {dimension_numbers = #tpu.dot_dimension_numbers<[1], [0], [0], [1], [0, 0, 1, 1], [], []>} : vector<64x32xbf16>, vector<32x32xbf16>, vector<64x32xf32> -> vector<64x32xf32>
    %20 = arith.maximumf %16, %19 : vector<64x32xf32>
    %21 = vector.broadcast %1 : vector<1x32xf32> to vector<64x32xf32>
    %22 = arith.addf %20, %21 : vector<64x32xf32>
    %cst_29 = arith.constant 0.000000e+00 : f32
    %23 = vector.broadcast %cst_29 : f32 to vector<64x32xf32>
    %24 = arith.maximumf %22, %23 : vector<64x32xf32>
    %25 = arith.truncf %24 : vector<64x32xf32> to vector<64x32xbf16>
    %26 = vector.shape_cast %25 : vector<64x32xbf16> to vector<8x8x32xbf16>
    %c0_30 = arith.constant 0 : index
    %c3_31 = arith.constant 3 : index
    %c0_32 = arith.constant 0 : index
    %c0_33 = arith.constant 0 : index
    %c0_34 = arith.constant 0 : index
    %27 = vector.load %arg4[%c0_30, %c3_31, %c0_32, %c0_33, %c0_34] : memref<1x4x9x9x32xbf16, #tpu.memory_space<vmem>>, vector<1x1x8x8x32xbf16>
    %28 = vector.shape_cast %27 : vector<1x1x8x8x32xbf16> to vector<8x8x32xbf16>
    %29 = vector.shape_cast %26 : vector<8x8x32xbf16> to vector<1x1x8x8x32xbf16>
    tpu.vector_store %arg4[%c0_30, %c3_31, %c0_32, %c0_33, %c0_34], %29 {strides = array<i32>} : memref<1x4x9x9x32xbf16, #tpu.memory_space<vmem>>, vector<1x1x8x8x32xbf16>,
    %c0_35 = arith.constant 0 : index
    %c1_36 = arith.constant 1 : index
    %c0_37 = arith.constant 0 : index
    %c0_38 = arith.constant 0 : index
    %c0_39 = arith.constant 0 : index
    %30 = vector.load %arg1[%c0_35, %c1_36, %c0_37, %c0_38, %c0_39] : memref<1x4x4x64x32xbf16, #tpu.memory_space<vmem>>, vector<1x1x1x64x32xbf16>
    %31 = vector.shape_cast %30 : vector<1x1x1x64x32xbf16> to vector<64x32xbf16>
    %cst_40 = arith.constant dense<0.000000e+00> : vector<64x32xf32>
    %32 = tpu.matmul %31, %0, %cst_40 {dimension_numbers = #tpu.dot_dimension_numbers<[1], [0], [0], [1], [0, 0, 1, 1], [], []>} : vector<64x32xbf16>, vector<32x32xbf16>, vector<64x32xf32> -> vector<64x32xf32>
    %c0_41 = arith.constant 0 : index
    %c1_42 = arith.constant 1 : index
    %c1_43 = arith.constant 1 : index
    %c0_44 = arith.constant 0 : index
    %c0_45 = arith.constant 0 : index
    %33 = vector.load %arg1[%c0_41, %c1_42, %c1_43, %c0_44, %c0_45] : memref<1x4x4x64x32xbf16, #tpu.memory_space<vmem>>, vector<1x1x1x64x32xbf16>
    %34 = vector.shape_cast %33 : vector<1x1x1x64x32xbf16> to vector<64x32xbf16>
    %cst_46 = arith.constant dense<0.000000e+00> : vector<64x32xf32>
    %35 = tpu.matmul %34, %0, %cst_46 {dimension_numbers = #tpu.dot_dimension_numbers<[1], [0], [0], [1], [0, 0, 1, 1], [], []>} : vector<64x32xbf16>, vector<32x32xbf16>, vector<64x32xf32> -> vector<64x32xf32>
    %36 = arith.maximumf %32, %35 : vector<64x32xf32>
    %c0_47 = arith.constant 0 : index
    %c1_48 = arith.constant 1 : index
    %c2_49 = arith.constant 2 : index
    %c0_50 = arith.constant 0 : index
    %c0_51 = arith.constant 0 : index
    %37 = vector.load %arg1[%c0_47, %c1_48, %c2_49, %c0_50, %c0_51] : memref<1x4x4x64x32xbf16, #tpu.memory_space<vmem>>, vector<1x1x1x64x32xbf16>
    %38 = vector.shape_cast %37 : vector<1x1x1x64x32xbf16> to vector<64x32xbf16>
    %cst_52 = arith.constant dense<0.000000e+00> : vector<64x32xf32>
    %39 = tpu.matmul %38, %0, %cst_52 {dimension_numbers = #tpu.dot_dimension_numbers<[1], [0], [0], [1], [0, 0, 1, 1], [], []>} : vector<64x32xbf16>, vector<32x32xbf16>, vector<64x32xf32> -> vector<64x32xf32>
    %40 = arith.maximumf %36, %39 : vector<64x32xf32>
    %c0_53 = arith.constant 0 : index
    %c1_54 = arith.constant 1 : index
    %c3_55 = arith.constant 3 : index
    %c0_56 = arith.constant 0 : index
    %c0_57 = arith.constant 0 : index
    %41 = vector.load %arg1[%c0_53, %c1_54, %c3_55, %c0_56, %c0_57] : memref<1x4x4x64x32xbf16, #tpu.memory_space<vmem>>, vector<1x1x1x64x32xbf16>
    %42 = vector.shape_cast %41 : vector<1x1x1x64x32xbf16> to vector<64x32xbf16>
    %cst_58 = arith.constant dense<0.000000e+00> : vector<64x32xf32>
    %43 = tpu.matmul %42, %0, %cst_58 {dimension_numbers = #tpu.dot_dimension_numbers<[1], [0], [0], [1], [0, 0, 1, 1], [], []>} : vector<64x32xbf16>, vector<32x32xbf16>, vector<64x32xf32> -> vector<64x32xf32>
    %44 = arith.maximumf %40, %43 : vector<64x32xf32>
    %45 = vector.broadcast %1 : vector<1x32xf32> to vector<64x32xf32>
    %46 = arith.addf %44, %45 : vector<64x32xf32>
    %cst_59 = arith.constant 0.000000e+00 : f32
    %47 = vector.broadcast %cst_59 : f32 to vector<64x32xf32>
    %48 = arith.maximumf %46, %47 : vector<64x32xf32>
    %49 = arith.truncf %48 : vector<64x32xf32> to vector<64x32xbf16>
    %50 = vector.shape_cast %49 : vector<64x32xbf16> to vector<8x8x32xbf16>
    %c0_60 = arith.constant 0 : index
    %c2_61 = arith.constant 2 : index
    %c0_62 = arith.constant 0 : index
    %c1_63 = arith.constant 1 : index
    %c0_64 = arith.constant 0 : index
    %51 = vector.load %arg4[%c0_60, %c2_61, %c0_62, %c1_63, %c0_64] : memref<1x4x9x9x32xbf16, #tpu.memory_space<vmem>>, vector<1x1x8x8x32xbf16>
    %52 = vector.shape_cast %51 : vector<1x1x8x8x32xbf16> to vector<8x8x32xbf16>
    %53 = vector.shape_cast %50 : vector<8x8x32xbf16> to vector<1x1x8x8x32xbf16>
    tpu.vector_store %arg4[%c0_60, %c2_61, %c0_62, %c1_63, %c0_64], %53 {strides = array<i32>} : memref<1x4x9x9x32xbf16, #tpu.memory_space<vmem>>, vector<1x1x8x8x32xbf16>,
    %c0_65 = arith.constant 0 : index
    %c2_66 = arith.constant 2 : index
    %c0_67 = arith.constant 0 : index
    %c0_68 = arith.constant 0 : index
    %c0_69 = arith.constant 0 : index
    %54 = vector.load %arg1[%c0_65, %c2_66, %c0_67, %c0_68, %c0_69] : memref<1x4x4x64x32xbf16, #tpu.memory_space<vmem>>, vector<1x1x1x64x32xbf16>
    %55 = vector.shape_cast %54 : vector<1x1x1x64x32xbf16> to vector<64x32xbf16>
    %cst_70 = arith.constant dense<0.000000e+00> : vector<64x32xf32>
    %56 = tpu.matmul %55, %0, %cst_70 {dimension_numbers = #tpu.dot_dimension_numbers<[1], [0], [0], [1], [0, 0, 1, 1], [], []>} : vector<64x32xbf16>, vector<32x32xbf16>, vector<64x32xf32> -> vector<64x32xf32>
    %c0_71 = arith.constant 0 : index
    %c2_72 = arith.constant 2 : index
    %c1_73 = arith.constant 1 : index
    %c0_74 = arith.constant 0 : index
    %c0_75 = arith.constant 0 : index
    %57 = vector.load %arg1[%c0_71, %c2_72, %c1_73, %c0_74, %c0_75] : memref<1x4x4x64x32xbf16, #tpu.memory_space<vmem>>, vector<1x1x1x64x32xbf16>
    %58 = vector.shape_cast %57 : vector<1x1x1x64x32xbf16> to vector<64x32xbf16>
    %cst_76 = arith.constant dense<0.000000e+00> : vector<64x32xf32>
    %59 = tpu.matmul %58, %0, %cst_76 {dimension_numbers = #tpu.dot_dimension_numbers<[1], [0], [0], [1], [0, 0, 1, 1], [], []>} : vector<64x32xbf16>, vector<32x32xbf16>, vector<64x32xf32> -> vector<64x32xf32>
    %60 = arith.maximumf %56, %59 : vector<64x32xf32>
    %c0_77 = arith.constant 0 : index
    %c2_78 = arith.constant 2 : index
    %c2_79 = arith.constant 2 : index
    %c0_80 = arith.constant 0 : index
    %c0_81 = arith.constant 0 : index
    %61 = vector.load %arg1[%c0_77, %c2_78, %c2_79, %c0_80, %c0_81] : memref<1x4x4x64x32xbf16, #tpu.memory_space<vmem>>, vector<1x1x1x64x32xbf16>
    %62 = vector.shape_cast %61 : vector<1x1x1x64x32xbf16> to vector<64x32xbf16>
    %cst_82 = arith.constant dense<0.000000e+00> : vector<64x32xf32>
    %63 = tpu.matmul %62, %0, %cst_82 {dimension_numbers = #tpu.dot_dimension_numbers<[1], [0], [0], [1], [0, 0, 1, 1], [], []>} : vector<64x32xbf16>, vector<32x32xbf16>, vector<64x32xf32> -> vector<64x32xf32>
    %64 = arith.maximumf %60, %63 : vector<64x32xf32>
    %c0_83 = arith.constant 0 : index
    %c2_84 = arith.constant 2 : index
    %c3_85 = arith.constant 3 : index
    %c0_86 = arith.constant 0 : index
    %c0_87 = arith.constant 0 : index
    %65 = vector.load %arg1[%c0_83, %c2_84, %c3_85, %c0_86, %c0_87] : memref<1x4x4x64x32xbf16, #tpu.memory_space<vmem>>, vector<1x1x1x64x32xbf16>
    %66 = vector.shape_cast %65 : vector<1x1x1x64x32xbf16> to vector<64x32xbf16>
    %cst_88 = arith.constant dense<0.000000e+00> : vector<64x32xf32>
    %67 = tpu.matmul %66, %0, %cst_88 {dimension_numbers = #tpu.dot_dimension_numbers<[1], [0], [0], [1], [0, 0, 1, 1], [], []>} : vector<64x32xbf16>, vector<32x32xbf16>, vector<64x32xf32> -> vector<64x32xf32>
    %68 = arith.maximumf %64, %67 : vector<64x32xf32>
    %69 = vector.broadcast %1 : vector<1x32xf32> to vector<64x32xf32>
    %70 = arith.addf %68, %69 : vector<64x32xf32>
    %cst_89 = arith.constant 0.000000e+00 : f32
    %71 = vector.broadcast %cst_89 : f32 to vector<64x32xf32>
    %72 = arith.maximumf %70, %71 : vector<64x32xf32>
    %73 = arith.truncf %72 : vector<64x32xf32> to vector<64x32xbf16>
    %74 = vector.shape_cast %73 : vector<64x32xbf16> to vector<8x8x32xbf16>
    %c0_90 = arith.constant 0 : index
    %c1_91 = arith.constant 1 : index
    %c1_92 = arith.constant 1 : index
    %c0_93 = arith.constant 0 : index
    %c0_94 = arith.constant 0 : index
    %75 = vector.load %arg4[%c0_90, %c1_91, %c1_92, %c0_93, %c0_94] : memref<1x4x9x9x32xbf16, #tpu.memory_space<vmem>>, vector<1x1x8x8x32xbf16>
    %76 = vector.shape_cast %75 : vector<1x1x8x8x32xbf16> to vector<8x8x32xbf16>
    %77 = vector.shape_cast %74 : vector<8x8x32xbf16> to vector<1x1x8x8x32xbf16>
    tpu.vector_store %arg4[%c0_90, %c1_91, %c1_92, %c0_93, %c0_94], %77 {strides = array<i32>} : memref<1x4x9x9x32xbf16, #tpu.memory_space<vmem>>, vector<1x1x8x8x32xbf16>,
    %c0_95 = arith.constant 0 : index
    %c3_96 = arith.constant 3 : index
    %c0_97 = arith.constant 0 : index
    %c0_98 = arith.constant 0 : index
    %c0_99 = arith.constant 0 : index
    %78 = vector.load %arg1[%c0_95, %c3_96, %c0_97, %c0_98, %c0_99] : memref<1x4x4x64x32xbf16, #tpu.memory_space<vmem>>, vector<1x1x1x64x32xbf16>
    %79 = vector.shape_cast %78 : vector<1x1x1x64x32xbf16> to vector<64x32xbf16>
    %cst_100 = arith.constant dense<0.000000e+00> : vector<64x32xf32>
    %80 = tpu.matmul %79, %0, %cst_100 {dimension_numbers = #tpu.dot_dimension_numbers<[1], [0], [0], [1], [0, 0, 1, 1], [], []>} : vector<64x32xbf16>, vector<32x32xbf16>, vector<64x32xf32> -> vector<64x32xf32>
    %c0_101 = arith.constant 0 : index
    %c3_102 = arith.constant 3 : index
    %c1_103 = arith.constant 1 : index
    %c0_104 = arith.constant 0 : index
    %c0_105 = arith.constant 0 : index
    %81 = vector.load %arg1[%c0_101, %c3_102, %c1_103, %c0_104, %c0_105] : memref<1x4x4x64x32xbf16, #tpu.memory_space<vmem>>, vector<1x1x1x64x32xbf16>
    %82 = vector.shape_cast %81 : vector<1x1x1x64x32xbf16> to vector<64x32xbf16>
    %cst_106 = arith.constant dense<0.000000e+00> : vector<64x32xf32>
    %83 = tpu.matmul %82, %0, %cst_106 {dimension_numbers = #tpu.dot_dimension_numbers<[1], [0], [0], [1], [0, 0, 1, 1], [], []>} : vector<64x32xbf16>, vector<32x32xbf16>, vector<64x32xf32> -> vector<64x32xf32>
    %84 = arith.maximumf %80, %83 : vector<64x32xf32>
    %c0_107 = arith.constant 0 : index
    %c3_108 = arith.constant 3 : index
    %c2_109 = arith.constant 2 : index
    %c0_110 = arith.constant 0 : index
    %c0_111 = arith.constant 0 : index
    %85 = vector.load %arg1[%c0_107, %c3_108, %c2_109, %c0_110, %c0_111] : memref<1x4x4x64x32xbf16, #tpu.memory_space<vmem>>, vector<1x1x1x64x32xbf16>
    %86 = vector.shape_cast %85 : vector<1x1x1x64x32xbf16> to vector<64x32xbf16>
    %cst_112 = arith.constant dense<0.000000e+00> : vector<64x32xf32>
    %87 = tpu.matmul %86, %0, %cst_112 {dimension_numbers = #tpu.dot_dimension_numbers<[1], [0], [0], [1], [0, 0, 1, 1], [], []>} : vector<64x32xbf16>, vector<32x32xbf16>, vector<64x32xf32> -> vector<64x32xf32>
    %88 = arith.maximumf %84, %87 : vector<64x32xf32>
    %c0_113 = arith.constant 0 : index
    %c3_114 = arith.constant 3 : index
    %c3_115 = arith.constant 3 : index
    %c0_116 = arith.constant 0 : index
    %c0_117 = arith.constant 0 : index
    %89 = vector.load %arg1[%c0_113, %c3_114, %c3_115, %c0_116, %c0_117] : memref<1x4x4x64x32xbf16, #tpu.memory_space<vmem>>, vector<1x1x1x64x32xbf16>
    %90 = vector.shape_cast %89 : vector<1x1x1x64x32xbf16> to vector<64x32xbf16>
    %cst_118 = arith.constant dense<0.000000e+00> : vector<64x32xf32>
    %91 = tpu.matmul %90, %0, %cst_118 {dimension_numbers = #tpu.dot_dimension_numbers<[1], [0], [0], [1], [0, 0, 1, 1], [], []>} : vector<64x32xbf16>, vector<32x32xbf16>, vector<64x32xf32> -> vector<64x32xf32>
    %92 = arith.maximumf %88, %91 : vector<64x32xf32>
    %93 = vector.broadcast %1 : vector<1x32xf32> to vector<64x32xf32>
    %94 = arith.addf %92, %93 : vector<64x32xf32>
    %cst_119 = arith.constant 0.000000e+00 : f32
    %95 = vector.broadcast %cst_119 : f32 to vector<64x32xf32>
    %96 = arith.maximumf %94, %95 : vector<64x32xf32>
    %97 = arith.truncf %96 : vector<64x32xf32> to vector<64x32xbf16>
    %98 = vector.shape_cast %97 : vector<64x32xbf16> to vector<8x8x32xbf16>
    %c0_120 = arith.constant 0 : index
    %c0_121 = arith.constant 0 : index
    %c1_122 = arith.constant 1 : index
    %c1_123 = arith.constant 1 : index
    %c0_124 = arith.constant 0 : index
    %99 = vector.load %arg4[%c0_120, %c0_121, %c1_122, %c1_123, %c0_124] : memref<1x4x9x9x32xbf16, #tpu.memory_space<vmem>>, vector<1x1x8x8x32xbf16>
    %100 = vector.shape_cast %99 : vector<1x1x8x8x32xbf16> to vector<8x8x32xbf16>
    %101 = vector.shape_cast %98 : vector<8x8x32xbf16> to vector<1x1x8x8x32xbf16>
    tpu.vector_store %arg4[%c0_120, %c0_121, %c1_122, %c1_123, %c0_124], %101 {strides = array<i32>} : memref<1x4x9x9x32xbf16, #tpu.memory_space<vmem>>, vector<1x1x8x8x32xbf16>,
    return
  }
  func.func @transform_0(%arg0: i32) -> (i32, i32, i32, i32, i32) {
    %c0_i32 = arith.constant 0 : i32
    %c0_i32_0 = arith.constant 0 : i32
    %c0_i32_1 = arith.constant 0 : i32
    %c0_i32_2 = arith.constant 0 : i32
    %c0_i32_3 = arith.constant 0 : i32
    return %arg0, %c0_i32, %c0_i32_0, %c0_i32_1, %c0_i32_2 : i32, i32, i32, i32, i32
  }
  func.func @transform_1(%arg0: i32) -> (i32, i32) {
    %c0_i32 = arith.constant 0 : i32
    %c0_i32_0 = arith.constant 0 : i32
    %c0_i32_1 = arith.constant 0 : i32
    return %c0_i32, %c0_i32_0 : i32, i32
  }
  func.func @transform_2(%arg0: i32) -> (i32, i32) {
    %c0_i32 = arith.constant 0 : i32
    %c0_i32_0 = arith.constant 0 : i32
    %c0_i32_1 = arith.constant 0 : i32
    return %c0_i32, %c0_i32_0 : i32, i32
  }
  func.func @transform_3(%arg0: i32) -> (i32, i32, i32, i32, i32) {
    %c0_i32 = arith.constant 0 : i32
    %c0_i32_0 = arith.constant 0 : i32
    %c0_i32_1 = arith.constant 0 : i32
    %c0_i32_2 = arith.constant 0 : i32
    %c0_i32_3 = arith.constant 0 : i32
    return %arg0, %c0_i32, %c0_i32_0, %c0_i32_1, %c0_i32_2 : i32, i32, i32, i32, i32
  }
}

module attributes {stable_mosaic.version = 11 : i64} {
  func.func @_fc_head_kernel(%arg0: i32, %arg1: memref<2x4096xbf16, #tpu.memory_space<vmem>>, %arg2: memref<4096x128xbf16, #tpu.memory_space<vmem>>, %arg3: memref<1x128xf32, #tpu.memory_space<vmem>>, %arg4: memref<128x128xbf16, #tpu.memory_space<vmem>>, %arg5: memref<1x128xf32, #tpu.memory_space<vmem>>, %arg6: memref<2x128xf32, #tpu.memory_space<vmem>>) attributes {dimension_semantics = [#tpu.dimension_semantics<parallel>], iteration_bounds = array<i64: 1>, scalar_prefetch = 0 : i64, scratch_operands = 0 : i64, tpu.core_type = #tpu.core_type<tc>, window_params = [{transform_indices = @transform_0, window_bounds = array<i64: 2, 4096>}, {pipeline_mode = #tpu.pipeline_mode<synchronous>, transform_indices = @transform_1, window_bounds = array<i64: 4096, 128>}, {pipeline_mode = #tpu.pipeline_mode<synchronous>, transform_indices = @transform_2, window_bounds = array<i64: 1, 128>}, {pipeline_mode = #tpu.pipeline_mode<synchronous>, transform_indices = @transform_3, window_bounds = array<i64: 128, 128>}, {pipeline_mode = #tpu.pipeline_mode<synchronous>, transform_indices = @transform_4, window_bounds = array<i64: 1, 128>}, {transform_indices = @transform_5, window_bounds = array<i64: 2, 128>}]} {
    %c0 = arith.constant 0 : index
    %c0_0 = arith.constant 0 : index
    %0 = vector.load %arg2[%c0, %c0_0] : memref<4096x128xbf16, #tpu.memory_space<vmem>>, vector<4096x128xbf16>
    %c0_1 = arith.constant 0 : index
    %c0_2 = arith.constant 0 : index
    %1 = vector.load %arg4[%c0_1, %c0_2] : memref<128x128xbf16, #tpu.memory_space<vmem>>, vector<128x128xbf16>
    %c0_3 = arith.constant 0 : index
    %c0_4 = arith.constant 0 : index
    %2 = vector.load %arg3[%c0_3, %c0_4] : memref<1x128xf32, #tpu.memory_space<vmem>>, vector<1x128xf32>
    %c0_5 = arith.constant 0 : index
    %c0_6 = arith.constant 0 : index
    %3 = vector.load %arg5[%c0_5, %c0_6] : memref<1x128xf32, #tpu.memory_space<vmem>>, vector<1x128xf32>
    %c0_7 = arith.constant 0 : index
    %c0_8 = arith.constant 0 : index
    %4 = vector.load %arg1[%c0_7, %c0_8] : memref<2x4096xbf16, #tpu.memory_space<vmem>>, vector<2x4096xbf16>
    %cst = arith.constant dense<0.000000e+00> : vector<2x128xf32>
    %5 = tpu.matmul %4, %0, %cst {dimension_numbers = #tpu.dot_dimension_numbers<[1], [0], [0], [1], [0, 0, 1, 1], [], []>} : vector<2x4096xbf16>, vector<4096x128xbf16>, vector<2x128xf32> -> vector<2x128xf32>
    %6 = vector.broadcast %2 : vector<1x128xf32> to vector<2x128xf32>
    %7 = arith.addf %5, %6 : vector<2x128xf32>
    %cst_9 = arith.constant 0.000000e+00 : f32
    %8 = vector.broadcast %cst_9 : f32 to vector<2x128xf32>
    %9 = arith.maximumf %7, %8 : vector<2x128xf32>
    %10 = arith.truncf %9 : vector<2x128xf32> to vector<2x128xbf16>
    %cst_10 = arith.constant dense<0.000000e+00> : vector<2x128xf32>
    %11 = tpu.matmul %10, %1, %cst_10 {dimension_numbers = #tpu.dot_dimension_numbers<[1], [0], [0], [1], [0, 0, 1, 1], [], []>} : vector<2x128xbf16>, vector<128x128xbf16>, vector<2x128xf32> -> vector<2x128xf32>
    %12 = vector.broadcast %3 : vector<1x128xf32> to vector<2x128xf32>
    %13 = arith.addf %11, %12 : vector<2x128xf32>
    %c0_11 = arith.constant 0 : index
    %c0_12 = arith.constant 0 : index
    %14 = vector.load %arg6[%c0_11, %c0_12] : memref<2x128xf32, #tpu.memory_space<vmem>>, vector<2x128xf32>
    tpu.vector_store %arg6[%c0_11, %c0_12], %13 {strides = array<i32>} : memref<2x128xf32, #tpu.memory_space<vmem>>, vector<2x128xf32>,
    return
  }
  func.func @transform_0(%arg0: i32) -> (i32, i32) {
    %c0_i32 = arith.constant 0 : i32
    %c0_i32_0 = arith.constant 0 : i32
    return %arg0, %c0_i32 : i32, i32
  }
  func.func @transform_1(%arg0: i32) -> (i32, i32) {
    %c0_i32 = arith.constant 0 : i32
    %c0_i32_0 = arith.constant 0 : i32
    %c0_i32_1 = arith.constant 0 : i32
    return %c0_i32, %c0_i32_0 : i32, i32
  }
  func.func @transform_2(%arg0: i32) -> (i32, i32) {
    %c0_i32 = arith.constant 0 : i32
    %c0_i32_0 = arith.constant 0 : i32
    %c0_i32_1 = arith.constant 0 : i32
    return %c0_i32, %c0_i32_0 : i32, i32
  }
  func.func @transform_3(%arg0: i32) -> (i32, i32) {
    %c0_i32 = arith.constant 0 : i32
    %c0_i32_0 = arith.constant 0 : i32
    %c0_i32_1 = arith.constant 0 : i32
    return %c0_i32, %c0_i32_0 : i32, i32
  }
  func.func @transform_4(%arg0: i32) -> (i32, i32) {
    %c0_i32 = arith.constant 0 : i32
    %c0_i32_0 = arith.constant 0 : i32
    %c0_i32_1 = arith.constant 0 : i32
    return %c0_i32, %c0_i32_0 : i32, i32
  }
  func.func @transform_5(%arg0: i32) -> (i32, i32) {
    %c0_i32 = arith.constant 0 : i32
    %c0_i32_0 = arith.constant 0 : i32
    return %arg0, %c0_i32 : i32, i32
  }
}

</mosaic_0001>

<bundles_post_ra>
// kernel: cnn_forward.4
= control target key start
LH: loop header
LB: loop body
LE: loop exit
PB: predicated region body
PF: predicated region fallthrough
CT: control target
= control target key end

     0   :  { %s2902_s12 = smov 0   ;;  %s3935_s0 = inlined_call_operand.vmem [shape: bf16[2,4,9,9,32], index: 0, kind: input, shape index: {}]   ;;  %s3936_s1 = inlined_call_operand.vmem [shape: bf16[512,256], index: 1, kind: input, shape index: {}]   ;;  %s3937_s2 = inlined_call_operand.vmem [shape: f32[1,64], index: 2, kind: input, shape index: {}]   ;;  %s3938_s3 = inlined_call_operand.vmem [shape: bf16[2,64,64], index: 3, kind: output, shape index: {}]  }
   0x1 LB: > { %s2425_s13 = sadd.s32 4294967295, %s2877_s12   ;;  %p2429_p0 = scmp.ge.s32.totalorder %s2877_s12, 1  ;;  %s2877_s12 = sphi %s2902_s12, %s13_s12  }
   0x2   : > { %p137_p1 = scmp.lt.s32.totalorder %s2877_s12, 3 }
   0x4   : > { %p138_p2 = pnand %p2429_p0, %p137_p1 }
   0x5   : > { %p161_p3 = scmp.lt.s32.totalorder (!%p138_p2), %s2425_s13, 1  ;;  %v2733_v0 = vld [vmem:[%s3936_s1 + $0x4] ss:$8 sps:$4 sm:$0xff] (!%p138_p2)   ;;  %v2736_v1 = vld [vmem:[%s3936_s1] ss:$8 sps:$4 sm:$0xff] (!%p138_p2)   ;;  %s2879_s28 = smov (!%p138_p2), 32  }
   0x6   : > { %141 = sbr.rel (%p138_p2) target bundleno = 647 (0x287), region = 32  ;;  %2073 = vmatprep.subr.bf16.mxu1 (!%p138_p2), %v2733_v0  ;;  %v2737_v2 = vld [vmem:[%s3936_s1 + $0x14] ss:$8 sps:$4 sm:$0xff] (!%p138_p2)   ;;  %v2740_v3 = vld [vmem:[%s3936_s1 + $0x10] ss:$8 sps:$4 sm:$0xff] (!%p138_p2)   ;;  %s2880_s29 = smov (!%p138_p2), 64  }
   0x7   : > { %2074 = vmatpush1.bf16.msra.mxu1 (!%p138_p2), %v2736_v1  ;;  %v2741_v4 = vld [vmem:[%s3936_s1 + $0x104] ss:$8 sps:$4 sm:$0xff] (!%p138_p2)   ;;  %vm261_vm0 = vsmask.f32 (!%p138_p2), 3328  ;;  %vm262_vm1 = vsmask.f32 (!%p138_p2), 7440 }
   0x8   : > { %2075 = vmatprep.subr.bf16.mxu1 (!%p138_p2), %v2737_v2  ;;  %2146 = vmatprep.subr.bf16.mxu0 (!%p138_p2), %v2741_v4  ;;  %vm2980_vm2 = vmor (!%p138_p2), %vm261_vm0, %vm262_vm1  ;;  %s2881_s30 = smov (!%p138_p2), 96   ;;  %vm1622_vm3 = vcmask (!%p138_p2), 261120   ;;  %vm1635_vm4 = vcmask (!%p138_p2), 523264   ;;  %vm1644_vm5 = vcmask (!%p138_p2), 785408   ;;  %vm2361_vm6 = vcmask (!%p138_p2), 519168  }
   0xb   : > { %2076 = vmatpush1.bf16.msra.mxu1 (!%p138_p2), %v2740_v3 }
   0xd   : > { %s3942_s13 = smov (!%p161_p3, %s2425_s13), 1 }
   0xe   : > { %s2709_s18 = smul.u32 288, %s3942_s13  ;;  %s2684_s17 = sshll.u32 %s3942_s13, 5 }
   0xf   : > { %s3896_s20 = scalar_lea.vmem %s3938_s3, %s2684_s17 }
  0x10   : > { %s2931_s27 = scalar_lea.vmem %s3935_s0, %s2709_s18 }
  0x11   : > { %v2457_v5 = vld [vmem:[%s2931_s27 + $0xd8] sm:$0xf]  ;;  %v2458_v6 = vld [vmem:[%s2931_s27 + $0xe0] sm:$0xf]  ;;  %v2522_v12 = vld [vmem:[%s2931_s27 + $0xe8] sm:$0xf] }
  0x12   : > { %v2521_v7 = vld [vmem:[%s2931_s27 + $0xe0] sm:$0xf]  ;;  %v657_v8 = vshrl.u32 %v2458_v6, 16  ;;  %v660_v9 = vshll.u32 %v2458_v6, 16  ;;  %v2565_v10 = vcombine.low %v2457_v5, %v2458_v6  ;;  %v643_v11 = vshrl.u32 %v2457_v5, 16 }
  0x13   : > { %v646_v13 = vshll.u32 %v2457_v5, 16  ;;  %v1159_v14 = vshrl.u32 %v2521_v7, 16  ;;  %v1162_v15 = vshll.u32 %v2521_v7, 16  ;;  %v1173_v16 = vshrl.u32 %v2522_v12, 16  ;;  %v2433_v17 = vld [vmem:[%s2931_s27 + $0x48] sm:$0xf] }
  0x14   : > { %v659_v18 = vrot.slane %v657_v8, 4  ;;  %v662_v19 = vrot.slane %v660_v9, 5  ;;  %1398 = vrot.lane.b32.xlu0 %v2565_v10, %s2879_s28  ;;  %v645_v20 = vrot.slane %v643_v11, 4  ;;  %v1176_v21 = vshll.u32 %v2522_v12, 16  ;;  %v2434_v22 = vld [vmem:[%s2931_s27 + $0x50] sm:$0xf] }
  0x15   : > { %v648_v23 = vrot.slane %v646_v13, 5  ;;  %v2940_v24 = vrot.slane %v1159_v14, 4  ;;  %v2942_v25 = vrot.slane %v1162_v15, 5  ;;  %v2944_v26 = vrot.slane %v1173_v16, 4  ;;  %v2489_v35 = vld [vmem:[%s2931_s27 + $0x50] sm:$0xf] }
  0x16   : > { %v663_v27 = vor.u32 %v662_v19, %v659_v18  ;;  %v2946_v28 = vrot.slane %v1176_v21, 5  ;;  %v2597_v29 = vcombine.low %v2521_v7, %v2522_v12  ;;  %v399_v30 = vshrl.u32 %v2434_v22, 16  ;;  %v2490_v36 = vld [vmem:[%s2931_s27 + $0x58] sm:$0xf]  ;;  %v2449_v41 = vld [vmem:[%s2931_s27 + $0x90] sm:$0xf] }
  0x17   : > { %v649_v31 = vor.u32 %v648_v23, %v645_v20  ;;  %v402_v32 = vshll.u32 %v2434_v22, 16  ;;  %v2549_v33 = vcombine.low %v2433_v17, %v2434_v22  ;;  %v385_v34 = vshrl.u32 %v2433_v17, 16  ;;  %v2450_v46 = vld [vmem:[%s2931_s27 + $0x98] sm:$0xf]  ;;  %v2465_v51 = vld [vmem:[%s2931_s27 + $0x94] sm:$0x1] }
  0x18   : > { %v2950_v37 = vrot.slane %v663_v27, 4  ;;  %1574 = vrot.lane.b32.xlu0 %v2597_v29, %s2879_s28  ;;  %v401_v38 = vrot.slane %v399_v30, 4  ;;  %v388_v39 = vshll.u32 %v2433_v17, 16  ;;  %v901_v40 = vshrl.u32 %v2489_v35, 16  ;;  %v2466_v55 = vld [vmem:[%s2931_s27 + $0x9c] sm:$0x1] }
  0x19   : > { %v2954_v42 = vrot.slane %v649_v31, 4  ;;  %v404_v43 = vrot.slane %v402_v32, 5  ;;  %1310 = vrot.lane.b32.xlu1 %v2549_v33, %s2879_s28  ;;  %v387_v44 = vrot.slane %v385_v34, 4  ;;  %v904_v45 = vshll.u32 %v2489_v35, 16  ;;  %v236_v61 = vld [vmem:[%s2931_s27] sm:$0xf] }
  0x1a   : > { %v390_v47 = vrot.slane %v388_v39, 5  ;;  %v2958_v48 = vrot.slane %v901_v40, 4  ;;  %v915_v49 = vshrl.u32 %v2490_v36, 16  ;;  %v918_v50 = vshll.u32 %v2490_v36, 16  ;;  %v253_v2 = vld [vmem:[%s2931_s27 + $0x4] sm:$0x1] }
  0x1b   : > { %v405_v52 = vor.u32 %v404_v43, %v401_v38  ;;  %v2961_v53 = vrot.slane %v904_v45, 5  ;;  %v2581_v54 = vcombine.low %v2489_v35, %v2490_v36  ;;  %v523_v56 = vshrl.u32 %v2449_v41, 16  ;;  %v237_v7 = vld [vmem:[%s2931_s27 + $0x8] sm:$0xf]  ;;  %v254_v10 = vld [vmem:[%s2931_s27 + $0xc] sm:$0x1] }
  0x1c   : > { %v391_v57 = vor.u32 %v390_v47, %v387_v44  ;;  %v2964_v58 = vrot.slane %v915_v49, 4  ;;  %v2966_v59 = vrot.slane %v918_v50, 5  ;;  %v526_v60 = vshll.u32 %v2449_v41, 16  ;;  %v2513_v17 = vld [vmem:[%s2931_s27 + $0x98] sm:$0xf] }
  0x1d   : > { %v2969_v62 = vrot.slane %v405_v52, 4  ;;  %1486 = vrot.lane.b32.xlu0 %v2581_v54, %s2879_s28  ;;  %v525_v63 = vrot.slane %v523_v56, 4  ;;  %v532_v0 = vshll.u32 %v2465_v51, 16  ;;  %v537_v1 = vshrl.u32 %v2450_v46, 16  ;;  %v2529_v31 = vld [vmem:[%s2931_s27 + $0x9c] sm:$0x1] }
  0x1e   : > { %v2973_v3 = vrot.slane %v391_v57, 4  ;;  %v528_v4 = vrot.slane %v526_v60, 5  ;;  %v540_v5 = vshll.u32 %v2450_v46, 16  ;;  %v546_v6 = vshll.u32 %v2466_v55, 16  ;;  %v2514_v35 = vld [vmem:[%s2931_s27 + $0xa0] sm:$0xf] }
  0x1f   : > { %v534_v8 = vrot.slane %v532_v0, 5  ;;  %v539_v9 = vrot.slane %v537_v1, 4  ;;  %v265_v11 = vshrl.u32 %v236_v61, 16  ;;  %v268_v12 = vshll.u32 %v236_v61, 16  ;;  %v2530_v41 = vld [vmem:[%s2931_s27 + $0xa4] sm:$0x1] }
  0x20   : > { %v529_v13 = vor.u32 %v528_v4, %v525_v63  ;;  %v542_v14 = vrot.slane %v540_v5, 5  ;;  %v548_v15 = vrot.slane %v546_v6, 5  ;;  %v274_v16 = vshll.u32 %v253_v2, 16  ;;  %v2481_v49 = vld [vmem:[%s2931_s27 + $0x8] sm:$0xf] }
  0x21   : > { %v267_v19 = vrot.slane %v265_v11, 4  ;;  %v270_v20 = vrot.slane %v268_v12, 5  ;;  %v279_v21 = vshrl.u32 %v237_v7, 16  ;;  %v282_v22 = vshll.u32 %v237_v7, 16  ;;  %v2497_v55 = vld [vmem:[%s2931_s27 + $0xc] sm:$0x1] }
  0x22   : > { %v530_v23 = vrot.slane %v529_v13, 4  ;;  %v543_v27 = vor.u32 %v542_v14, %v539_v9  ;;  %v276_v29 = vrot.slane %v274_v16, 5  ;;  %v288_v30 = vshll.u32 %v254_v10, 16  ;;  %v2482_v4 = vld [vmem:[%s2931_s27 + $0x10] sm:$0xf] }
  0x23   : > { %v271_v32 = vor.u32 %v270_v20, %v267_v19  ;;  %v281_v33 = vrot.slane %v279_v21, 4  ;;  %v284_v34 = vrot.slane %v282_v22, 5  ;;  %v1039_v36 = vshrl.u32 %v2513_v17, 16  ;;  %v2498_v6 = vld [vmem:[%s2931_s27 + $0x14] sm:$0x1] }
  0x24   : > { %v535_v38 = vsel %vm2980_vm2, %v530_v23, %v534_v8  ;;  %v544_v39 = vrot.slane %v543_v27, 4  ;;  %v290_v40 = vrot.slane %v288_v30, 5  ;;  %v1042_v43 = vshll.u32 %v2513_v17, 16  ;;  %v2473_v14 = vld [vmem:[%s2931_s27 + $0xdc] sm:$0x1] }
  0x25   : > { %v272_v44 = vrot.slane %v271_v32, 4  ;;  %v285_v45 = vor.u32 %v284_v34, %v281_v33  ;;  %v1041_v46 = vrot.slane %v1039_v36, 4  ;;  %v1048_v47 = vshll.u32 %v2529_v31, 16  ;;  %v2441_v21 = vld [vmem:[%s2931_s27 + $0x4c] sm:$0x1] }
  0x26   : > { %v549_v50 = vsel %vm2980_vm2, %v544_v39, %v548_v15  ;;  %v1044_v51 = vrot.slane %v1042_v43, 5  ;;  %v1053_v52 = vshrl.u32 %v2514_v35, 16  ;;  %v1056_v54 = vshll.u32 %v2514_v35, 16  ;;  %v2474_v15 = vld [vmem:[%s2931_s27 + $0xe4] sm:$0x1] }
  0x27   : > { %v2569_v56 = vcombine.low %v535_v38, %v549_v50  ;;  %v277_v57 = vsel %vm2980_vm2, %v272_v44, %v276_v29  ;;  %v286_v60 = vrot.slane %v285_v45, 4  ;;  %v1050_v61 = vrot.slane %v1048_v47, 5  ;;  %v2442_v34 = vld [vmem:[%s2931_s27 + $0x54] sm:$0x1]  ;;  %v2538_v50 = vld [vmem:[%s2931_s27 + $0xec] sm:$0x1] }
  0x28   : > { %v1045_v63 = vor.u32 %v1044_v51, %v1041_v46  ;;  %v1055_v0 = vrot.slane %v1053_v52, 4  ;;  %v1058_v1 = vrot.slane %v1056_v54, 5  ;;  %v1062_v2 = vshll.u32 %v2530_v41, 16 }
  0x29   : > { %1418 = vrot.lane.b32.xlu1 %v2569_v56, %s2880_s29  ;;  %v291_v5 = vsel %vm2980_vm2, %v286_v60, %v290_v40  ;;  %v781_v7 = vshrl.u32 %v2481_v49, 16  ;;  %v784_v8 = vshll.u32 %v2481_v49, 16  ;;  %v790_v9 = vshll.u32 %v2497_v55, 16  ;;  %v2537_v40 = vld [vmem:[%s2931_s27 + $0xe4] sm:$0x1] }
  0x2a   : > { %v2553_v10 = vcombine.low %v277_v57, %v291_v5  ;;  %v1046_v11 = vrot.slane %v1045_v63, 4  ;;  %v1059_v12 = vor.u32 %v1058_v1, %v1055_v0  ;;  %v1064_v13 = vrot.slane %v1062_v2, 5  ;;  %v2459_v1 = vld [vmem:[%s2931_s27 + $0xe8] sm:$0xf] }
  0x2b   : > { %v783_v16 = vrot.slane %v781_v7, 4  ;;  %v786_v17 = vrot.slane %v784_v8, 5  ;;  %v792_v19 = vrot.slane %v790_v9, 5  ;;  %v795_v20 = vshrl.u32 %v2482_v4, 16  ;;  %v2506_v9 = vld [vmem:[%s2931_s27 + $0x5c] sm:$0x1] }
  0x2c   : > { %1330 = vrot.lane.b32.xlu0 %v2553_v10, %s2880_s29  ;;  %v1051_v22 = vsel %vm2980_vm2, %v1046_v11, %v1050_v61  ;;  %v1060_v23 = vrot.slane %v1059_v12, 4  ;;  %v798_v27 = vshll.u32 %v2482_v4, 16  ;;  %v804_v29 = vshll.u32 %v2498_v6, 16  ;;  %v2460_v4 = vld [vmem:[%s2931_s27 + $0xf0] sm:$0xf] }
  0x2d   : > { %v787_v30 = vor.u32 %v786_v17, %v783_v16  ;;  %v797_v31 = vrot.slane %v795_v20, 4  ;;  %v652_v32 = vshll.u32 %v2473_v14, 16  ;;  %v666_v33 = vshll.u32 %v2474_v15, 16 }
  0x2e   : > { %v1065_v35 = vsel %vm2980_vm2, %v1060_v23, %v1064_v13  ;;  %v800_v36 = vrot.slane %v798_v27, 5  ;;  %v806_v38 = vrot.slane %v804_v29, 5  ;;  %v394_v39 = vshll.u32 %v2441_v21, 16  ;;  %v2436_v23 = vld [vmem:[%s2931_s27 + $0x60] sm:$0xf] }
  0x2f   : > { %v2601_v41 = vcombine.low %v1051_v22, %v1065_v35  ;;  %v788_v43 = vrot.slane %v787_v30, 4  ;;  %v654_v44 = vrot.slane %v652_v32, 5  ;;  %v668_v45 = vrot.slane %v666_v33, 5  ;;  %v2435_v22 = vld [vmem:[%s2931_s27 + $0x58] sm:$0xf] }
  0x30   : > { %v801_v46 = vor.u32 %v800_v36, %v797_v31  ;;  %v396_v47 = vrot.slane %v394_v39, 5  ;;  %v408_v49 = vshll.u32 %v2442_v34, 16  ;;  %v1165_v51 = vor.u32 %v2942_v25, %v2940_v24  ;;  %v2524_v35 = vld [vmem:[%s2931_s27 + $0xf8] sm:$0xf]  ;;  %v2491_v39 = vld [vmem:[%s2931_s27 + $0x60] sm:$0xf] }
  0x31   : > { %1594 = vrot.lane.b32.xlu1 %v2601_v41, %s2880_s29  ;;  %v793_v52 = vsel %vm2980_vm2, %v788_v43, %v792_v19  ;;  %v655_v54 = vsel %vm2980_vm2, %v2954_v42, %v654_v44  ;;  %v669_v55 = vsel %vm2980_vm2, %v2950_v37, %v668_v45  ;;  %v1168_v56 = vshll.u32 %v2537_v40, 16  ;;  %v2492_v40 = vld [vmem:[%s2931_s27 + $0x68] sm:$0xf] }
  0x32   : > { %v802_v57 = vrot.slane %v801_v46, 4  ;;  %v2573_v60 = vcombine.low %v655_v54, %v669_v55  ;;  %v397_v24 = vsel %vm2980_vm2, %v2973_v3, %v396_v47  ;;  %v410_v25 = vrot.slane %v408_v49, 5  ;;  %v2505_v3 = vld [vmem:[%s2931_s27 + $0x54] sm:$0x1]  ;;  %v2451_v46 = vld [vmem:[%s2931_s27 + $0xa0] sm:$0xf] }
  0x33   : > { %v1166_v61 = vrot.slane %v1165_v51, 4  ;;  %v1170_v63 = vrot.slane %v1168_v56, 5  ;;  %v1179_v0 = vor.u32 %v2946_v28, %v2944_v26  ;;  %v1182_v42 = vshll.u32 %v2538_v50, 16 }
  0x34   : > { %v807_v37 = vsel %vm2980_vm2, %v802_v57, %v806_v38  ;;  %v411_v2 = vsel %vm2980_vm2, %v2969_v62, %v410_v25  ;;  %v671_v5 = vshrl.u32 %v2459_v1, 16  ;;  %v674_v6 = vshll.u32 %v2459_v1, 16 }
  0x35   : > { %v2585_v7 = vcombine.low %v793_v52, %v807_v37  ;;  %1438 = vrot.lane.b32.xlu1 %v2573_v60, %s2881_s30  ;;  %v2557_v8 = vcombine.low %v397_v24, %v411_v2  ;;  %v1171_v26 = vsel %vm2980_vm2, %v1166_v61, %v1170_v63  ;;  %v1180_v28 = vrot.slane %v1179_v0, 4  ;;  %v2452_v52 = vld [vmem:[%s2931_s27 + $0xa8] sm:$0xf]  ;;  %v2467_v60 = vld [vmem:[%s2931_s27 + $0xa4] sm:$0x1] }
  0x36   : > { %v1184_v10 = vrot.slane %v1182_v42, 5  ;;  %v3039_v11 = vrot.slane %v671_v5, 4  ;;  %v3041_v62 = vrot.slane %v674_v6, 5  ;;  %v685_v12 = vshrl.u32 %v2460_v4, 16  ;;  %v2468_v0 = vld [vmem:[%s2931_s27 + $0xac] sm:$0x1] }
  0x37   : > { %1506 = vrot.lane.b32.xlu0 %v2585_v7, %s2880_s29  ;;  %v688_v13 = vshll.u32 %v2460_v4, 16  ;;  %v2566_v14 = vcombine.low %v2459_v1, %v2460_v4  ;;  %v907_v15 = vor.u32 %v2961_v53, %v2958_v48  ;;  %v910_v16 = vshll.u32 %v2505_v3, 16  ;;  %v2523_v53 = vld [vmem:[%s2931_s27 + $0xf0] sm:$0xf] }
  0x38   : > { %v1185_v17 = vsel %vm2980_vm2, %v1180_v28, %v1184_v10  ;;  %v3048_v19 = vrot.slane %v685_v12, 4  ;;  %v921_v20 = vor.u32 %v2966_v59, %v2964_v58  ;;  %v924_v21 = vshll.u32 %v2506_v9, 16  ;;  %v238_v4 = vld [vmem:[%s2931_s27 + $0x10] sm:$0xf]  ;;  %v255_v12 = vld [vmem:[%s2931_s27 + $0x14] sm:$0x1] }
  0x39   : > { %v2605_v27 = vcombine.low %v1171_v26, %v1185_v17  ;;  %v3054_v29 = vrot.slane %v688_v13, 5  ;;  %v908_v30 = vrot.slane %v907_v15, 4  ;;  %v912_v48 = vrot.slane %v910_v16, 5  ;;  %v256_v16 = vld [vmem:[%s2931_s27 + $0x1c] sm:$0x1] }
  0x3a   : > { %v922_v31 = vrot.slane %v921_v20, 4  ;;  %v926_v32 = vrot.slane %v924_v21, 5  ;;  %v413_v33 = vshrl.u32 %v2435_v22, 16  ;;  %v416_v34 = vshll.u32 %v2435_v22, 16 }
  0x3b   : > { %1350 = vrot.lane.b32.xlu0 %v2557_v8, %s2881_s30  ;;  %1614 = vrot.lane.b32.xlu1 %v2605_v27, %s2881_s30  ;;  %v913_v58 = vsel %vm2980_vm2, %v908_v30, %v912_v48  ;;  %v427_v59 = vshrl.u32 %v2436_v23, 16  ;;  %v430_v36 = vshll.u32 %v2436_v23, 16  ;;  %v2550_v38 = vcombine.low %v2435_v22, %v2436_v23  ;;  %v239_v8 = vld [vmem:[%s2931_s27 + $0x18] sm:$0xf]  ;;  %v2515_v27 = vld [vmem:[%s2931_s27 + $0xa8] sm:$0xf] }
  0x3c   : > { %v927_v41 = vsel %vm2980_vm2, %v922_v31, %v926_v32  ;;  %v3066_v43 = vrot.slane %v413_v33, 4  ;;  %v3068_v44 = vrot.slane %v416_v34, 5  ;;  %v1187_v45 = vshrl.u32 %v2523_v53, 16 }
  0x3d   : > { %v2589_v47 = vcombine.low %v913_v58, %v927_v41  ;;  %v3071_v49 = vrot.slane %v427_v59, 4  ;;  %v3073_v50 = vrot.slane %v430_v36, 5  ;;  %v1190_v51 = vshll.u32 %v2523_v53, 16 }
  0x3e   : > { %v3076_v54 = vrot.slane %v1187_v45, 4  ;;  %v1201_v55 = vshrl.u32 %v2524_v35, 16  ;;  %v1204_v56 = vshll.u32 %v2524_v35, 16  ;;  %v2598_v57 = vcombine.low %v2523_v53, %v2524_v35 }
  0x3f   : > { %1400 = vrot.lane.b32.xlu0 %v2566_v14, %s2879_s28  ;;  %1526 = vrot.lane.b32.xlu1 %v2589_v47, %s2881_s30  ;;  %v3081_v24 = vrot.slane %v1190_v51, 5  ;;  %v929_v25 = vshrl.u32 %v2491_v39, 16  ;;  %v932_v61 = vshll.u32 %v2491_v39, 16  ;;  %v943_v63 = vshrl.u32 %v2492_v40, 16  ;;  %v2516_v47 = vld [vmem:[%s2931_s27 + $0xb0] sm:$0xf] }
  0x40   : > { %v3084_v42 = vrot.slane %v1201_v55, 4  ;;  %v3086_v1 = vrot.slane %v1204_v56, 5  ;;  %v946_v37 = vshll.u32 %v2492_v40, 16  ;;  %v2582_v2 = vcombine.low %v2491_v39, %v2492_v40 }
  0x41   : > { %v3089_v5 = vrot.slane %v929_v25, 4  ;;  %v3091_v6 = vrot.slane %v932_v61, 5  ;;  %v3093_v3 = vrot.slane %v943_v63, 4  ;;  %v551_v7 = vshrl.u32 %v2451_v46, 16  ;;  %v2532_v61 = vld [vmem:[%s2931_s27 + $0xb4] sm:$0x1] }
  0x42   : > { %v3096_v26 = vrot.slane %v946_v37, 5  ;;  %v554_v28 = vshll.u32 %v2451_v46, 16  ;;  %v560_v9 = vshll.u32 %v2467_v60, 16  ;;  %v565_v10 = vshrl.u32 %v2452_v52, 16 }
  0x43   : > { %1312 = vrot.lane.b32.xlu0 %v2550_v38, %s2879_s28  ;;  %1576 = vrot.lane.b32.xlu1 %v2598_v57, %s2879_s28  ;;  %v553_v13 = vrot.slane %v551_v7, 4  ;;  %v568_v14 = vshll.u32 %v2452_v52, 16  ;;  %v574_v15 = vshll.u32 %v2468_v0, 16  ;;  %v293_v17 = vshrl.u32 %v238_v4, 16  ;;  %v2531_v38 = vld [vmem:[%s2931_s27 + $0xac] sm:$0x1] }
  0x44   : > { %v556_v20 = vrot.slane %v554_v28, 5  ;;  %v562_v21 = vrot.slane %v560_v9, 5  ;;  %v567_v22 = vrot.slane %v565_v10, 4  ;;  %v296_v23 = vshll.u32 %v238_v4, 16  ;;  %v2483_v0 = vld [vmem:[%s2931_s27 + $0x18] sm:$0xf] }
  0x45   : > { %v570_v30 = vrot.slane %v568_v14, 5  ;;  %v576_v48 = vrot.slane %v574_v15, 5  ;;  %v295_v53 = vrot.slane %v293_v17, 4  ;;  %v302_v31 = vshll.u32 %v255_v12, 16  ;;  %v2484_v17 = vld [vmem:[%s2931_s27 + $0x20] sm:$0xf] }
  0x46   : > { %v557_v32 = vor.u32 %v556_v20, %v553_v13  ;;  %v298_v33 = vrot.slane %v296_v23, 5  ;;  %v307_v34 = vshrl.u32 %v239_v8, 16  ;;  %v310_v35 = vshll.u32 %v239_v8, 16  ;;  %v2499_v8 = vld [vmem:[%s2931_s27 + $0x1c] sm:$0x1] }
  0x47   : > { %1488 = vrot.lane.b32.xlu0 %v2582_v2, %s2879_s28  ;;  %v571_v58 = vor.u32 %v570_v30, %v567_v22  ;;  %v304_v59 = vrot.slane %v302_v31, 5  ;;  %v316_v36 = vshll.u32 %v256_v16, 16  ;;  %v1067_v39 = vshrl.u32 %v2515_v27, 16 }
  0x48   : > { %v558_v40 = vrot.slane %v557_v32, 4  ;;  %v299_v41 = vor.u32 %v298_v33, %v295_v53  ;;  %v309_v45 = vrot.slane %v307_v34, 4  ;;  %v312_v46 = vrot.slane %v310_v35, 5  ;;  %v2475_v32 = vld [vmem:[%s2931_s27 + $0xec] sm:$0x1] }
  0x49   : > { %v572_v51 = vrot.slane %v571_v58, 4  ;;  %v318_v52 = vrot.slane %v316_v36, 5  ;;  %v1069_v55 = vrot.slane %v1067_v39, 4  ;;  %v1070_v56 = vshll.u32 %v2515_v27, 16 }
  0x4a   : > { %v563_v57 = vsel %vm2980_vm2, %v558_v40, %v562_v21  ;;  %v300_v60 = vrot.slane %v299_v41, 4  ;;  %v313_v25 = vor.u32 %v312_v46, %v309_v45  ;;  %v1076_v63 = vshll.u32 %v2531_v38, 16  ;;  %v2500_v21 = vld [vmem:[%s2931_s27 + $0x24] sm:$0x1]  ;;  %v2476_v45 = vld [vmem:[%s2931_s27 + $0xf4] sm:$0x1] }
  0x4b   : > { %v577_v37 = vsel %vm2980_vm2, %v572_v51, %v576_v48  ;;  %v1072_v2 = vrot.slane %v1070_v56, 5  ;;  %v1081_v4 = vshrl.u32 %v2516_v47, 16  ;;  %v1084_v7 = vshll.u32 %v2516_v47, 16 }
  0x4c   : > { %v2570_v28 = vcombine.low %v563_v57, %v577_v37  ;;  %v305_v9 = vsel %vm2980_vm2, %v300_v60, %v304_v59  ;;  %v314_v10 = vrot.slane %v313_v25, 4  ;;  %v1078_v12 = vrot.slane %v1076_v63, 5  ;;  %v2443_v57 = vld [vmem:[%s2931_s27 + $0x5c] sm:$0x1] }
  0x4d   : > { %v1073_v13 = vor.u32 %v1072_v2, %v1069_v55  ;;  %v1083_v14 = vrot.slane %v1081_v4, 4  ;;  %v1086_v15 = vrot.slane %v1084_v7, 5  ;;  %v1090_v16 = vshll.u32 %v2532_v61, 16  ;;  %v2539_v4 = vld [vmem:[%s2931_s27 + $0xf4] sm:$0x1] }
  0x4e   : > { %1420 = vrot.lane.b32.xlu1 %v2570_v28, %s2880_s29  ;;  %v319_v20 = vsel %vm2980_vm2, %v314_v10, %v318_v52  ;;  %v809_v22 = vshrl.u32 %v2483_v0, 16  ;;  %v812_v23 = vshll.u32 %v2483_v0, 16  ;;  %v818_v27 = vshll.u32 %v2499_v8, 16  ;;  %v2444_v0 = vld [vmem:[%s2931_s27 + $0x64] sm:$0x1] }
  0x4f   : > { %v2554_v30 = vcombine.low %v305_v9, %v319_v20  ;;  %v1074_v48 = vrot.slane %v1073_v13, 4  ;;  %v1087_v53 = vor.u32 %v1086_v15, %v1083_v14  ;;  %v1092_v31 = vrot.slane %v1090_v16, 5  ;;  %v2540_v13 = vld [vmem:[%s2931_s27 + $0xfc] sm:$0x1] }
  0x50   : > { %v811_v33 = vrot.slane %v809_v22, 4  ;;  %v814_v34 = vrot.slane %v812_v23, 5  ;;  %v820_v35 = vrot.slane %v818_v27, 5  ;;  %v823_v58 = vshrl.u32 %v2484_v17, 16  ;;  %v2461_v27 = vld [vmem:[%s2931_s27 + $0xf8] sm:$0xf] }
  0x51   : > { %1332 = vrot.lane.b32.xlu0 %v2554_v30, %s2880_s29  ;;  %v1079_v59 = vsel %vm2980_vm2, %v1074_v48, %v1078_v12  ;;  %v1088_v36 = vrot.slane %v1087_v53, 4  ;;  %v826_v38 = vshll.u32 %v2484_v17, 16  ;;  %v832_v39 = vshll.u32 %v2500_v21, 16 }
  0x52   : > { %v815_v40 = vor.u32 %v814_v34, %v811_v33  ;;  %v825_v41 = vrot.slane %v823_v58, 4  ;;  %v677_v46 = vor.u32 %v3041_v62, %v3039_v11  ;;  %v680_v47 = vshll.u32 %v2475_v32, 16  ;;  %v2507_v33 = vld [vmem:[%s2931_s27 + $0x64] sm:$0x1] }
  0x53   : > { %v1093_v51 = vsel %vm2980_vm2, %v1088_v36, %v1092_v31  ;;  %v828_v52 = vrot.slane %v826_v38, 5  ;;  %v834_v55 = vrot.slane %v832_v39, 5  ;;  %v691_v56 = vor.u32 %v3054_v29, %v3048_v19  ;;  %v2508_v36 = vld [vmem:[%s2931_s27 + $0x6c] sm:$0x1]  ;;  %v3165_v38 = vld [vmem:[%s2931_s27 + $0x68] sm:$0xf] }
  0x54   : > { %v2602_v60 = vcombine.low %v1079_v59, %v1093_v51  ;;  %v816_v25 = vrot.slane %v815_v40, 4  ;;  %v678_v61 = vrot.slane %v677_v46, 4  ;;  %v682_v63 = vrot.slane %v680_v47, 5  ;;  %v2744_v46 = vld [vmem:[%s3936_s1 + $0x100] ss:$8 sps:$4 sm:$0xff]  }
  0x55   : > { %v829_v37 = vor.u32 %v828_v52, %v825_v41  ;;  %v692_v2 = vrot.slane %v691_v56, 4  ;;  %v694_v11 = vshll.u32 %v2476_v45, 16  ;;  %v419_v62 = vor.u32 %v3068_v44, %v3066_v43  ;;  %v2438_v56 = vld [vmem:[%s2931_s27 + $0x70] sm:$0xf]  ;;  %2147 = vmatpush1.bf16.msra.mxu0 %v2744_v46 }
  0x56   : > { %1596 = vrot.lane.b32.xlu1 %v2602_v60, %s2880_s29  ;;  %v821_v7 = vsel %vm2980_vm2, %v816_v25, %v820_v35  ;;  %v683_v19 = vsel %vm2980_vm2, %v678_v61, %v682_v63  ;;  %v422_v29 = vshll.u32 %v2443_v57, 16  ;;  %v433_v8 = vor.u32 %v3073_v50, %v3071_v49  ;;  %v2745_v57 = vld [vmem:[%s3936_s1 + $0x24] ss:$8 sps:$4 sm:$0xff]   ;;  %v3191_v61 = vld [vmem:[%s2931_s27 + $0x100] sm:$0xf] }
  0x57   : > { %v830_v28 = vrot.slane %v829_v37, 4  ;;  %v696_v9 = vrot.slane %v694_v11, 5  ;;  %v420_v10 = vrot.slane %v419_v62, 4  ;;  %v436_v12 = vshll.u32 %v2444_v0, 16  ;;  %v3194_v63 = vld [vmem:[%s2931_s27 + $0x108] sm:$0xf]  ;;  %2077 = vmatprep.subr.bf16.mxu1 %v2745_v57 }
  0x58   : > { %v424_v43 = vrot.slane %v422_v29, 5  ;;  %v434_v44 = vrot.slane %v433_v8, 4  ;;  %v1193_v14 = vor.u32 %v3081_v24, %v3076_v54  ;;  %v1196_v15 = vshll.u32 %v2539_v4, 16  ;;  %v2462_v54 = vld [vmem:[%s2931_s27 + $0x100] sm:$0xf] }
  0x59   : > { %v835_v16 = vsel %vm2980_vm2, %v830_v28, %v834_v55  ;;  %v697_v17 = vsel %vm2980_vm2, %v692_v2, %v696_v9  ;;  %v438_v49 = vrot.slane %v436_v12, 5  ;;  %v1207_v50 = vor.u32 %v3086_v1, %v3084_v42  ;;  %v2748_v2 = vld [vmem:[%s3936_s1 + $0x20] ss:$8 sps:$4 sm:$0xff]   ;;  %v2494_v29 = vld [vmem:[%s2931_s27 + $0x78] sm:$0xf] }
  0x5a   : > { %v2586_v20 = vcombine.low %v821_v7, %v835_v16  ;;  %v2574_v21 = vcombine.low %v683_v19, %v697_v17  ;;  %v425_v22 = vsel %vm2980_vm2, %v420_v10, %v424_v43  ;;  %v1194_v23 = vrot.slane %v1193_v14, 4  ;;  %v2493_v19 = vld [vmem:[%s2931_s27 + $0x70] sm:$0xf]  ;;  %v2749_v8 = vld [vmem:[%s3936_s1 + $0x114] ss:$8 sps:$4 sm:$0xff]   ;;  %2078 = vmatpush1.bf16.msra.mxu1 %v2748_v2 }
  0x5b   : > { %v439_v24 = vsel %vm2980_vm2, %v434_v44, %v438_v49  ;;  %v1198_v30 = vrot.slane %v1196_v15, 5  ;;  %v1208_v48 = vrot.slane %v1207_v50, 4  ;;  %v1210_v53 = vshll.u32 %v2540_v13, 16  ;;  %v2453_v43 = vld [vmem:[%s2931_s27 + $0xb0] sm:$0xf]  ;;  %2148 = vmatprep.subr.bf16.mxu0 %v2749_v8 }
  0x5c   : > { %1508 = vrot.lane.b32.xlu0 %v2586_v20, %s2880_s29  ;;  %1440 = vrot.lane.b32.xlu1 %v2574_v21, %s2881_s30  ;;  %v2558_v42 = vcombine.low %v425_v22, %v439_v24  ;;  %v699_v1 = vshrl.u32 %v2461_v27, 16  ;;  %v702_v31 = vshll.u32 %v2461_v27, 16  ;;  %v713_v32 = vshrl.u32 %v2462_v54, 16  ;;  %v2454_v16 = vld [vmem:[%s2931_s27 + $0xb8] sm:$0xf] }
  0x5d   : > { %v1199_v34 = vsel %vm2980_vm2, %v1194_v23, %v1198_v30  ;;  %v1212_v35 = vrot.slane %v1210_v53, 5  ;;  %v716_v58 = vshll.u32 %v2462_v54, 16  ;;  %v2567_v59 = vcombine.low %v2461_v27, %v2462_v54  ;;  %v2469_v21 = vld [vmem:[%s2931_s27 + $0xb4] sm:$0x1]  ;;  %v2470_v22 = vld [vmem:[%s2931_s27 + $0xbc] sm:$0x1] }
  0x5e   : > { %v3167_v39 = vrot.slane %v699_v1, 4  ;;  %v3169_v40 = vrot.slane %v702_v31, 5  ;;  %v3171_v41 = vrot.slane %v713_v32, 4  ;;  %v935_v45 = vor.u32 %v3091_v6, %v3089_v5  ;;  %v240_v30 = vld [vmem:[%s2931_s27 + $0x20] sm:$0xf] }
  0x5f   : > { %v1213_v47 = vsel %vm2980_vm2, %v1208_v48, %v1212_v35  ;;  %v3180_v51 = vrot.slane %v716_v58, 5  ;;  %v938_v52 = vshll.u32 %v2507_v33, 16  ;;  %v949_v55 = vor.u32 %v3096_v26, %v3093_v3  ;;  %v2751_v48 = vld [vmem:[%s3936_s1 + $0x110] ss:$8 sps:$4 sm:$0xff]   ;;  %v2752_v32 = vld [vmem:[%s3936_s1 + $0x34] ss:$8 sps:$4 sm:$0xff]  }
  0x60   : > { %1352 = vrot.lane.b32.xlu0 %v2558_v42, %s2881_s30  ;;  %v2606_v5 = vcombine.low %v1199_v34, %v1213_v47  ;;  %v936_v6 = vrot.slane %v935_v45, 4  ;;  %v952_v60 = vshll.u32 %v2508_v36, 16  ;;  %v441_v25 = vshrl.u32 %v3165_v38, 16  ;;  %2149 = vmatpush1.bf16.msra.mxu0 %v2751_v48  ;;  %v257_v47 = vld [vmem:[%s2931_s27 + $0x24] sm:$0x1] }
  0x61   : > { %v940_v3 = vrot.slane %v938_v52, 5  ;;  %v950_v26 = vrot.slane %v949_v55, 4  ;;  %v444_v0 = vshll.u32 %v3165_v38, 16  ;;  %v455_v37 = vshrl.u32 %v2438_v56, 16  ;;  %2079 = vmatprep.subr.bf16.mxu1 %v2752_v32  ;;  %v2754_v2 = vld [vmem:[%s3936_s1 + $0x30] ss:$8 sps:$4 sm:$0xff]  }
  0x62   : > { %1616 = vrot.lane.b32.xlu1 %v2606_v5, %s2881_s30  ;;  %v954_v11 = vrot.slane %v952_v60, 5  ;;  %v3201_v62 = vrot.slane %v441_v25, 4  ;;  %v458_v4 = vshll.u32 %v2438_v56, 16  ;;  %v2551_v7 = vcombine.low %v3165_v38, %v2438_v56  ;;  %v258_v5 = vld [vmem:[%s2931_s27 + $0x2c] sm:$0x1]  ;;  %2080 = vmatpush1.bf16.msra.mxu1 %v2754_v2 }
  0x63   : > { %v941_v28 = vsel %vm2980_vm2, %v936_v6, %v940_v3  ;;  %v3211_v9 = vrot.slane %v444_v0, 5  ;;  %v3213_v10 = vrot.slane %v455_v37, 4  ;;  %v1215_v12 = vshrl.u32 %v3191_v61, 16  ;;  %v2755_v8 = vld [vmem:[%s3936_s1 + $0x124] ss:$8 sps:$4 sm:$0xff]  }
  0x64   : > { %1402 = vrot.lane.b32.xlu0 %v2567_v59, %s2879_s28  ;;  %v955_v44 = vsel %vm2980_vm2, %v950_v26, %v954_v11  ;;  %v3220_v13 = vrot.slane %v458_v4, 5  ;;  %v1218_v14 = vshll.u32 %v3191_v61, 16  ;;  %v1229_v15 = vshrl.u32 %v3194_v63, 16  ;;  %v241_v59 = vld [vmem:[%s2931_s27 + $0x28] sm:$0xf]  ;;  %2150 = vmatprep.subr.bf16.mxu0 %v2755_v8 }
  0x65   : > { %v2590_v17 = vcombine.low %v941_v28, %v955_v44  ;;  %v3225_v49 = vrot.slane %v1215_v12, 4  ;;  %v1232_v50 = vshll.u32 %v3194_v63, 16  ;;  %v2599_v20 = vcombine.low %v3191_v61, %v3194_v63  ;;  %v2517_v63 = vld [vmem:[%s2931_s27 + $0xb8] sm:$0xf]  ;;  %v2501_v32 = vld [vmem:[%s2931_s27 + $0x2c] sm:$0x1] }
  0x66   : > { %v3232_v23 = vrot.slane %v1218_v14, 5  ;;  %v3234_v27 = vrot.slane %v1229_v15, 4  ;;  %v957_v54 = vshrl.u32 %v2493_v19, 16  ;;  %v960_v24 = vshll.u32 %v2493_v19, 16  ;;  %v2533_v14 = vld [vmem:[%s2931_s27 + $0xbc] sm:$0x1] }
  0x67   : > { %1528 = vrot.lane.b32.xlu1 %v2590_v17, %s2881_s30  ;;  %v3241_v53 = vrot.slane %v1232_v50, 5  ;;  %v971_v42 = vshrl.u32 %v2494_v29, 16  ;;  %v974_v1 = vshll.u32 %v2494_v29, 16  ;;  %v2583_v31 = vcombine.low %v2493_v19, %v2494_v29  ;;  %v2518_v29 = vld [vmem:[%s2931_s27 + $0xc0] sm:$0xf] }
  0x68   : > { %1314 = vrot.lane.b32.xlu0 %v2551_v7, %s2879_s28  ;;  %v3247_v33 = vrot.slane %v957_v54, 4  ;;  %v3249_v34 = vrot.slane %v960_v24, 5  ;;  %v579_v35 = vshrl.u32 %v2453_v43, 16  ;;  %v582_v58 = vshll.u32 %v2453_v43, 16  ;;  %v2534_v50 = vld [vmem:[%s2931_s27 + $0xc4] sm:$0x1] }
  0x69   : > { %v3252_v36 = vrot.slane %v971_v42, 4  ;;  %v3254_v38 = vrot.slane %v974_v1, 5  ;;  %v588_v45 = vshll.u32 %v2469_v21, 16  ;;  %v593_v46 = vshrl.u32 %v2454_v16, 16 }
  0x6a   : > { %v581_v52 = vrot.slane %v579_v35, 4  ;;  %v584_v55 = vrot.slane %v582_v58, 5  ;;  %v596_v56 = vshll.u32 %v2454_v16, 16  ;;  %v602_v57 = vshll.u32 %v2470_v22, 16 }
  0x6b   : > { %1578 = vrot.lane.b32.xlu1 %v2599_v20, %s2879_s28  ;;  %v590_v6 = vrot.slane %v588_v45, 5  ;;  %v595_v60 = vrot.slane %v593_v46, 4  ;;  %v321_v25 = vshrl.u32 %v240_v30, 16  ;;  %v324_v61 = vshll.u32 %v240_v30, 16  ;;  %v3273_v30 = vld [vmem:[%s2931_s27 + $0x28] sm:$0xf] }
  0x6c   : > { %1490 = vrot.lane.b32.xlu0 %v2583_v31, %s2879_s28  ;;  %v585_v3 = vor.u32 %v584_v55, %v581_v52  ;;  %v598_v26 = vrot.slane %v596_v56, 5  ;;  %v604_v0 = vrot.slane %v602_v57, 5  ;;  %v330_v37 = vshll.u32 %v257_v47, 16  ;;  %v2757_v46 = vld [vmem:[%s3936_s1 + $0x120] ss:$8 sps:$4 sm:$0xff]  }
  0x6d   : > { %v323_v11 = vrot.slane %v321_v25, 4  ;;  %v326_v4 = vrot.slane %v324_v61, 5  ;;  %v335_v7 = vshrl.u32 %v241_v59, 16  ;;  %v338_v19 = vshll.u32 %v241_v59, 16  ;;  %v2758_v57 = vld [vmem:[%s3936_s1 + $0x44] ss:$8 sps:$4 sm:$0xff]   ;;  %2151 = vmatpush1.bf16.msra.mxu0 %v2757_v46 }
  0x6e   : > { %v586_v28 = vrot.slane %v585_v3, 4  ;;  %v599_v12 = vor.u32 %v598_v26, %v595_v60  ;;  %v332_v43 = vrot.slane %v330_v37, 5  ;;  %v344_v44 = vshll.u32 %v258_v5, 16  ;;  %v3287_v61 = vld [vmem:[%s2931_s27 + $0x30] sm:$0xf]  ;;  %2081 = vmatprep.subr.bf16.mxu1 %v2758_v57 }
  0x6f   : > { %v327_v15 = vor.u32 %v326_v4, %v323_v11  ;;  %v337_v16 = vrot.slane %v335_v7, 4  ;;  %v340_v17 = vrot.slane %v338_v19, 5  ;;  %v1095_v20 = vshrl.u32 %v2517_v63, 16  ;;  %v2502_v3 = vld [vmem:[%s2931_s27 + $0x34] sm:$0x1] }
  0x70   : > { %v591_v21 = vsel %vm2980_vm2, %v586_v28, %v590_v6  ;;  %v600_v22 = vrot.slane %v599_v12, 4  ;;  %v346_v54 = vrot.slane %v344_v44, 5  ;;  %v1098_v24 = vshll.u32 %v2517_v63, 16  ;;  %v2477_v19 = vld [vmem:[%s2931_s27 + $0xfc] sm:$0x1] }
  0x71   : > { %v328_v48 = vrot.slane %v327_v15, 4  ;;  %v341_v42 = vor.u32 %v340_v17, %v337_v16  ;;  %v1097_v1 = vrot.slane %v1095_v20, 4  ;;  %v1104_v31 = vshll.u32 %v2533_v14, 16  ;;  %v2761_v44 = vld [vmem:[%s3936_s1 + $0x134] ss:$8 sps:$4 sm:$0xff]  }
  0x72   : > { %v605_v35 = vsel %vm2980_vm2, %v600_v22, %v604_v0  ;;  %v1100_v58 = vrot.slane %v1098_v24, 5  ;;  %v1109_v59 = vshrl.u32 %v2518_v29, 16  ;;  %v1112_v45 = vshll.u32 %v2518_v29, 16  ;;  %v2760_v29 = vld [vmem:[%s3936_s1 + $0x40] ss:$8 sps:$4 sm:$0xff]   ;;  %2152 = vmatprep.subr.bf16.mxu0 %v2761_v44 }
  0x73   : > { %v2571_v47 = vcombine.low %v591_v21, %v605_v35  ;;  %v333_v52 = vsel %vm2980_vm2, %v328_v48, %v332_v43  ;;  %v342_v55 = vrot.slane %v341_v42, 4  ;;  %v1106_v56 = vrot.slane %v1104_v31, 5  ;;  %2082 = vmatpush1.bf16.msra.mxu1 %v2760_v29  ;;  %v2445_v24 = vld [vmem:[%s2931_s27 + $0x6c] sm:$0x1]  ;;  %v2763_v48 = vld [vmem:[%s3936_s1 + $0x130] ss:$8 sps:$4 sm:$0xff]  }
  0x74   : > { %v1101_v5 = vor.u32 %v1100_v58, %v1097_v1  ;;  %v1111_v6 = vrot.slane %v1109_v59, 4  ;;  %v1114_v60 = vrot.slane %v1112_v45, 5  ;;  %v1118_v25 = vshll.u32 %v2534_v50, 16  ;;  %v2478_v50 = vld [vmem:[%s2931_s27 + $0x104] sm:$0x1]  ;;  %2153 = vmatpush1.bf16.msra.mxu0 %v2763_v48 }
  0x75   : > { %1422 = vrot.lane.b32.xlu1 %v2571_v47, %s2880_s29  ;;  %v347_v63 = vsel %vm2980_vm2, %v342_v55, %v346_v54  ;;  %v837_v26 = vshrl.u32 %v3273_v30, 16  ;;  %v840_v0 = vshll.u32 %v3273_v30, 16  ;;  %v846_v37 = vshll.u32 %v2501_v32, 16  ;;  %v2446_v35 = vld [vmem:[%s2931_s27 + $0x74] sm:$0x1] }
  0x76   : > { %v2555_v2 = vcombine.low %v333_v52, %v347_v63  ;;  %v1102_v11 = vrot.slane %v1101_v5, 4  ;;  %v1115_v4 = vor.u32 %v1114_v60, %v1111_v6  ;;  %v1120_v7 = vrot.slane %v1118_v25, 5  ;;  %v2541_v46 = vld [vmem:[%s2931_s27 + $0x104] sm:$0x1]  ;;  %v2542_v6 = vld [vmem:[%s2931_s27 + $0x10c] sm:$0x1] }
  0x77   : > { %v839_v8 = vrot.slane %v837_v26, 4  ;;  %v842_v28 = vrot.slane %v840_v0, 5  ;;  %v3299_v12 = vrot.slane %v846_v37, 5  ;;  %v851_v43 = vshrl.u32 %v3287_v61, 16  ;;  %v2769_v26 = vld [vmem:[%s3936_s1 + $0x140] ss:$8 sps:$4 sm:$0xff]  }
  0x78   : > { %1334 = vrot.lane.b32.xlu0 %v2555_v2, %s2880_s29  ;;  %v1107_v14 = vsel %vm2980_vm2, %v1102_v11, %v1106_v56  ;;  %v1116_v15 = vrot.slane %v1115_v4, 4  ;;  %v854_v16 = vshll.u32 %v3287_v61, 16  ;;  %v860_v17 = vshll.u32 %v2502_v3, 16  ;;  %v3368_v44 = vld [vmem:[%s2931_s27 + $0x110] sm:$0xf] }
  0x79   : > { %v843_v20 = vor.u32 %v842_v28, %v839_v8  ;;  %v853_v21 = vrot.slane %v851_v43, 4  ;;  %v705_v22 = vor.u32 %v3169_v40, %v3167_v39  ;;  %v708_v54 = vshll.u32 %v2477_v19, 16  ;;  %v2764_v39 = vld [vmem:[%s3936_s1 + $0x54] ss:$8 sps:$4 sm:$0xff]  }
  0x7a   : > { %v1121_v42 = vsel %vm2980_vm2, %v1116_v15, %v1120_v7  ;;  %v856_v1 = vrot.slane %v854_v16, 5  ;;  %v862_v31 = vrot.slane %v860_v17, 5  ;;  %v719_v32 = vor.u32 %v3180_v51, %v3171_v41  ;;  %2083 = vmatprep.subr.bf16.mxu1 %v2764_v39  ;;  %v2766_v41 = vld [vmem:[%s3936_s1 + $0x50] ss:$8 sps:$4 sm:$0xff]   ;;  %v2767_v51 = vld [vmem:[%s3936_s1 + $0x144] ss:$8 sps:$4 sm:$0xff]  }
  0x7b   : > { %v2603_v40 = vcombine.low %v1107_v14, %v1121_v42  ;;  %v844_v58 = vrot.slane %v843_v20, 4  ;;  %v706_v59 = vrot.slane %v705_v22, 4  ;;  %v710_v45 = vrot.slane %v708_v54, 5  ;;  %2084 = vmatpush1.bf16.msra.mxu1 %v2766_v41  ;;  %2154 = vmatprep.subr.bf16.mxu0 %v2767_v51  ;;  %v2509_v14 = vld [vmem:[%s2931_s27 + $0x74] sm:$0x1] }
  0x7c   : > { %v857_v47 = vor.u32 %v856_v1, %v853_v21  ;;  %v720_v52 = vrot.slane %v719_v32, 4  ;;  %v722_v55 = vshll.u32 %v2478_v50, 16  ;;  %v447_v56 = vor.u32 %v3211_v9, %v3201_v62  ;;  %2155 = vmatpush1.bf16.msra.mxu0 %v2769_v26  ;;  %v2510_v17 = vld [vmem:[%s2931_s27 + $0x7c] sm:$0x1]  ;;  %v2775_v50 = vld [vmem:[%s3936_s1 + $0x150] ss:$8 sps:$4 sm:$0xff]  }
  0x7d   : > { %1598 = vrot.lane.b32.xlu1 %v2603_v40, %s2880_s29  ;;  %v849_v57 = vsel %vm2980_vm2, %v844_v58, %v3299_v12  ;;  %v711_v5 = vsel %vm2980_vm2, %v706_v59, %v710_v45  ;;  %v450_v62 = vshll.u32 %v2445_v24, 16  ;;  %v461_v9 = vor.u32 %v3220_v13, %v3213_v10  ;;  %v3348_v10 = vld [vmem:[%s2931_s27 + $0x108] sm:$0xf]  ;;  %v2770_v13 = vld [vmem:[%s3936_s1 + $0x64] ss:$8 sps:$4 sm:$0xff]  }
  0x7e   : > { %v858_v60 = vrot.slane %v857_v47, 4  ;;  %v724_v25 = vrot.slane %v722_v55, 5  ;;  %v448_v63 = vrot.slane %v447_v56, 4  ;;  %v464_v3 = vshll.u32 %v2446_v35, 16  ;;  %2085 = vmatprep.subr.bf16.mxu1 %v2770_v13  ;;  %v2776_v24 = vld [vmem:[%s3936_s1 + $0x74] ss:$8 sps:$4 sm:$0xff]  }
  0x7f   : > { %v452_v0 = vrot.slane %v450_v62, 5  ;;  %v462_v37 = vrot.slane %v461_v9, 4  ;;  %v1221_v2 = vor.u32 %v3232_v23, %v3225_v49  ;;  %v1224_v11 = vshll.u32 %v2541_v46, 16  ;;  %v2772_v49 = vld [vmem:[%s3936_s1 + $0x60] ss:$8 sps:$4 sm:$0xff]  }
  0x80   : > { %v863_v4 = vsel %vm2980_vm2, %v858_v60, %v862_v31  ;;  %v725_v7 = vsel %vm2980_vm2, %v720_v52, %v724_v25  ;;  %v466_v19 = vrot.slane %v464_v3, 5  ;;  %v1235_v29 = vor.u32 %v3241_v53, %v3234_v27  ;;  %v2773_v23 = vld [vmem:[%s3936_s1 + $0x154] ss:$8 sps:$4 sm:$0xff]   ;;  %2086 = vmatpush1.bf16.msra.mxu1 %v2772_v49  ;;  %v3391_v32 = vld [vmem:[%s2931_s27 + $0x78] sm:$0xf] }
  0x81   : > { %v2587_v8 = vcombine.low %v849_v57, %v863_v4  ;;  %v2575_v28 = vcombine.low %v711_v5, %v725_v7  ;;  %v453_v12 = vsel %vm2980_vm2, %v448_v63, %v452_v0  ;;  %v1222_v43 = vrot.slane %v1221_v2, 4  ;;  %2156 = vmatprep.subr.bf16.mxu0 %v2773_v23  ;;  %v3394_v35 = vld [vmem:[%s2931_s27 + $0x80] sm:$0xf]  ;;  %v2778_v39 = vld [vmem:[%s3936_s1 + $0x70] ss:$8 sps:$4 sm:$0xff]   ;;  %2087 = vmatprep.subr.bf16.mxu1 %v2776_v24 }
  0x82   : > { %v467_v27 = vsel %vm2980_vm2, %v462_v37, %v466_v19  ;;  %v1226_v53 = vrot.slane %v1224_v11, 5  ;;  %v1236_v15 = vrot.slane %v1235_v29, 4  ;;  %v1238_v16 = vshll.u32 %v2542_v6, 16  ;;  %2157 = vmatpush1.bf16.msra.mxu0 %v2775_v50  ;;  %v2779_v40 = vld [vmem:[%s3936_s1 + $0x164] ss:$8 sps:$4 sm:$0xff]  }
  0x83   : > { %1510 = vrot.lane.b32.xlu0 %v2587_v8, %s2880_s29  ;;  %1442 = vrot.lane.b32.xlu1 %v2575_v28, %s2881_s30  ;;  %v2559_v20 = vcombine.low %v453_v12, %v467_v27  ;;  %v727_v21 = vshrl.u32 %v3348_v10, 16  ;;  %v730_v22 = vshll.u32 %v3348_v10, 16  ;;  %v741_v54 = vshrl.u32 %v3368_v44, 16  ;;  %v2781_v47 = vld [vmem:[%s3936_s1 + $0x160] ss:$8 sps:$4 sm:$0xff]  }
  0x84   : > { %v1227_v48 = vsel %vm2980_vm2, %v1222_v43, %v1226_v53  ;;  %v1240_v42 = vrot.slane %v1238_v16, 5  ;;  %v744_v1 = vshll.u32 %v3368_v44, 16  ;;  %v2568_v31 = vcombine.low %v3348_v10, %v3368_v44  ;;  %2088 = vmatpush1.bf16.msra.mxu1 %v2778_v39  ;;  %2158 = vmatprep.subr.bf16.mxu0 %v2779_v40  ;;  %v3428_v9 = vld [vmem:[%s2931_s27 + $0x110] sm:$0xf]  ;;  %v3448_v11 = vld [vmem:[%s2931_s27 + $0x80] sm:$0xf] }
  0x85   : > { %v3402_v58 = vrot.slane %v727_v21, 4  ;;  %v3404_v59 = vrot.slane %v730_v22, 5  ;;  %v3406_v45 = vrot.slane %v741_v54, 4  ;;  %v963_v46 = vor.u32 %v3249_v34, %v3247_v33  ;;  %v2782_v33 = vld [vmem:[%s3936_s1 + $0x84] ss:$8 sps:$4 sm:$0xff]  }
  0x86   : > { %v1241_v52 = vsel %vm2980_vm2, %v1236_v15, %v1240_v42  ;;  %v3415_v55 = vrot.slane %v744_v1, 5  ;;  %v966_v56 = vshll.u32 %v2509_v14, 16  ;;  %v977_v41 = vor.u32 %v3254_v38, %v3252_v36  ;;  %v2784_v34 = vld [vmem:[%s3936_s1 + $0x80] ss:$8 sps:$4 sm:$0xff]   ;;  %v3431_v36 = vld [vmem:[%s2931_s27 + $0x118] sm:$0xf]  ;;  %2159 = vmatpush1.bf16.msra.mxu0 %v2781_v47  ;;  %2089 = vmatprep.subr.bf16.mxu1 %v2782_v33 }
  0x87   : > { %1354 = vrot.lane.b32.xlu0 %v2559_v20, %s2881_s30  ;;  %v2607_v51 = vcombine.low %v1227_v48, %v1241_v52  ;;  %v964_v57 = vrot.slane %v963_v46, 4  ;;  %v980_v5 = vshll.u32 %v2510_v17, 16  ;;  %v469_v62 = vshrl.u32 %v3391_v32, 16  ;;  %v2785_v38 = vld [vmem:[%s3936_s1 + $0x174] ss:$8 sps:$4 sm:$0xff]  }
  0x88   : > { %v968_v6 = vrot.slane %v966_v56, 5  ;;  %v978_v60 = vrot.slane %v977_v41, 4  ;;  %v472_v25 = vshll.u32 %v3391_v32, 16  ;;  %v483_v63 = vshrl.u32 %v3394_v35, 16  ;;  %v2787_v3 = vld [vmem:[%s3936_s1 + $0x170] ss:$8 sps:$4 sm:$0xff]   ;;  %2160 = vmatprep.subr.bf16.mxu0 %v2785_v38  ;;  %2090 = vmatpush1.bf16.msra.mxu1 %v2784_v34 }
  0x89   : > { %1618 = vrot.lane.b32.xlu1 %v2607_v51, %s2881_s30  ;;  %v982_v26 = vrot.slane %v980_v5, 5  ;;  %v3442_v0 = vrot.slane %v469_v62, 4  ;;  %v486_v37 = vshll.u32 %v3394_v35, 16  ;;  %v2552_v2 = vcombine.low %v3391_v32, %v3394_v35  ;;  %v3451_v10 = vld [vmem:[%s2931_s27 + $0x88] sm:$0xf] }
  0x8a   : > { %v2788_v13 = vld [vmem:[%s3936_s1 + $0x94] ss:$8 sps:$4 sm:$0xff]   ;;  %v969_v4 = vsel %vm2980_vm2, %v964_v57, %v968_v6  ;;  %v3458_v7 = vrot.slane %v472_v25, 5  ;;  %v3460_v19 = vrot.slane %v483_v63, 4  ;;  %v1243_v29 = vshrl.u32 %v3428_v9, 16  ;;  %2161 = vmatpush1.bf16.msra.mxu0 %v2787_v3  ;;  %v3544_v3 = vpop.permute.xlu0 %1398 }
  0x8b   : > { %v3464_v49 = vld [vmem:[%s2931_s27 + $0xc0] sm:$0xf]  ;;  %v2790_v23 = vld [vmem:[%s3936_s1 + $0x90] ss:$8 sps:$4 sm:$0xff]   ;;  %1404 = vrot.lane.b32.xlu0 %v2568_v31, %s2879_s28  ;;  %v983_v8 = vsel %vm2980_vm2, %v978_v60, %v982_v26  ;;  %v3472_v28 = vrot.slane %v486_v37, 5  ;;  %v1246_v12 = vshll.u32 %v3428_v9, 16  ;;  %2091 = vmatprep.subr.bf16.mxu1 %v2788_v13  ;;  %v2600_v17 = vcombine.low %v3428_v9, %v3431_v36 }
  0x8c   : > { %v1257_v43 = vshrl.u32 %v3431_v36, 16  ;;  %v3477_v44 = vld [vmem:[%s2931_s27 + $0xc8] sm:$0xf]  ;;  %v2471_v14 = vld [vmem:[%s2931_s27 + $0xc4] sm:$0x1]  ;;  %v2591_v53 = vcombine.low %v969_v4, %v983_v8  ;;  %v3483_v15 = vrot.slane %v1243_v29, 4  ;;  %v2584_v39 = vcombine.low %v3448_v11, %v3451_v10  ;;  %2092 = vmatpush1.bf16.msra.mxu1 %v2790_v23 }
  0x8d   : > { %v2791_v27 = vld [vmem:[%s3936_s1 + $0x184] ss:$8 sps:$4 sm:$0xff]   ;;  %v1260_v16 = vshll.u32 %v3431_v36, 16  ;;  %v2793_v20 = vld [vmem:[%s3936_s1 + $0x180] ss:$8 sps:$4 sm:$0xff]   ;;  %v3495_v22 = vrot.slane %v1246_v12, 5 }
  0x8e   : > { %v2472_v50 = vld [vmem:[%s2931_s27 + $0xcc] sm:$0x1]  ;;  %v3497_v54 = vrot.slane %v1257_v43, 4  ;;  %v985_v24 = vshrl.u32 %v3448_v11, 16  ;;  %v988_v48 = vshll.u32 %v3448_v11, 16  ;;  %2162 = vmatprep.subr.bf16.mxu0 %v2791_v27  ;;  %1530 = vrot.lane.b32.xlu1 %v2591_v53, %s2881_s30  ;;  %v999_v32 = vshrl.u32 %v3451_v10, 16 }
  0x8f   : > { %v2794_v21 = vld [vmem:[%s3936_s1 + $0xa4] ss:$8 sps:$4 sm:$0xff]   ;;  %v3502_v42 = vld [vmem:[%s2931_s27 + $0x30] sm:$0xf]  ;;  %v2796_v1 = vld [vmem:[%s3936_s1 + $0xa0] ss:$8 sps:$4 sm:$0xff]   ;;  %1316 = vrot.lane.b32.xlu0 %v2552_v2, %s2879_s28  ;;  %2163 = vmatpush1.bf16.msra.mxu0 %v2793_v20 }
  0x90   : > { %v3508_v31 = vrot.slane %v1260_v16, 5  ;;  %v1002_v35 = vshll.u32 %v3451_v10, 16  ;;  %v259_v40 = vld [vmem:[%s2931_s27 + $0x34] sm:$0x1]  ;;  %v3519_v47 = vrot.slane %v985_v24, 4  ;;  %v3521_v52 = vrot.slane %v988_v48, 5  ;;  %2093 = vmatprep.subr.bf16.mxu1 %v2794_v21 }
  0x91   : > { %v2797_v46 = vld [vmem:[%s3936_s1 + $0x194] ss:$8 sps:$4 sm:$0xff]   ;;  %v607_v56 = vshrl.u32 %v3464_v49, 16  ;;  %v610_v41 = vshll.u32 %v3464_v49, 16  ;;  %v3526_v33 = vld [vmem:[%s2931_s27 + $0x38] sm:$0xf]  ;;  %2094 = vmatpush1.bf16.msra.mxu1 %v2796_v1 }
  0x92   : > { %v2799_v34 = vld [vmem:[%s3936_s1 + $0x190] ss:$8 sps:$4 sm:$0xff]   ;;  %v3531_v51 = vrot.slane %v999_v32, 4  ;;  %v3533_v57 = vrot.slane %v1002_v35, 5  ;;  %v616_v5 = vshll.u32 %v2471_v14, 16  ;;  %v621_v62 = vshrl.u32 %v3477_v44, 16  ;;  %2164 = vmatprep.subr.bf16.mxu0 %v2797_v46  ;;  %1580 = vrot.lane.b32.xlu1 %v2600_v17, %s2879_s28 }
  0x93   : > { %v260_v9 = vld [vmem:[%s2931_s27 + $0x3c] sm:$0x1]  ;;  %v609_v38 = vrot.slane %v607_v56, 4  ;;  %v612_v6 = vrot.slane %v610_v41, 5  ;;  %v624_v60 = vshll.u32 %v3477_v44, 16  ;;  %v630_v25 = vshll.u32 %v2472_v50, 16  ;;  %1492 = vrot.lane.b32.xlu0 %v2584_v39, %s2879_s28  ;;  %2165 = vmatpush1.bf16.msra.mxu0 %v2799_v34 }
  0x94   : > { %v2801_v36 = vld [vmem:[%s3936_s1 + $0xb4] ss:$8 sps:$4 sm:$0xff]   ;;  %v3542_v63 = vld [vmem:[%s2931_s27 + $0xc8] sm:$0xf]  ;;  %v2803_v26 = vld [vmem:[%s3936_s1 + $0xb0] ss:$8 sps:$4 sm:$0xff]  }
  0x95   : > { %v618_v37 = vrot.slane %v616_v5, 5  ;;  %v623_v2 = vrot.slane %v621_v62, 4  ;;  %v349_v11 = vshrl.u32 %v3502_v42, 16  ;;  %v352_v10 = vshll.u32 %v3502_v42, 16  ;;  %v2804_v13 = vld [vmem:[%s3936_s1 + $0x1a4] ss:$8 sps:$4 sm:$0xff]   ;;  %2095 = vmatprep.subr.bf16.mxu1 %v2801_v36  ;;  %v3582_v36 = vpop.permute.xlu0 %1574 }
  0x96   : > { %v613_v4 = vor.u32 %v612_v6, %v609_v38  ;;  %v626_v29 = vrot.slane %v624_v60, 5  ;;  %v632_v23 = vrot.slane %v630_v25, 5  ;;  %v358_v8 = vshll.u32 %v259_v40, 16  ;;  %v2535_v12 = vld [vmem:[%s2931_s27 + $0xcc] sm:$0x1]  ;;  %2166 = vmatprep.subr.bf16.mxu0 %v2804_v13  ;;  %2096 = vmatpush1.bf16.msra.mxu1 %v2803_v26  ;;  %v3584_v38 = vpop.permute.xlu1 %1310 }
  0x97   : > { %v2806_v43 = vld [vmem:[%s3936_s1 + $0x1a0] ss:$8 sps:$4 sm:$0xff]   ;;  %v351_v14 = vrot.slane %v349_v11, 4  ;;  %v354_v27 = vrot.slane %v352_v10, 5  ;;  %v363_v53 = vshrl.u32 %v3526_v33, 16  ;;  %v366_v16 = vshll.u32 %v3526_v33, 16 }
  0x98   : > { %v3563_v17 = vld [vmem:[%s2931_s27 + $0xd0] sm:$0xf]  ;;  %v2809_v50 = vld [vmem:[%s3936_s1 + $0xc4] ss:$8 sps:$4 sm:$0xff]   ;;  %v614_v20 = vrot.slane %v613_v4, 4  ;;  %v627_v21 = vor.u32 %v626_v29, %v623_v2  ;;  %v360_v24 = vrot.slane %v358_v8, 5  ;;  %2167 = vmatpush1.bf16.msra.mxu0 %v2806_v43 }
  0x99   : > { %v372_v48 = vshll.u32 %v260_v9, 16  ;;  %v2811_v1 = vld [vmem:[%s3936_s1 + $0xc0] ss:$8 sps:$4 sm:$0xff]   ;;  %v355_v32 = vor.u32 %v354_v27, %v351_v14  ;;  %v365_v35 = vrot.slane %v363_v53, 4  ;;  %v368_v39 = vrot.slane %v366_v16, 5  ;;  %2097 = vmatprep.subr.bf16.mxu1 %v2809_v50 }
  0x9a   : > { %v2536_v40 = vld [vmem:[%s2931_s27 + $0xd4] sm:$0x1]  ;;  %v1123_v46 = vshrl.u32 %v3542_v63, 16  ;;  %v619_v41 = vsel %vm2980_vm2, %v614_v20, %v618_v37  ;;  %v628_v34 = vrot.slane %v627_v21, 4  ;;  %v1126_v62 = vshll.u32 %v3542_v63, 16  ;;  %2098 = vmatpush1.bf16.msra.mxu1 %v2811_v1 }
  0x9b   : > { %v2812_v56 = vld [vmem:[%s3936_s1 + $0x1b4] ss:$8 sps:$4 sm:$0xff]   ;;  %v374_v5 = vrot.slane %v372_v48, 5  ;;  %v3580_v9 = vld [vmem:[%s2931_s27 + $0x38] sm:$0xf]  ;;  %v356_v60 = vrot.slane %v355_v32, 4  ;;  %v369_v25 = vor.u32 %v368_v39, %v365_v35 }
  0x9c   : > { %v2814_v6 = vld [vmem:[%s3936_s1 + $0x1b0] ss:$8 sps:$4 sm:$0xff]   ;;  %v1125_v26 = vrot.slane %v1123_v46, 4  ;;  %v1132_v37 = vshll.u32 %v2535_v12, 16  ;;  %v2816_v2 = vld [vmem:[%s3936_s1 + $0xd4] ss:$8 sps:$4 sm:$0xff]   ;;  %v633_v11 = vsel %vm2980_vm2, %v628_v34, %v632_v23  ;;  %2168 = vmatprep.subr.bf16.mxu0 %v2812_v56 }
  0x9d   : > { %v1128_v10 = vrot.slane %v1126_v62, 5  ;;  %v1137_v13 = vshrl.u32 %v3563_v17, 16  ;;  %v1140_v4 = vshll.u32 %v3563_v17, 16  ;;  %v3597_v29 = vld [vmem:[%s2931_s27 + $0x40] sm:$0xf]  ;;  %v2572_v14 = vcombine.low %v619_v41, %v633_v11  ;;  %2099 = vmatprep.subr.bf16.mxu1 %v2816_v2  ;;  %2169 = vmatpush1.bf16.msra.mxu0 %v2814_v6 }
  0x9e   : > { %v2503_v8 = vld [vmem:[%s2931_s27 + $0x3c] sm:$0x1]  ;;  %v361_v12 = vsel %vm2980_vm2, %v356_v60, %v360_v24  ;;  %v370_v43 = vrot.slane %v369_v25, 4  ;;  %v1134_v27 = vrot.slane %v1132_v37, 5  ;;  %v2504_v53 = vld [vmem:[%s2931_s27 + $0x44] sm:$0x1]  ;;  %v3621_v60 = vpop.permute.xlu0 %1486  ;;  %v3623_v25 = vpop.permute.xlu1 %1418 }
  0x9f   : > { %v2818_v23 = vld [vmem:[%s3936_s1 + $0xd0] ss:$8 sps:$4 sm:$0xff]   ;;  %v2819_v16 = vld [vmem:[%s3936_s1 + $0x1c4] ss:$8 sps:$4 sm:$0xff]   ;;  %v1129_v50 = vor.u32 %v1128_v10, %v1125_v26  ;;  %v1139_v20 = vrot.slane %v1137_v13, 4  ;;  %v1142_v21 = vrot.slane %v1140_v4, 5  ;;  %1424 = vrot.lane.b32.xlu1 %v2572_v14, %s2880_s29 }
  0xa0   : > { %v1146_v48 = vshll.u32 %v2536_v40, 16  ;;  %v2822_v24 = vld [vmem:[%s3936_s1 + $0xe4] ss:$8 sps:$4 sm:$0xff]   ;;  %v375_v1 = vsel %vm2980_vm2, %v370_v43, %v374_v5  ;;  %v865_v32 = vshrl.u32 %v3580_v9, 16  ;;  %v868_v35 = vshll.u32 %v3580_v9, 16  ;;  %2170 = vmatprep.subr.bf16.mxu0 %v2819_v16  ;;  %2100 = vmatpush1.bf16.msra.mxu1 %v2818_v23 }
  0xa1   : > { %v874_v39 = vshll.u32 %v2503_v8, 16  ;;  %v2821_v40 = vld [vmem:[%s3936_s1 + $0x1c0] ss:$8 sps:$4 sm:$0xff]   ;;  %v2556_v46 = vcombine.low %v361_v12, %v375_v1  ;;  %v1130_v56 = vrot.slane %v1129_v50, 4  ;;  %v1143_v41 = vor.u32 %v1142_v21, %v1139_v20  ;;  %v2479_v62 = vld [vmem:[%s2931_s27 + $0x10c] sm:$0x1]  ;;  %2101 = vmatprep.subr.bf16.mxu1 %v2822_v24 }
  0xa2   : > { %v1148_v34 = vrot.slane %v1146_v48, 5  ;;  %v2825_v5 = vld [vmem:[%s3936_s1 + $0x1d4] ss:$8 sps:$4 sm:$0xff]   ;;  %v867_v26 = vrot.slane %v865_v32, 4  ;;  %v870_v6 = vrot.slane %v868_v35, 5  ;;  %v879_v2 = vshrl.u32 %v3597_v29, 16  ;;  %2171 = vmatpush1.bf16.msra.mxu0 %v2821_v40 }
  0xa3   : > { %v3628_v37 = vrot.slane %v874_v39, 5  ;;  %v2480_v11 = vld [vmem:[%s2931_s27 + $0x114] sm:$0x1]  ;;  %v2824_v10 = vld [vmem:[%s3936_s1 + $0xe0] ss:$8 sps:$4 sm:$0xff]   ;;  %1336 = vrot.lane.b32.xlu0 %v2556_v46, %s2880_s29  ;;  %v1135_v13 = vsel %vm2980_vm2, %v1130_v56, %v1134_v27  ;;  %v1144_v4 = vrot.slane %v1143_v41, 4  ;;  %v733_v16 = vor.u32 %v3404_v59, %v3402_v58  ;;  %2172 = vmatprep.subr.bf16.mxu0 %v2825_v5 }
  0xa4   : > { %v882_v8 = vshll.u32 %v3597_v29, 16  ;;  %v888_v14 = vshll.u32 %v2504_v53, 16  ;;  %v2828_v12 = vld [vmem:[%s3936_s1 + $0xf4] ss:$8 sps:$4 sm:$0xff]   ;;  %v871_v43 = vor.u32 %v870_v6, %v867_v26  ;;  %v881_v23 = vrot.slane %v879_v2, 4  ;;  %2102 = vmatpush1.bf16.msra.mxu1 %v2824_v10 }
  0xa5   : > { %v736_v50 = vshll.u32 %v2479_v62, 16  ;;  %v2447_v20 = vld [vmem:[%s2931_s27 + $0x7c] sm:$0x1]  ;;  %v2827_v27 = vld [vmem:[%s3936_s1 + $0x1d0] ss:$8 sps:$4 sm:$0xff]   ;;  %v1149_v53 = vsel %vm2980_vm2, %v1144_v4, %v1148_v34  ;;  %v747_v24 = vor.u32 %v3415_v55, %v3406_v45  ;;  %v734_v35 = vrot.slane %v733_v16, 4  ;;  %v3662_v34 = vpop.permute.xlu0 %1330  ;;  %v3664_v62 = vpop.permute.xlu1 %1594  ;;  %2103 = vmatprep.subr.bf16.mxu1 %v2828_v12 }
  0xa6   : > { %v884_v21 = vrot.slane %v882_v8, 5  ;;  %v890_v48 = vrot.slane %v888_v14, 5  ;;  %v2448_v1 = vld [vmem:[%s2931_s27 + $0x84] sm:$0x1]  ;;  %v2604_v59 = vcombine.low %v1135_v13, %v1149_v53  ;;  %v872_v32 = vrot.slane %v871_v43, 4  ;;  %2173 = vmatpush1.bf16.msra.mxu0 %v2827_v27 }
  0xa7   : > { %v2831_v58 = vld [vmem:[%s3936_s1 + $0x1e4] ss:$8 sps:$4 sm:$0xff]   ;;  %v738_v39 = vrot.slane %v736_v50, 5  ;;  %v2830_v40 = vld [vmem:[%s3936_s1 + $0xf0] ss:$8 sps:$4 sm:$0xff]   ;;  %v748_v56 = vrot.slane %v747_v24, 4  ;;  %v475_v45 = vor.u32 %v3458_v7, %v3442_v0  ;;  %v489_v0 = vor.u32 %v3472_v28, %v3460_v19 }
  0xa8   : > { %v885_v46 = vor.u32 %v884_v21, %v881_v23  ;;  %v750_v41 = vshll.u32 %v2480_v11, 16  ;;  %v2543_v55 = vld [vmem:[%s2931_s27 + $0x114] sm:$0x1]  ;;  %1600 = vrot.lane.b32.xlu1 %v2604_v59, %s2880_s29  ;;  %v877_v5 = vsel %vm2980_vm2, %v872_v32, %v3628_v37  ;;  %v478_v6 = vshll.u32 %v2447_v20, 16  ;;  %v2833_v7 = vld [vmem:[%s3936_s1 + $0x1e0] ss:$8 sps:$4 sm:$0xff]   ;;  %2174 = vmatprep.subr.bf16.mxu0 %v2831_v58 }
  0xa9   : > { %v739_v26 = vsel %vm2980_vm2, %v734_v35, %v738_v39  ;;  %v476_v10 = vrot.slane %v475_v45, 4  ;;  %v492_v13 = vshll.u32 %v2448_v1, 16  ;;  %v2834_v37 = vld [vmem:[%s3936_s1 + $0x1f4] ss:$8 sps:$4 sm:$0xff]   ;;  %v490_v8 = vrot.slane %v489_v0, 4  ;;  %2104 = vmatpush1.bf16.msra.mxu1 %v2830_v40  ;;  %v1439_v20 = vpop.permute.xlu1 %1438 }
  0xaa   : > { %v886_v2 = vrot.slane %v885_v46, 4  ;;  %v752_v11 = vrot.slane %v750_v41, 5  ;;  %v480_v4 = vrot.slane %v478_v6, 5  ;;  %v2544_v14 = vld [vmem:[%s2931_s27 + $0x11c] sm:$0x1]  ;;  %v1249_v19 = vor.u32 %v3495_v22, %v3483_v15  ;;  %2175 = vmatpush1.bf16.msra.mxu0 %v2833_v7 }
  0xab   : > { %v1252_v28 = vshll.u32 %v2543_v55, 16  ;;  %v494_v23 = vrot.slane %v492_v13, 5  ;;  %v1263_v16 = vor.u32 %v3508_v31, %v3497_v54  ;;  %v2511_v50 = vld [vmem:[%s2931_s27 + $0x84] sm:$0x1]  ;;  %v2512_v22 = vld [vmem:[%s2931_s27 + $0x8c] sm:$0x1]  ;;  %v1507_v31 = vpop.permute.xlu0 %1506  ;;  %2176 = vmatprep.subr.bf16.mxu0 %v2834_v37  ;;  %v991_v32 = vor.u32 %v3521_v52, %v3519_v47 }
  0xac   : > { %v891_v12 = vsel %vm2980_vm2, %v886_v2, %v890_v48  ;;  %v753_v43 = vsel %vm2980_vm2, %v748_v56, %v752_v11  ;;  %v481_v21 = vsel %vm2980_vm2, %v476_v10, %v480_v4  ;;  %v1250_v15 = vrot.slane %v1249_v19, 4  ;;  %v2836_v48 = vld [vmem:[%s3936_s1 + $0x1f0] ss:$8 sps:$4 sm:$0xff]   ;;  %v2852_v6 = vld [vmem:[%s2931_s27 + $0xa0] sm:$0xf] }
  0xad   : > { %v2588_v27 = vcombine.low %v877_v5, %v891_v12  ;;  %v2576_v53 = vcombine.low %v739_v26, %v753_v43  ;;  %v495_v24 = vsel %vm2980_vm2, %v490_v8, %v494_v23  ;;  %v1254_v1 = vrot.slane %v1252_v28, 5  ;;  %v2849_v5 = vld [vmem:[%s2931_s27 + $0x90] sm:$0xf]  ;;  %v2850_v47 = vld [vmem:[%s2931_s27 + $0x98] sm:$0xf]  ;;  %v1615_v10 = vpop.permute.xlu1 %1614 }
  0xae   : > { %v1264_v58 = vrot.slane %v1263_v16, 4  ;;  %v1266_v54 = vshll.u32 %v2544_v14, 16  ;;  %v2560_v59 = vcombine.low %v481_v21, %v495_v24  ;;  %v994_v35 = vshll.u32 %v2511_v50, 16  ;;  %2177 = vmatpush1.bf16.msra.mxu0 %v2836_v48  ;;  %v2851_v26 = vld [vmem:[%s2931_s27 + $0x98] sm:$0xf] }
  0xaf   : > { %1512 = vrot.lane.b32.xlu0 %v2588_v27, %s2880_s29  ;;  %1444 = vrot.lane.b32.xlu1 %v2576_v53, %s2881_s30  ;;  %v1005_v39 = vor.u32 %v3533_v57, %v3531_v51  ;;  %v1255_v40 = vsel %vm2980_vm2, %v1250_v15, %v1254_v1  ;;  %v1008_v56 = vshll.u32 %v2512_v22, 16  ;;  %v992_v41 = vrot.slane %v991_v32, 4  ;;  %v2853_v7 = vld [vmem:[%s2931_s27] sm:$0xf]  ;;  %v2854_v2 = vld [vmem:[%s2931_s27 + $0x8] sm:$0xf]  ;;  %v1351_v43 = vpop.permute.xlu0 %1350 }
  0xb0   : > { %v1268_v46 = vrot.slane %v1266_v54, 5  ;;  %v996_v45 = vrot.slane %v994_v35, 5  ;;  %v2561_v52 = vcombine.low %v2849_v5, %v2850_v47  ;;  %v2593_v0 = vcombine.low %v2851_v26, %v2852_v6  ;;  %v2855_v4 = vld [vmem:[%s2931_s27 + $0x8] sm:$0xf]  ;;  %v2856_v8 = vld [vmem:[%s2931_s27 + $0x10] sm:$0xf] }
  0xb1   : > { %v1006_v55 = vrot.slane %v1005_v39, 4  ;;  %v1010_v57 = vrot.slane %v1008_v56, 5  ;;  %v2545_v11 = vcombine.low %v2853_v7, %v2854_v2  ;;  %v2577_v14 = vcombine.low %v2855_v4, %v2856_v8  ;;  %v1527_v53 = vpop.permute.xlu1 %1526  ;;  %v2857_v32 = vld [vmem:[%s2931_s27 + $0xa0] sm:$0xf]  ;;  %v2858_v35 = vld [vmem:[%s2931_s27 + $0xa8] sm:$0xf] }
  0xb2   : > { %v1269_v51 = vsel %vm2980_vm2, %v1264_v58, %v1268_v46  ;;  %v997_v37 = vsel %vm2980_vm2, %v992_v41, %v996_v45  ;;  %v1659_v28 = vsel %vm1622_vm3, %v2561_v52, %v3544_v3  ;;  %v1723_v12 = vsel %vm1622_vm3, %v2593_v0, %v3582_v36  ;;  %v2859_v46 = vld [vmem:[%s2931_s27 + $0x10] sm:$0xf]  ;;  %v2860_v56 = vld [vmem:[%s2931_s27 + $0x18] sm:$0xf]  ;;  %v2861_v47 = vld [vmem:[%s2931_s27 + $0xa8] sm:$0xf] }
  0xb3   : > { %1356 = vrot.lane.b32.xlu0 %v2560_v59, %s2881_s30  ;;  %v2608_v13 = vcombine.low %v1255_v40, %v1269_v51  ;;  %v1011_v19 = vsel %vm2980_vm2, %v1006_v55, %v1010_v57  ;;  %v1625_v16 = vsel %vm1622_vm3, %v2545_v11, %v3584_v38  ;;  %v1691_v50 = vsel %vm1622_vm3, %v2577_v14, %v3621_v60  ;;  %v2862_v52 = vld [vmem:[%s2931_s27 + $0xb0] sm:$0xf]  ;;  %v2863_v11 = vld [vmem:[%s2931_s27 + $0x18] sm:$0xf] }
  0xb4   : > { %v2592_v23 = vcombine.low %v997_v37, %v1011_v19  ;;  %v1670_v18 = vsel %vm1635_vm4, %v1659_v28, %v3623_v25  ;;  %v1637_v3 = vsel %vm1635_vm4, %v1625_v16, %v3662_v34  ;;  %v1734_v36 = vsel %vm1635_vm4, %v1723_v12, %v3664_v62 }
  0xb5   : > { %1620 = vrot.lane.b32.xlu1 %v2608_v13, %s2881_s30  ;;  %v1702_v27 = vsel %vm1635_vm4, %v1691_v50, %v1507_v31  ;;  %v1678_v21 = vsel %vm1644_vm5, %v1670_v18, %v1439_v20  ;;  %v1646_v38 = vsel %vm1644_vm5, %v1637_v3, %v1351_v43  ;;  %v1742_v15 = vsel %vm1644_vm5, %v1734_v36, %v1615_v10  ;;  %v1401_v20 = vpop.permute.xlu0 %1400  ;;  %v1577_v1 = vpop.permute.xlu1 %1576  ;;  %v2864_v10 = vld [vmem:[%s2931_s27 + $0x20] sm:$0xf] }
  0xb6   : > { %v1710_v60 = vsel %vm1644_vm5, %v1702_v27, %v1527_v53  ;;  %2105 = vmatprep.mubr.bf16.mxu1 %v1678_v21  ;;  %2178 = vmatprep.mubr.bf16.mxu0 %v1742_v15  ;;  %v2579_v25 = vcombine.low %v3273_v30, %v3287_v61  ;;  %v2564_v34 = vcombine.low %v3464_v49, %v3477_v44  ;;  %v2865_v27 = vld [vmem:[%s2931_s27 + $0xb0] sm:$0xf]  ;;  %v2866_v53 = vld [vmem:[%s2931_s27 + $0xb8] sm:$0xf]  ;;  %v2867_v15 = vld [vmem:[%s2931_s27 + $0x20] sm:$0xf] }
  0xb7   : > { %2106 = vmatmul.mubr.bf16.vlgmr.msra.gmra.mrb[0].mxu1 %v1646_v38  ;;  %2179 = vmatmul.mubr.bf16.vlgmr.msra.gmra.mrb[0].mxu0 %v1710_v60  ;;  %v2548_v62 = vcombine.low %v3502_v42, %v3526_v33  ;;  %v2596_v22 = vcombine.low %v3542_v63, %v3563_v17  ;;  %v2580_v48 = vcombine.low %v3580_v9, %v3597_v29  ;;  %v2868_v60 = vld [vmem:[%s2931_s27 + $0x28] sm:$0xf] }
  0xb8   : > { %v2562_v39 = vcombine.low %v2857_v32, %v2858_v35  ;;  %v2546_v41 = vcombine.low %v2859_v46, %v2860_v56  ;;  %v2594_v51 = vcombine.low %v2861_v47, %v2862_v52  ;;  %v2578_v13 = vcombine.low %v2863_v11, %v2864_v10 }
  0xb9   : > { %1532 = vrot.lane.b32.xlu1 %v2592_v23, %s2881_s30  ;;  %v1313_v24 = vpop.permute.xlu0 %1312  ;;  %v2563_v21 = vcombine.low %v2865_v27, %v2866_v53 }
  0xba   : > { %v1662_v40 = vsel %vm1622_vm3, %v2562_v39, %v1401_v20  ;;  %v1628_v26 = vsel %vm1622_vm3, %v2546_v41, %v1313_v24  ;;  %v1726_v7 = vsel %vm1622_vm3, %v2594_v51, %v1577_v1  ;;  %v2547_v20 = vcombine.low %v2867_v15, %v2868_v60 }
  0xbd   : > { %v1489_v58 = vpop.permute.xlu0 %1488 }
  0xbe   : > { %v1694_v14 = vsel %vm1622_vm3, %v2578_v13, %v1489_v58 }
  0xc0   : > { %v1421_v54 = vpop.permute.xlu1 %1420 }
  0xc1   : > { %v1672_v45 = vsel %vm1635_vm4, %v1662_v40, %v1421_v54  ;;  %v2869_v54 = vld [vmem:[%s2931_s27 + $0xb8] sm:$0xf] }
  0xc3   : > { %v1333_v31 = vpop.permute.xlu0 %1332 }
  0xc4   : > { %v1639_v6 = vsel %vm1635_vm4, %v1628_v26, %v1333_v31  ;;  %v2870_v31 = vld [vmem:[%s2931_s27 + $0xc0] sm:$0xf] }
  0xc8   : > { %v1597_v59 = vpop.permute.xlu1 %1596 }
  0xc9   : > { %v1736_v37 = vsel %vm1635_vm4, %v1726_v7, %v1597_v59  ;;  %v2595_v59 = vcombine.low %v2869_v54, %v2870_v31 }
  0xce   : > { %v1509_v55 = vpop.permute.xlu0 %1508  ;;  %v1441_v5 = vpop.permute.xlu1 %1440 }
  0xcf   : > { %v1681_v57 = vsel %vm1644_vm5, %v1672_v45, %v1441_v5  ;;  %v1704_v19 = vsel %vm1635_vm4, %v1694_v14, %v1509_v55 }
  0xd0   : > { %2115 = vmatprep.mubr.bf16.mxu1 %v1681_v57 }
  0xd2   : > { %v1353_v0 = vpop.permute.xlu0 %1352 }
  0xd3   : > { %v1649_v2 = vsel %vm1644_vm5, %v1639_v6, %v1353_v0 }
  0xd4   : > { %v1617_v4 = vpop.permute.xlu1 %1616  ;;  %2116 = vmatmul.mubr.bf16.gmra.mrb[4].mxu1 %v1649_v2 }
  0xd5   : > { %v1745_v8 = vsel %vm1644_vm5, %v1736_v37, %v1617_v4 }
  0xd6   : > { %2188 = vmatprep.mubr.bf16.mxu0 %v1745_v8  ;;  %v1403_v43 = vpop.permute.xlu0 %1402 }
  0xd7   : > { %v1665_v38 = vsel %vm1622_vm3, %v2563_v21, %v1403_v43 }
  0xd9   : > { %v1529_v28 = vpop.permute.xlu1 %1528 }
  0xda   : > { %v1713_v12 = vsel %vm1644_vm5, %v1704_v19, %v1529_v28  ;;  %v1315_v23 = vpop.permute.xlu0 %1314 }
  0xdb   : > { %2189 = vmatmul.mubr.bf16.gmra.mrb[4].mxu0 %v1713_v12  ;;  %v1631_v35 = vsel %vm1622_vm3, %v2547_v20, %v1315_v23 }
  0xdd   : > { %v1579_v16 = vpop.permute.xlu1 %1578 }
  0xde   : > { %v1491_v50 = vpop.permute.xlu0 %1490  ;;  %v1729_v46 = vsel %vm1622_vm3, %v2595_v59, %v1579_v16 }
  0xdf   : > { %v1697_v5 = vsel %vm1622_vm3, %v2579_v25, %v1491_v50 }
  0xe7   : > { %v1423_v18 = vpop.permute.xlu1 %1422 }
  0xe8   : > { %v1674_v24 = vsel %vm1635_vm4, %v1665_v38, %v1423_v18 }
  0xea   : > { %v1335_v3 = vpop.permute.xlu0 %1334 }
  0xeb   : > { %v1641_v39 = vsel %vm1635_vm4, %v1631_v35, %v1335_v3 }
  0xef   : > { %v1599_v36 = vpop.permute.xlu1 %1598 }
  0xf0   : > { %v1738_v41 = vsel %vm1635_vm4, %v1729_v46, %v1599_v36 }
  0xf5   : > { %v1511_v1 = vpop.permute.xlu0 %1510  ;;  %v1443_v58 = vpop.permute.xlu1 %1442 }
  0xf6   : > { %v1684_v32 = vsel %vm1644_vm5, %v1674_v24, %v1443_v58  ;;  %v1706_v47 = vsel %vm1635_vm4, %v1697_v5, %v1511_v1 }
  0xf7   : > { %2125 = vmatprep.mubr.bf16.mxu1 %v1684_v32 }
  0xf9   : > { %v1355_v40 = vpop.permute.xlu0 %1354 }
  0xfa   : > { %v1652_v56 = vsel %vm1644_vm5, %v1641_v39, %v1355_v40 }
  0xfb   : > { %v1619_v45 = vpop.permute.xlu1 %1618  ;;  %2126 = vmatmul.mubr.bf16.gmra.mrb[8].mxu1 %v1652_v56 }
  0xfc   : > { %v1748_v55 = vsel %vm1644_vm5, %v1738_v41, %v1619_v45 }
  0xfd   : > { %2198 = vmatprep.mubr.bf16.mxu0 %v1748_v55  ;;  %v1405_v57 = vpop.permute.xlu0 %1404 }
  0xfe   : > { %v1668_v30 = vsel %vm1622_vm3, %v2564_v34, %v1405_v57 }
 0x100   : > { %v1531_v52 = vpop.permute.xlu1 %1530 }
 0x101   : > { %v1716_v51 = vsel %vm1644_vm5, %v1706_v47, %v1531_v52  ;;  %v1317_v26 = vpop.permute.xlu0 %1316 }
 0x102   : > { %2199 = vmatmul.mubr.bf16.gmra.mrb[8].mxu0 %v1716_v51  ;;  %v1634_v37 = vsel %vm1622_vm3, %v2548_v62, %v1317_v26 }
 0x104   : > { %v1581_v6 = vpop.permute.xlu1 %1580 }
 0x105   : > { %v1493_v0 = vpop.permute.xlu0 %1492  ;;  %v1732_v49 = vsel %vm1622_vm3, %v2596_v22, %v1581_v6 }
 0x106   : > { %v1700_v42 = vsel %vm1622_vm3, %v2580_v48, %v1493_v0 }
 0x111   : > { %v1425_v7 = vpop.permute.xlu1 %1424 }
 0x112   : > { %v1676_v61 = vsel %vm1635_vm4, %v1668_v30, %v1425_v7 }
 0x115   : > { %v1337_v2 = vpop.permute.xlu0 %1336 }
 0x116   : > { %v1643_v4 = vsel %vm1635_vm4, %v1634_v37, %v1337_v2 }
 0x11a   : > { %v1601_v11 = vpop.permute.xlu1 %1600 }
 0x11b   : > { %v1740_v34 = vsel %vm1635_vm4, %v1732_v49, %v1601_v11 }
 0x121   : > { %v1513_v25 = vpop.permute.xlu0 %1512  ;;  %v1445_v10 = vpop.permute.xlu1 %1444 }
 0x122   : > { %v1687_v13 = vsel %vm1644_vm5, %v1676_v61, %v1445_v10  ;;  %v1708_v33 = vsel %vm1635_vm4, %v1700_v42, %v1513_v25 }
 0x123   : > { %2135 = vmatprep.mubr.bf16.mxu1 %v1687_v13 }
 0x125   : > { %v1357_v8 = vpop.permute.xlu0 %1356 }
 0x126   : > { %v1655_v44 = vsel %vm1644_vm5, %v1643_v4, %v1357_v8  ;;  %v3884_v4 = vld [vmem:[%s3937_s2] ss:$0 sm:$0xff] }
 0x127   : > { %v1621_v14 = vpop.permute.xlu1 %1620  ;;  %2136 = vmatmul.mubr.bf16.gmra.mrb[12].mxu1 %v1655_v44 }
 0x128   : > { %v1751_v19 = vsel %vm1644_vm5, %v1740_v34, %v1621_v14 }
 0x129   : > { %2208 = vmatprep.mubr.bf16.mxu0 %v1751_v19 }
 0x12b   : > { %v1533_v62 = vpop.permute.xlu1 %1532 }
 0x12c   : > { %v1719_v63 = vsel %vm1644_vm5, %v1708_v33, %v1533_v62 }
 0x12d   : > { %2209 = vmatmul.mubr.bf16.gmra.mrb[12].mxu0 %v1719_v63 }
 0x18a   : > { %v2107_v17 = vpop.f32.mrb[0].mxu1  ;;  %v2180_v28 = vpop.f32.mrb[0].mxu0 }
 0x18b   : > { %v2109_v22 = vpop.f32.mrb[1].mxu1  ;;  %v3817_v43 = vadd.f32 %v2180_v28, %v2107_v17  ;;  %v2182_v23 = vpop.f32.mrb[1].mxu0 }
 0x18c   : > { %v2111_v12 = vpop.f32.mrb[2].mxu1  ;;  %v3819_v50 = vadd.f32 %v2182_v23, %v2109_v22  ;;  %v2184_v18 = vpop.f32.mrb[2].mxu0 }
 0x18d   : > { %v2113_v16 = vpop.f32.mrb[3].mxu1  ;;  %v3821_v9 = vadd.f32 %v2184_v18, %v2111_v12  ;;  %v2186_v29 = vpop.f32.mrb[3].mxu0  ;;  %2227 = vrot.lane.b32.xlu0 %v3817_v43, %s2880_s29 }
 0x18e   : > { %v3825_v48 = vadd.f32 %v2186_v29, %v2113_v16 }
 0x18f   : > { %2229 = vrot.lane.b32.xlu1 %v3821_v9, %s2880_s29 }
 0x191   : > { %2267 = vrot.lane.b32.xlu0 %v3819_v50, %s2880_s29 }
 0x193   : > { %2269 = vrot.lane.b32.xlu1 %v3825_v48, %s2880_s29 }
 0x1a7   : > { %v2117_v3 = vpop.f32.mrb[4].mxu1 }
 0x1a8   : > { %v2119_v36 = vpop.f32.mrb[5].mxu1 }
 0x1a9   : > { %v2121_v27 = vpop.f32.mrb[6].mxu1 }
 0x1aa   : > { %v2123_v53 = vpop.f32.mrb[7].mxu1 }
 0x1ae   : > { %v2190_v21 = vpop.f32.mrb[4].mxu0 }
 0x1af   : > { %v3833_v38 = vadd.f32 %v2190_v21, %v2117_v3  ;;  %v2192_v15 = vpop.f32.mrb[5].mxu0 }
 0x1b0   : > { %v3835_v60 = vadd.f32 %v2192_v15, %v2119_v36  ;;  %v2194_v20 = vpop.f32.mrb[6].mxu0 }
 0x1b1   : > { %v3837_v24 = vadd.f32 %v2194_v20, %v2121_v27  ;;  %v2196_v1 = vpop.f32.mrb[7].mxu0  ;;  %2231 = vrot.lane.b32.xlu0 %v3833_v38, %s2880_s29 }
 0x1b2   : > { %v3841_v58 = vadd.f32 %v2196_v1, %v2123_v53 }
 0x1b3   : > { %2233 = vrot.lane.b32.xlu1 %v3837_v24, %s2880_s29 }
 0x1b5   : > { %2271 = vrot.lane.b32.xlu0 %v3835_v60, %s2880_s29 }
 0x1b7   : > { %2273 = vrot.lane.b32.xlu1 %v3841_v58, %s2880_s29 }
 0x1ce   : > { %v2127_v54 = vpop.f32.mrb[8].mxu1 }
 0x1cf   : > { %v2129_v31 = vpop.f32.mrb[9].mxu1 }
 0x1d0   : > { %v2131_v59 = vpop.f32.mrb[10].mxu1 }
 0x1d1   : > { %v2133_v32 = vpop.f32.mrb[11].mxu1 }
 0x1d5   : > { %v2200_v35 = vpop.f32.mrb[8].mxu0 }
 0x1d6   : > { %v3849_v39 = vadd.f32 %v2200_v35, %v2127_v54  ;;  %v2202_v40 = vpop.f32.mrb[9].mxu0 }
 0x1d7   : > { %v3851_v46 = vadd.f32 %v2202_v40, %v2129_v31  ;;  %v2204_v56 = vpop.f32.mrb[10].mxu0 }
 0x1d8   : > { %v3853_v41 = vadd.f32 %v2204_v56, %v2131_v59  ;;  %v2206_v45 = vpop.f32.mrb[11].mxu0  ;;  %2235 = vrot.lane.b32.xlu0 %v3849_v39, %s2880_s29 }
 0x1d9   : > { %v3857_v55 = vadd.f32 %v2206_v45, %v2133_v32 }
 0x1da   : > { %2237 = vrot.lane.b32.xlu1 %v3853_v41, %s2880_s29 }
 0x1dc   : > { %2275 = vrot.lane.b32.xlu0 %v3851_v46, %s2880_s29 }
 0x1de   : > { %2277 = vrot.lane.b32.xlu1 %v3857_v55, %s2880_s29 }
 0x1fa   : > { %v2137_v5 = vpop.f32.mrb[12].mxu1 }
 0x1fb   : > { %v2139_v47 = vpop.f32.mrb[13].mxu1 }
 0x1fc   : > { %v2141_v52 = vpop.f32.mrb[14].mxu1 }
 0x1fd   : > { %v2143_v51 = vpop.f32.mrb[15].mxu1 }
 0x1ff   : > { %v2228_v2 = vpop.permute.xlu0 %2227 }
 0x200   : > { %v2210_v57 = vpop.f32.mrb[12].mxu0  ;;  %v2251_v13 = vmax.f32 %v3817_v43, %v2228_v2 }
 0x201   : > { %v3865_v26 = vadd.f32 %v2210_v57, %v2137_v5  ;;  %v2212_v6 = vpop.f32.mrb[13].mxu0  ;;  %v2230_v25 = vpop.permute.xlu1 %2229 }
 0x202   : > { %v3867_v0 = vadd.f32 %v2212_v6, %v2139_v47  ;;  %v2214_v7 = vpop.f32.mrb[14].mxu0  ;;  %v2252_v49 = vmax.f32 %v3821_v9, %v2230_v25 }
 0x203   : > { %v3869_v11 = vadd.f32 %v2214_v7, %v2141_v52  ;;  %v2216_v30 = vpop.f32.mrb[15].mxu0  ;;  %2239 = vrot.lane.b32.xlu0 %v3865_v26, %s2880_s29  ;;  %v2268_v10 = vpop.permute.xlu0 %2267 }
 0x204   : > { %v3873_v61 = vadd.f32 %v2216_v30, %v2143_v51  ;;  %v2291_v37 = vmax.f32 %v3819_v50, %v2268_v10 }
 0x205   : > { %2241 = vrot.lane.b32.xlu1 %v3869_v11, %s2880_s29  ;;  %v2270_v8 = vpop.permute.xlu1 %2269 }
 0x206   : > { %v2299_v44 = vmax.f32 %v2251_v13, %v2291_v37  ;;  %v2292_v34 = vmax.f32 %v3825_v48, %v2270_v8 }
 0x207   : > { %2279 = vrot.lane.b32.xlu0 %v3867_v0, %s2880_s29 }
 0x208   : > { %v2313_v14 = vadd.f32 %v3884_v4, %v2299_v44  ;;  %v2300_v19 = vmax.f32 %v2252_v49, %v2292_v34 }
 0x209   : > { %2281 = vrot.lane.b32.xlu1 %v3873_v61, %s2880_s29 }
 0x20a   : > { %v2321_v42 = vmax.f32 %v2313_v14, 0.0  ;;  %v2314_v33 = vadd.f32 %v3884_v4, %v2300_v19 }
 0x20c   : > { %v2685_v62 = vpack.c.bf16 %v2321_v42, %v2321_v42  ;;  %v2322_v63 = vmax.f32 %v2314_v33, 0.0 }
 0x20e   : > { %2362 = vst.msk [vmem:[%s3896_s20] sm:$0xf] %vm2361_vm6, %v2685_v62  ;;  %v2686_v17 = vpack.c.bf16 %v2322_v63, %v2322_v63 }
 0x210   : > { %2363 = vst.msk [vmem:[%s3896_s20 + $0x4] sm:$0xf] %vm2361_vm6, %v2686_v17 }
 0x223   : > { %v2232_v22 = vpop.permute.xlu0 %2231 }
 0x224   : > { %v2253_v43 = vmax.f32 %v3833_v38, %v2232_v22 }
 0x225   : > { %v2234_v28 = vpop.permute.xlu1 %2233 }
 0x226   : > { %v2254_v50 = vmax.f32 %v3837_v24, %v2234_v28 }
 0x227   : > { %v2272_v12 = vpop.permute.xlu0 %2271 }
 0x228   : > { %v2293_v23 = vmax.f32 %v3835_v60, %v2272_v12 }
 0x229   : > { %v2274_v16 = vpop.permute.xlu1 %2273 }
 0x22a   : > { %v2301_v18 = vmax.f32 %v2253_v43, %v2293_v23  ;;  %v2294_v9 = vmax.f32 %v3841_v58, %v2274_v16 }
 0x22c   : > { %v2315_v29 = vadd.f32 %v3884_v4, %v2301_v18  ;;  %v2302_v48 = vmax.f32 %v2254_v50, %v2294_v9 }
 0x22e   : > { %v2323_v3 = vmax.f32 %v2315_v29, 0.0  ;;  %v2316_v36 = vadd.f32 %v3884_v4, %v2302_v48 }
 0x230   : > { %v2687_v27 = vpack.c.bf16 %v2323_v3, %v2323_v3  ;;  %v2324_v53 = vmax.f32 %v2316_v36, 0.0 }
 0x232   : > { %2364 = vst.msk [vmem:[%s3896_s20 + $0x8] sm:$0xf] %vm2361_vm6, %v2687_v27  ;;  %v2688_v21 = vpack.c.bf16 %v2324_v53, %v2324_v53 }
 0x234   : > { %2365 = vst.msk [vmem:[%s3896_s20 + $0xc] sm:$0xf] %vm2361_vm6, %v2688_v21 }
 0x24a   : > { %v2236_v38 = vpop.permute.xlu0 %2235 }
 0x24b   : > { %v2255_v20 = vmax.f32 %v3849_v39, %v2236_v38 }
 0x24c   : > { %v2238_v15 = vpop.permute.xlu1 %2237 }
 0x24d   : > { %v2256_v58 = vmax.f32 %v3853_v41, %v2238_v15 }
 0x24e   : > { %v2276_v60 = vpop.permute.xlu0 %2275 }
 0x24f   : > { %v2295_v24 = vmax.f32 %v3851_v46, %v2276_v60 }
 0x250   : > { %v2278_v1 = vpop.permute.xlu1 %2277 }
 0x251   : > { %v2303_v54 = vmax.f32 %v2255_v20, %v2295_v24  ;;  %v2296_v31 = vmax.f32 %v3857_v55, %v2278_v1 }
 0x253   : > { %v2317_v59 = vadd.f32 %v3884_v4, %v2303_v54  ;;  %v2304_v32 = vmax.f32 %v2256_v58, %v2296_v31 }
 0x255   : > { %v2325_v35 = vmax.f32 %v2317_v59, 0.0  ;;  %v2318_v40 = vadd.f32 %v3884_v4, %v2304_v32 }
 0x257   : > { %v2689_v56 = vpack.c.bf16 %v2325_v35, %v2325_v35  ;;  %v2326_v45 = vmax.f32 %v2318_v40, 0.0 }
 0x259   : > { %2366 = vst.msk [vmem:[%s3896_s20 + $0x10] sm:$0xf] %vm2361_vm6, %v2689_v56  ;;  %v2690_v5 = vpack.c.bf16 %v2326_v45, %v2326_v45 }
 0x25b   : > { %2367 = vst.msk [vmem:[%s3896_s20 + $0x14] sm:$0xf] %vm2361_vm6, %v2690_v5 }
 0x275   : > { %v2240_v39 = vpop.permute.xlu0 %2239 }
 0x276   : > { %v2257_v55 = vmax.f32 %v3865_v26, %v2240_v39 }
 0x277   : > { %v2242_v46 = vpop.permute.xlu1 %2241 }
 0x278   : > { %v2258_v51 = vmax.f32 %v3869_v11, %v2242_v46 }
 0x279   : > { %v2280_v41 = vpop.permute.xlu0 %2279 }
 0x27a   : > { %v2297_v47 = vmax.f32 %v3867_v0, %v2280_v41 }
 0x27b   : > { %v2282_v52 = vpop.permute.xlu1 %2281 }
 0x27c   : > { %v2305_v57 = vmax.f32 %v2257_v55, %v2297_v47  ;;  %v2298_v6 = vmax.f32 %v3873_v61, %v2282_v52 }
 0x27e   : > { %v2319_v7 = vadd.f32 %v3884_v4, %v2305_v57  ;;  %v2306_v2 = vmax.f32 %v2258_v51, %v2298_v6 }
 0x280   : > { %v2327_v30 = vmax.f32 %v2319_v7, 0.0  ;;  %v2320_v25 = vadd.f32 %v3884_v4, %v2306_v2 }
 0x282   : > { %v2691_v10 = vpack.c.bf16 %v2327_v30, %v2327_v30  ;;  %v2328_v13 = vmax.f32 %v2320_v25, 0.0 }
 0x284   : > { %2368 = vst.msk [vmem:[%s3896_s20 + $0x18] sm:$0xf] %vm2361_vm6, %v2691_v10  ;;  %v2692_v37 = vpack.c.bf16 %v2328_v13, %v2328_v13 }
 0x286   : > { %2369 = vst.msk [vmem:[%s3896_s20 + $0x1c] sm:$0xf] %vm2361_vm6, %v2692_v37 }
 0x287 PF: > { %s13_s12 = sadd.s32 1, %s2877_s12  }
 0x288   : > { %p10_p4 = scmp.ge.s32.totalorder %s13_s12, 4  }
 0x28a   :  { %12 = sbr.rel (!%p10_p4) target bundleno = 1 (0x1), region = 69 }

// kernel: cnn_forward.3
= control target key start
LH: loop header
LB: loop body
LE: loop exit
PB: predicated region body
PF: predicated region fallthrough
CT: control target
= control target key end

     0   :  { %s3444_s12 = smov 0   ;;  %s4199_s0 = inlined_call_operand.vmem [shape: bf16[2,4,4,64,32], index: 0, kind: input, shape index: {}]   ;;  %s4200_s1 = inlined_call_operand.vmem [shape: bf16[32,32], index: 1, kind: input, shape index: {}]   ;;  %s4201_s2 = inlined_call_operand.vmem [shape: f32[1,32], index: 2, kind: input, shape index: {}]   ;;  %s4202_s3 = inlined_call_operand.vmem [shape: bf16[2,4,9,9,32], index: 3, kind: output, shape index: {}]  }
   0x1 LB: > { %s2645_s13 = sadd.s32 4294967295, %s3421_s12   ;;  %p2649_p0 = scmp.ge.s32.totalorder %s3421_s12, 1  ;;  %s3421_s12 = sphi %s3444_s12, %s13_s12  }
   0x2   : > { %p137_p1 = scmp.lt.s32.totalorder %s3421_s12, 3 }
   0x4   : > { %p138_p2 = pnand %p2649_p0, %p137_p1 }
   0x5   : > { %v3455_v0 = vld [vmem:[%s4200_s1] sm:$0xff] (!%p138_p2)   ;;  %p161_p3 = scmp.lt.s32.totalorder (!%p138_p2), %s2645_s13, 1  ;;  %v3460_v1 = vld [vmem:[%s4200_s1 + $0x8] sm:$0xff] (!%p138_p2)   ;;  %vm365_vm0 = vcmask (!%p138_p2), 261120   ;;  %vm177_vm1 = vcmask (!%p138_p2), 257024   ;;  %v3423_v59 = vmov (!%p138_p2), 0  }
   0x6   : > { %141 = sbr.rel (%p138_p2) target bundleno = 381 (0x17d), region = 32  ;;  %3147 = vmatprep.subr.bf16.mxu0 (!%p138_p2), %v3455_v0  ;;  %3159 = vmatprep.subr.bf16.mxu1 (!%p138_p2), %v3455_v0  ;;  %vm179_vm2 = vcmask (!%p138_p2), 253952   ;;  %vm180_vm3 = vsmask.f32 (!%p138_p2), 256  ;;  %vm1418_vm5 = vsmask.f32 (!%p138_p2), 7938 }
   0x7   : > { %3148 = vmatpush3.bf16.msra.mxu0 (!%p138_p2), %v3455_v0  ;;  %3160 = vmatpush3.bf16.msra.mxu1 (!%p138_p2), %v3455_v0  ;;  %vm3741_vm4 = vmand (!%p138_p2), %vm179_vm2, %vm180_vm3 }
   0x8   : > { %3149 = vmatprep.subr.bf16.mxu0 (!%p138_p2), %v3460_v1  ;;  %3161 = vmatprep.subr.bf16.mxu1 (!%p138_p2), %v3460_v1  ;;  %vm3946_vm6 = vmand (!%p138_p2), %vm177_vm1, %vm1418_vm5 }
   0xb   : > { %3150 = vmatpush3.bf16.msra.mxu0 (!%p138_p2), %v3460_v1  ;;  %3162 = vmatpush3.bf16.msra.mxu1 (!%p138_p2), %v3460_v1 }
   0xc   : > { %3171 = vmatprep.subr.bf16.mxu0 (!%p138_p2), %v3455_v0  ;;  %3183 = vmatprep.subr.bf16.mxu1 (!%p138_p2), %v3455_v0 }
   0xd   : > { %s4208_s13 = smov (!%p161_p3, %s2645_s13), 1 }
   0xe   : > { %s3018_s18 = sshll.u32 %s4208_s13, 9  ;;  %s3339_s22 = smul.u32 288, %s4208_s13 }
   0xf   : > { %s3474_s21 = scalar_lea.vmem %s4199_s0, %s3018_s18 }
  0x10   : > { %v3351_v2 = vld [vmem:[%s3474_s21] sm:$0xff]   ;;  %v3353_v4 = vld [vmem:[%s3474_s21 + $0x8] sm:$0xff]   ;;  %v3355_v6 = vld [vmem:[%s3474_s21 + $0x10] sm:$0xff]   ;;  %s3639_s25 = scalar_lea.vmem %s4202_s3, %s3339_s22 }
  0x11   : > { %3151 = vmatprep.mubr.msk.bf16.mxu0 %vm365_vm0, %v3351_v2  ;;  %v3352_v3 = vld [vmem:[%s3474_s21 + $0x20] sm:$0xff]   ;;  %v3354_v5 = vld [vmem:[%s3474_s21 + $0x28] sm:$0xff]   ;;  %v3356_v7 = vld [vmem:[%s3474_s21 + $0x30] sm:$0xff]   ;;  %297 = vst.msk [vmem:[%s3639_s25 + $0xe8] sm:$0xf] %vm177_vm1, %v3423_v59 }
  0x12   : > { %3163 = vmatprep.mubr.msk.bf16.mxu1 %vm365_vm0, %v3352_v3  ;;  %3152 = vmatmul.mubr.msk.bf16.vlgmr.msra.gmra.mrb[0].mxu0 %vm365_vm0, %v3353_v4  ;;  %v3357_v8 = vld [vmem:[%s3474_s21 + $0x18] sm:$0xff]   ;;  %v3359_v10 = vld [vmem:[%s3474_s21 + $0x40] sm:$0xff]   ;;  %v3361_v12 = vld [vmem:[%s3474_s21 + $0x48] sm:$0xff]   ;;  %178 = vst.msk [vmem:[%s3639_s25] sm:$0xf] %vm177_vm1, %v3423_v59 }
  0x13   : > { %3164 = vmatmul.mubr.msk.bf16.vlgmr.msra.gmra.mrb[0].mxu1 %vm365_vm0, %v3354_v5  ;;  %3172 = vmatpush3.bf16.msra.mxu0 %v3455_v0  ;;  %v3358_v9 = vld [vmem:[%s3474_s21 + $0x38] sm:$0xff]   ;;  %v3360_v11 = vld [vmem:[%s3474_s21 + $0x60] sm:$0xff]   ;;  %v3362_v13 = vld [vmem:[%s3474_s21 + $0x68] sm:$0xff]   ;;  %185 = vst.msk [vmem:[%s3639_s25 + $0x8] sm:$0xf] %vm177_vm1, %v3423_v59 }
  0x14   : > { %3184 = vmatpush3.bf16.msra.mxu1 %v3455_v0  ;;  %3155 = vmatprep.mubr.msk.bf16.mxu0 %vm365_vm0, %v3355_v6  ;;  %v3363_v14 = vld [vmem:[%s3474_s21 + $0x50] sm:$0xff]   ;;  %v3365_v16 = vld [vmem:[%s3474_s21 + $0x58] sm:$0xff]   ;;  %v3367_v18 = vld [vmem:[%s3474_s21 + $0x80] sm:$0xff]   ;;  %189 = vst.msk [vmem:[%s3639_s25 + $0x10] sm:$0xf] %vm177_vm1, %v3423_v59 }
  0x15   : > { %3167 = vmatprep.mubr.msk.bf16.mxu1 %vm365_vm0, %v3356_v7  ;;  %3173 = vmatprep.subr.bf16.mxu0 %v3460_v1  ;;  %v3364_v15 = vld [vmem:[%s3474_s21 + $0x70] sm:$0xff]   ;;  %v3366_v17 = vld [vmem:[%s3474_s21 + $0x78] sm:$0xff]   ;;  %v3368_v19 = vld [vmem:[%s3474_s21 + $0xa0] sm:$0xff]   ;;  %193 = vst.msk [vmem:[%s3639_s25 + $0x18] sm:$0xf] %vm177_vm1, %v3423_v59 }
  0x16   : > { %3185 = vmatprep.subr.bf16.mxu1 %v3460_v1  ;;  %v3369_v20 = vld [vmem:[%s3474_s21 + $0x88] sm:$0xff]   ;;  %v3371_v22 = vld [vmem:[%s3474_s21 + $0x90] sm:$0xff]   ;;  %v3373_v24 = vld [vmem:[%s3474_s21 + $0x98] sm:$0xff]   ;;  %197 = vst.msk [vmem:[%s3639_s25 + $0x20] sm:$0xf] %vm177_vm1, %v3423_v59 }
  0x17   : > { %3174 = vmatpush3.bf16.msra.mxu0 %v3460_v1  ;;  %v3370_v21 = vld [vmem:[%s3474_s21 + $0xa8] sm:$0xff]   ;;  %v3372_v23 = vld [vmem:[%s3474_s21 + $0xb0] sm:$0xff]   ;;  %v3374_v25 = vld [vmem:[%s3474_s21 + $0xb8] sm:$0xff]   ;;  %201 = vst.msk [vmem:[%s3639_s25 + $0x28] sm:$0xf] %vm177_vm1, %v3423_v59 }
  0x18   : > { %3186 = vmatpush3.bf16.msra.mxu1 %v3460_v1  ;;  %3195 = vmatprep.subr.bf16.mxu0 %v3455_v0  ;;  %v3375_v26 = vld [vmem:[%s3474_s21 + $0xc0] sm:$0xff]   ;;  %v3377_v28 = vld [vmem:[%s3474_s21 + $0xc8] sm:$0xff]   ;;  %v3379_v30 = vld [vmem:[%s3474_s21 + $0xd0] sm:$0xff]   ;;  %205 = vst.msk [vmem:[%s3639_s25 + $0x30] sm:$0xf] %vm177_vm1, %v3423_v59 }
  0x19   : > { %3207 = vmatprep.subr.bf16.mxu1 %v3455_v0  ;;  %v3376_v27 = vld [vmem:[%s3474_s21 + $0xe0] sm:$0xff]   ;;  %v3378_v29 = vld [vmem:[%s3474_s21 + $0xe8] sm:$0xff]   ;;  %v3380_v31 = vld [vmem:[%s3474_s21 + $0xf0] sm:$0xff]   ;;  %209 = vst.msk [vmem:[%s3639_s25 + $0x38] sm:$0xf] %vm177_vm1, %v3423_v59 }
  0x1a   : > { %3156 = vmatmul.mubr.msk.bf16.gmra.mrb[4].mxu0 %vm365_vm0, %v3357_v8  ;;  %v3381_v32 = vld [vmem:[%s3474_s21 + $0xd8] sm:$0xff]   ;;  %v3383_v34 = vld [vmem:[%s3474_s21 + $0x100] sm:$0xff]   ;;  %v3385_v36 = vld [vmem:[%s3474_s21 + $0x108] sm:$0xff]   ;;  %213 = vst.msk [vmem:[%s3639_s25 + $0x40] sm:$0xf] %vm177_vm1, %v3423_v59 }
  0x1b   : > { %3168 = vmatmul.mubr.msk.bf16.gmra.mrb[4].mxu1 %vm365_vm0, %v3358_v9  ;;  %3175 = vmatprep.mubr.msk.bf16.mxu0 %vm365_vm0, %v3359_v10  ;;  %v3382_v33 = vld [vmem:[%s3474_s21 + $0xf8] sm:$0xff]   ;;  %v3384_v35 = vld [vmem:[%s3474_s21 + $0x120] sm:$0xff]   ;;  %v3386_v37 = vld [vmem:[%s3474_s21 + $0x128] sm:$0xff]   ;;  %217 = vst.msk [vmem:[%s3639_s25 + $0x48] sm:$0xf] %vm177_vm1, %v3423_v59 }
  0x1c   : > { %3187 = vmatprep.mubr.msk.bf16.mxu1 %vm365_vm0, %v3360_v11  ;;  %v3387_v38 = vld [vmem:[%s3474_s21 + $0x110] sm:$0xff]   ;;  %v3389_v40 = vld [vmem:[%s3474_s21 + $0x118] sm:$0xff]   ;;  %v3391_v42 = vld [vmem:[%s3474_s21 + $0x140] sm:$0xff]   ;;  %221 = vst.msk [vmem:[%s3639_s25 + $0x50] sm:$0xf] %vm177_vm1, %v3423_v59 }
  0x1d   : > { %v3388_v39 = vld [vmem:[%s3474_s21 + $0x130] sm:$0xff]   ;;  %v3390_v41 = vld [vmem:[%s3474_s21 + $0x138] sm:$0xff]   ;;  %v3392_v43 = vld [vmem:[%s3474_s21 + $0x160] sm:$0xff]   ;;  %225 = vst.msk [vmem:[%s3639_s25 + $0x58] sm:$0xf] %vm177_vm1, %v3423_v59 }
  0x1e   : > { %v3393_v44 = vld [vmem:[%s3474_s21 + $0x148] sm:$0xff]   ;;  %v3395_v46 = vld [vmem:[%s3474_s21 + $0x150] sm:$0xff]   ;;  %v3397_v48 = vld [vmem:[%s3474_s21 + $0x158] sm:$0xff]   ;;  %229 = vst.msk [vmem:[%s3639_s25 + $0x60] sm:$0xf] %vm177_vm1, %v3423_v59 }
  0x1f   : > { %v3394_v45 = vld [vmem:[%s3474_s21 + $0x168] sm:$0xff]   ;;  %v3396_v47 = vld [vmem:[%s3474_s21 + $0x170] sm:$0xff]   ;;  %v3398_v49 = vld [vmem:[%s3474_s21 + $0x178] sm:$0xff]   ;;  %233 = vst.msk [vmem:[%s3639_s25 + $0x68] sm:$0xf] %vm177_vm1, %v3423_v59 }
  0x20   : > { %v3399_v50 = vld [vmem:[%s3474_s21 + $0x180] sm:$0xff]   ;;  %v3401_v52 = vld [vmem:[%s3474_s21 + $0x188] sm:$0xff]   ;;  %v3403_v54 = vld [vmem:[%s3474_s21 + $0x190] sm:$0xff]   ;;  %237 = vst.msk [vmem:[%s3639_s25 + $0x70] sm:$0xf] %vm177_vm1, %v3423_v59 }
  0x21   : > { %v3400_v51 = vld [vmem:[%s3474_s21 + $0x1a0] sm:$0xff]   ;;  %v3402_v53 = vld [vmem:[%s3474_s21 + $0x1a8] sm:$0xff]   ;;  %v3404_v55 = vld [vmem:[%s3474_s21 + $0x1b0] sm:$0xff]   ;;  %241 = vst.msk [vmem:[%s3639_s25 + $0x78] sm:$0xf] %vm177_vm1, %v3423_v59 }
  0x22   : > { %3176 = vmatmul.mubr.msk.bf16.vlgmr.msra.gmra.mrb[8].mxu0 %vm365_vm0, %v3361_v12  ;;  %v3405_v56 = vld [vmem:[%s3474_s21 + $0x198] sm:$0xff]   ;;  %v3407_v58 = vld [vmem:[%s3474_s21 + $0x1c0] sm:$0xff]   ;;  %245 = vst.msk [vmem:[%s3639_s25 + $0x80] sm:$0xf] %vm177_vm1, %v3423_v59  ;;  %249 = vst.msk [vmem:[%s3639_s25 + $0x88] sm:$0xf] %vm177_vm1, %v3423_v59 }
  0x23   : > { %3188 = vmatmul.mubr.msk.bf16.vlgmr.msra.gmra.mrb[8].mxu1 %vm365_vm0, %v3362_v13  ;;  %3196 = vmatpush3.bf16.msra.mxu0 %v3455_v0  ;;  %v3406_v57 = vld [vmem:[%s3474_s21 + $0x1b8] sm:$0xff]   ;;  %253 = vst.msk [vmem:[%s3639_s25 + $0x90] sm:$0xf] %vm177_vm1, %v3423_v59  ;;  %257 = vst.msk [vmem:[%s3639_s25 + $0x98] sm:$0xf] %vm177_vm1, %v3423_v59  ;;  %v3408_v60 = vld [vmem:[%s3474_s21 + $0x1e0] sm:$0xff]  }
  0x24   : > { %3208 = vmatpush3.bf16.msra.mxu1 %v3455_v0  ;;  %3179 = vmatprep.mubr.msk.bf16.mxu0 %vm365_vm0, %v3363_v14  ;;  %261 = vst.msk [vmem:[%s3639_s25 + $0xa0] sm:$0xf] %vm177_vm1, %v3423_v59  ;;  %265 = vst.msk [vmem:[%s3639_s25 + $0xa8] sm:$0xf] %vm177_vm1, %v3423_v59  ;;  %v3409_v61 = vld [vmem:[%s3474_s21 + $0x1c8] sm:$0xff]   ;;  %v3411_v63 = vld [vmem:[%s3474_s21 + $0x1d0] sm:$0xff]  }
  0x25   : > { %3191 = vmatprep.mubr.msk.bf16.mxu1 %vm365_vm0, %v3364_v15  ;;  %3197 = vmatprep.subr.bf16.mxu0 %v3460_v1  ;;  %269 = vst.msk [vmem:[%s3639_s25 + $0xb0] sm:$0xf] %vm177_vm1, %v3423_v59  ;;  %273 = vst.msk [vmem:[%s3639_s25 + $0xb8] sm:$0xf] %vm177_vm1, %v3423_v59  ;;  %v3410_v62 = vld [vmem:[%s3474_s21 + $0x1e8] sm:$0xff]   ;;  %v3414_v2 = vld [vmem:[%s3474_s21 + $0x1f8] sm:$0xff]  }
  0x26   : > { %3209 = vmatprep.subr.bf16.mxu1 %v3460_v1  ;;  %277 = vst.msk [vmem:[%s3639_s25 + $0xc0] sm:$0xf] %vm177_vm1, %v3423_v59  ;;  %281 = vst.msk [vmem:[%s3639_s25 + $0xc8] sm:$0xf] %vm177_vm1, %v3423_v59  ;;  %v262_v3 = vld [vmem:[%s3639_s25 + $0xa4] sm:$0x1] }
  0x27   : > { %3198 = vmatpush3.bf16.msra.mxu0 %v3460_v1  ;;  %285 = vst.msk [vmem:[%s3639_s25 + $0xd0] sm:$0xf] %vm177_vm1, %v3423_v59  ;;  %289 = vst.msk [vmem:[%s3639_s25 + $0xd8] sm:$0xf] %vm177_vm1, %v3423_v59  ;;  %v263_v5 = vsel %vm3741_vm4, 0, %v262_v3 }
  0x28   : > { %3210 = vmatpush3.bf16.msra.mxu1 %v3460_v1  ;;  %3219 = vmatprep.subr.bf16.mxu0 %v3455_v0  ;;  %293 = vst.msk [vmem:[%s3639_s25 + $0xe0] sm:$0xf] %vm177_vm1, %v3423_v59  ;;  %301 = vst.msk [vmem:[%s3639_s25 + $0xf0] sm:$0xf] %vm177_vm1, %v3423_v59  ;;  %v254_v6 = vld [vmem:[%s3639_s25 + $0x94] sm:$0x1] }
  0x29   : > { %3231 = vmatprep.subr.bf16.mxu1 %v3455_v0  ;;  %305 = vst.msk [vmem:[%s3639_s25 + $0xf8] sm:$0xf] %vm177_vm1, %v3423_v59  ;;  %309 = vst.msk [vmem:[%s3639_s25 + $0x100] sm:$0xf] %vm177_vm1, %v3423_v59  ;;  %v255_v7 = vsel %vm3741_vm4, 0, %v254_v6 }
  0x2a   : > { %3180 = vmatmul.mubr.msk.bf16.gmra.mrb[12].mxu0 %vm365_vm0, %v3365_v16  ;;  %313 = vst.msk [vmem:[%s3639_s25 + $0x108] sm:$0xf] %vm177_vm1, %v3423_v59  ;;  %317 = vst.msk [vmem:[%s3639_s25 + $0x110] sm:$0xf] %vm177_vm1, %v3423_v59  ;;  %v266_v8 = vld [vmem:[%s3639_s25 + $0xac] sm:$0x1] }
  0x2b   : > { %3192 = vmatmul.mubr.msk.bf16.gmra.mrb[12].mxu1 %vm365_vm0, %v3366_v17  ;;  %3199 = vmatprep.mubr.msk.bf16.mxu0 %vm365_vm0, %v3367_v18  ;;  %321 = vst.msk [vmem:[%s3639_s25 + $0x118] sm:$0xf] %vm177_vm1, %v3423_v59  ;;  %264 = vst [vmem:[%s3639_s25 + $0xa4] sm:$0x1] %v263_v5  ;;  %v267_v9 = vsel %vm3741_vm4, 0, %v266_v8 }
  0x2c   : > { %3211 = vmatprep.mubr.msk.bf16.mxu1 %vm365_vm0, %v3368_v19  ;;  %256 = vst [vmem:[%s3639_s25 + $0x94] sm:$0x1] %v255_v7  ;;  %v258_v10 = vld [vmem:[%s3639_s25 + $0x9c] sm:$0x1]  ;;  %268 = vst [vmem:[%s3639_s25 + $0xac] sm:$0x1] %v267_v9 }
  0x2d   : > { %v259_v11 = vsel %vm3741_vm4, 0, %v258_v10  ;;  %v182_v12 = vld [vmem:[%s3639_s25 + $0x4] sm:$0x1]  ;;  %v218_v13 = vld [vmem:[%s3639_s25 + $0x4c] sm:$0x1] }
  0x2e   : > { %v222_v14 = vld [vmem:[%s3639_s25 + $0x54] sm:$0x1]  ;;  %v226_v15 = vld [vmem:[%s3639_s25 + $0x5c] sm:$0x1]  ;;  %260 = vst [vmem:[%s3639_s25 + $0x9c] sm:$0x1] %v259_v11 }
  0x2f   : > { %v230_v16 = vld [vmem:[%s3639_s25 + $0x64] sm:$0x1]  ;;  %v234_v17 = vld [vmem:[%s3639_s25 + $0x6c] sm:$0x1]  ;;  %v238_v18 = vld [vmem:[%s3639_s25 + $0x74] sm:$0x1] }
  0x30   : > { %v242_v19 = vld [vmem:[%s3639_s25 + $0x7c] sm:$0x1]  ;;  %v198_v10 = vld [vmem:[%s3639_s25 + $0x24] sm:$0x1] }
  0x32   : > { %3200 = vmatmul.mubr.msk.bf16.vlgmr.msra.gmra.mrb[16].mxu0 %vm365_vm0, %v3369_v20  ;;  %v246_v20 = vld [vmem:[%s3639_s25 + $0x84] sm:$0x1] }
  0x33   : > { %3212 = vmatmul.mubr.msk.bf16.vlgmr.msra.gmra.mrb[16].mxu1 %vm365_vm0, %v3370_v21  ;;  %3220 = vmatpush3.bf16.msra.mxu0 %v3455_v0  ;;  %v250_v21 = vld [vmem:[%s3639_s25 + $0x8c] sm:$0x1] }
  0x34   : > { %3232 = vmatpush3.bf16.msra.mxu1 %v3455_v0  ;;  %3203 = vmatprep.mubr.msk.bf16.mxu0 %vm365_vm0, %v3371_v22  ;;  %v286_v22 = vld [vmem:[%s3639_s25 + $0xd4] sm:$0x1] }
  0x35   : > { %3215 = vmatprep.mubr.msk.bf16.mxu1 %vm365_vm0, %v3372_v23  ;;  %3221 = vmatprep.subr.bf16.mxu0 %v3460_v1  ;;  %v290_v23 = vld [vmem:[%s3639_s25 + $0xdc] sm:$0x1] }
  0x36   : > { %3233 = vmatprep.subr.bf16.mxu1 %v3460_v1 }
  0x37   : > { %3222 = vmatpush3.bf16.msra.mxu0 %v3460_v1 }
  0x38   : > { %3234 = vmatpush3.bf16.msra.mxu1 %v3460_v1  ;;  %3243 = vmatprep.subr.bf16.mxu0 %v3455_v0 }
  0x39   : > { %3255 = vmatprep.subr.bf16.mxu1 %v3455_v0 }
  0x3a   : > { %3204 = vmatmul.mubr.msk.bf16.gmra.mrb[20].mxu0 %vm365_vm0, %v3373_v24  ;;  %v294_v24 = vld [vmem:[%s3639_s25 + $0xe4] sm:$0x1] }
  0x3b   : > { %3216 = vmatmul.mubr.msk.bf16.gmra.mrb[20].mxu1 %vm365_vm0, %v3374_v25  ;;  %3223 = vmatprep.mubr.msk.bf16.mxu0 %vm365_vm0, %v3375_v26  ;;  %v298_v25 = vld [vmem:[%s3639_s25 + $0xec] sm:$0x1]  ;;  %v302_v26 = vld [vmem:[%s3639_s25 + $0xf4] sm:$0x1] }
  0x3c   : > { %3235 = vmatprep.mubr.msk.bf16.mxu1 %vm365_vm0, %v3376_v27  ;;  %v306_v27 = vld [vmem:[%s3639_s25 + $0xfc] sm:$0x1] }
  0x42   : > { %3224 = vmatmul.mubr.msk.bf16.vlgmr.msra.gmra.mrb[24].mxu0 %vm365_vm0, %v3377_v28  ;;  %v278_v28 = vld [vmem:[%s3639_s25 + $0xc4] sm:$0x1] }
  0x43   : > { %3236 = vmatmul.mubr.msk.bf16.vlgmr.msra.gmra.mrb[24].mxu1 %vm365_vm0, %v3378_v29  ;;  %3244 = vmatpush3.bf16.msra.mxu0 %v3455_v0  ;;  %v310_v29 = vld [vmem:[%s3639_s25 + $0x104] sm:$0x1] }
  0x44   : > { %3256 = vmatpush3.bf16.msra.mxu1 %v3455_v0  ;;  %3227 = vmatprep.mubr.msk.bf16.mxu0 %vm365_vm0, %v3379_v30  ;;  %v314_v30 = vld [vmem:[%s3639_s25 + $0x10c] sm:$0x1] }
  0x45   : > { %3239 = vmatprep.mubr.msk.bf16.mxu1 %vm365_vm0, %v3380_v31  ;;  %3245 = vmatprep.subr.bf16.mxu0 %v3460_v1  ;;  %v279_v31 = vsel %vm3741_vm4, 0, %v278_v28 }
  0x46   : > { %3257 = vmatprep.subr.bf16.mxu1 %v3460_v1  ;;  %280 = vst [vmem:[%s3639_s25 + $0xc4] sm:$0x1] %v279_v31  ;;  %v206_v31 = vld [vmem:[%s3639_s25 + $0x34] sm:$0x1] }
  0x47   : > { %3246 = vmatpush3.bf16.msra.mxu0 %v3460_v1 }
  0x48   : > { %3258 = vmatpush3.bf16.msra.mxu1 %v3460_v1  ;;  %3267 = vmatprep.subr.bf16.mxu0 %v3455_v0 }
  0x49   : > { %3279 = vmatprep.subr.bf16.mxu1 %v3455_v0 }
  0x4a   : > { %3228 = vmatmul.mubr.msk.bf16.gmra.mrb[28].mxu0 %vm365_vm0, %v3381_v32  ;;  %v318_v32 = vld [vmem:[%s3639_s25 + $0x114] sm:$0x1] }
  0x4b   : > { %3240 = vmatmul.mubr.msk.bf16.gmra.mrb[28].mxu1 %vm365_vm0, %v3382_v33  ;;  %3247 = vmatprep.mubr.msk.bf16.mxu0 %vm365_vm0, %v3383_v34  ;;  %v183_v33 = vsel %vm3741_vm4, 0, %v182_v12  ;;  %v219_v34 = vsel %vm3741_vm4, 0, %v218_v13  ;;  %v199_v13 = vsel %vm3741_vm4, 0, %v198_v10 }
  0x4c   : > { %3259 = vmatprep.mubr.msk.bf16.mxu1 %vm365_vm0, %v3384_v35  ;;  %v223_v35 = vsel %vm3741_vm4, 0, %v222_v14  ;;  %184 = vst [vmem:[%s3639_s25 + $0x4] sm:$0x1] %v183_v33  ;;  %220 = vst [vmem:[%s3639_s25 + $0x4c] sm:$0x1] %v219_v34 }
  0x4d   : > { %224 = vst [vmem:[%s3639_s25 + $0x54] sm:$0x1] %v223_v35  ;;  %v190_v14 = vld [vmem:[%s3639_s25 + $0x14] sm:$0x1]  ;;  %200 = vst [vmem:[%s3639_s25 + $0x24] sm:$0x1] %v199_v13 }
  0x52   : > { %3248 = vmatmul.mubr.msk.bf16.vlgmr.msra.gmra.mrb[32].mxu0 %vm365_vm0, %v3385_v36  ;;  %v227_v36 = vsel %vm3741_vm4, 0, %v226_v15 }
  0x53   : > { %3260 = vmatmul.mubr.msk.bf16.vlgmr.msra.gmra.mrb[32].mxu1 %vm365_vm0, %v3386_v37  ;;  %3268 = vmatpush3.bf16.msra.mxu0 %v3455_v0  ;;  %v322_v37 = vld [vmem:[%s3639_s25 + $0x11c] sm:$0x1]  ;;  %228 = vst [vmem:[%s3639_s25 + $0x5c] sm:$0x1] %v227_v36  ;;  %v207_v36 = vsel %vm3741_vm4, 0, %v206_v31 }
  0x54   : > { %3280 = vmatpush3.bf16.msra.mxu1 %v3455_v0  ;;  %3251 = vmatprep.mubr.msk.bf16.mxu0 %vm365_vm0, %v3387_v38  ;;  %v231_v38 = vsel %vm3741_vm4, 0, %v230_v16  ;;  %v191_v16 = vsel %vm3741_vm4, 0, %v190_v14  ;;  %208 = vst [vmem:[%s3639_s25 + $0x34] sm:$0x1] %v207_v36 }
  0x55   : > { %3263 = vmatprep.mubr.msk.bf16.mxu1 %vm365_vm0, %v3388_v39  ;;  %3269 = vmatprep.subr.bf16.mxu0 %v3460_v1  ;;  %v235_v39 = vsel %vm3741_vm4, 0, %v234_v17  ;;  %232 = vst [vmem:[%s3639_s25 + $0x64] sm:$0x1] %v231_v38  ;;  %v210_v17 = vld [vmem:[%s3639_s25 + $0x3c] sm:$0x1] }
  0x56   : > { %3281 = vmatprep.subr.bf16.mxu1 %v3460_v1  ;;  %236 = vst [vmem:[%s3639_s25 + $0x6c] sm:$0x1] %v235_v39  ;;  %192 = vst [vmem:[%s3639_s25 + $0x14] sm:$0x1] %v191_v16 }
  0x57   : > { %3270 = vmatpush3.bf16.msra.mxu0 %v3460_v1 }
  0x58   : > { %3282 = vmatpush3.bf16.msra.mxu1 %v3460_v1  ;;  %3291 = vmatprep.subr.bf16.mxu0 %v3455_v0 }
  0x59   : > { %3303 = vmatprep.subr.bf16.mxu1 %v3455_v0 }
  0x5a   : > { %3252 = vmatmul.mubr.msk.bf16.gmra.mrb[36].mxu0 %vm365_vm0, %v3389_v40  ;;  %v239_v40 = vsel %vm3741_vm4, 0, %v238_v18  ;;  %v211_v18 = vsel %vm3741_vm4, 0, %v210_v17 }
  0x5b   : > { %3264 = vmatmul.mubr.msk.bf16.gmra.mrb[36].mxu1 %vm365_vm0, %v3390_v41  ;;  %3271 = vmatprep.mubr.msk.bf16.mxu0 %vm365_vm0, %v3391_v42  ;;  %v243_v41 = vsel %vm3741_vm4, 0, %v242_v19  ;;  %v247_v42 = vsel %vm3741_vm4, 0, %v246_v20  ;;  %240 = vst [vmem:[%s3639_s25 + $0x74] sm:$0x1] %v239_v40  ;;  %212 = vst [vmem:[%s3639_s25 + $0x3c] sm:$0x1] %v211_v18 }
  0x5c   : > { %3283 = vmatprep.mubr.msk.bf16.mxu1 %vm365_vm0, %v3392_v43  ;;  %v251_v43 = vsel %vm3741_vm4, 0, %v250_v21  ;;  %244 = vst [vmem:[%s3639_s25 + $0x7c] sm:$0x1] %v243_v41  ;;  %248 = vst [vmem:[%s3639_s25 + $0x84] sm:$0x1] %v247_v42 }
  0x5d   : > { %252 = vst [vmem:[%s3639_s25 + $0x8c] sm:$0x1] %v251_v43  ;;  %v3891_v41 = vld [vmem:[%s4201_s2] ss:$0 sm:$0xff] }
  0x62   : > { %3272 = vmatmul.mubr.msk.bf16.vlgmr.msra.gmra.mrb[40].mxu0 %vm365_vm0, %v3393_v44  ;;  %v287_v44 = vsel %vm3741_vm4, 0, %v286_v22  ;;  %v202_v22 = vld [vmem:[%s3639_s25 + $0x2c] sm:$0x1] }
  0x63   : > { %3284 = vmatmul.mubr.msk.bf16.vlgmr.msra.gmra.mrb[40].mxu1 %vm365_vm0, %v3394_v45  ;;  %3292 = vmatpush3.bf16.msra.mxu0 %v3455_v0  ;;  %v291_v45 = vsel %vm3741_vm4, 0, %v290_v23  ;;  %288 = vst [vmem:[%s3639_s25 + $0xd4] sm:$0x1] %v287_v44 }
  0x64   : > { %3304 = vmatpush3.bf16.msra.mxu1 %v3455_v0  ;;  %3275 = vmatprep.mubr.msk.bf16.mxu0 %vm365_vm0, %v3395_v46  ;;  %v295_v46 = vsel %vm3741_vm4, 0, %v294_v24  ;;  %292 = vst [vmem:[%s3639_s25 + $0xdc] sm:$0x1] %v291_v45 }
  0x65   : > { %3287 = vmatprep.mubr.msk.bf16.mxu1 %vm365_vm0, %v3396_v47  ;;  %3293 = vmatprep.subr.bf16.mxu0 %v3460_v1  ;;  %v299_v47 = vsel %vm3741_vm4, 0, %v298_v25  ;;  %296 = vst [vmem:[%s3639_s25 + $0xe4] sm:$0x1] %v295_v46 }
  0x66   : > { %3305 = vmatprep.subr.bf16.mxu1 %v3460_v1  ;;  %300 = vst [vmem:[%s3639_s25 + $0xec] sm:$0x1] %v299_v47 }
  0x67   : > { %3294 = vmatpush3.bf16.msra.mxu0 %v3460_v1 }
  0x68   : > { %3306 = vmatpush3.bf16.msra.mxu1 %v3460_v1  ;;  %3315 = vmatprep.subr.bf16.mxu0 %v3455_v0 }
  0x69   : > { %3327 = vmatprep.subr.bf16.mxu1 %v3455_v0 }
  0x6a   : > { %3276 = vmatmul.mubr.msk.bf16.gmra.mrb[44].mxu0 %vm365_vm0, %v3397_v48  ;;  %v303_v48 = vsel %vm3741_vm4, 0, %v302_v26  ;;  %v203_v26 = vsel %vm3741_vm4, 0, %v202_v22 }
  0x6b   : > { %3288 = vmatmul.mubr.msk.bf16.gmra.mrb[44].mxu1 %vm365_vm0, %v3398_v49  ;;  %3295 = vmatprep.mubr.msk.bf16.mxu0 %vm365_vm0, %v3399_v50  ;;  %v307_v49 = vsel %vm3741_vm4, 0, %v306_v27  ;;  %v311_v50 = vsel %vm3741_vm4, 0, %v310_v29  ;;  %304 = vst [vmem:[%s3639_s25 + $0xf4] sm:$0x1] %v303_v48  ;;  %204 = vst [vmem:[%s3639_s25 + $0x2c] sm:$0x1] %v203_v26 }
  0x6c   : > { %3307 = vmatprep.mubr.msk.bf16.mxu1 %vm365_vm0, %v3400_v51  ;;  %v315_v51 = vsel %vm3741_vm4, 0, %v314_v30  ;;  %308 = vst [vmem:[%s3639_s25 + $0xfc] sm:$0x1] %v307_v49  ;;  %312 = vst [vmem:[%s3639_s25 + $0x104] sm:$0x1] %v311_v50 }
  0x6d   : > { %316 = vst [vmem:[%s3639_s25 + $0x10c] sm:$0x1] %v315_v51  ;;  %v214_v30 = vld [vmem:[%s3639_s25 + $0x44] sm:$0x1] }
  0x6e   : > { %v215_v34 = vsel %vm3741_vm4, 0, %v214_v30 }
  0x6f   : > { %216 = vst [vmem:[%s3639_s25 + $0x44] sm:$0x1] %v215_v34 }
  0x72   : > { %3296 = vmatmul.mubr.msk.bf16.vlgmr.msra.gmra.mrb[48].mxu0 %vm365_vm0, %v3401_v52  ;;  %v319_v52 = vsel %vm3741_vm4, 0, %v318_v32 }
  0x73   : > { %3308 = vmatmul.mubr.msk.bf16.vlgmr.msra.gmra.mrb[48].mxu1 %vm365_vm0, %v3402_v53  ;;  %3316 = vmatpush3.bf16.msra.mxu0 %v3455_v0  ;;  %v323_v53 = vsel %vm3741_vm4, 0, %v322_v37  ;;  %320 = vst [vmem:[%s3639_s25 + $0x114] sm:$0x1] %v319_v52 }
  0x74   : > { %3328 = vmatpush3.bf16.msra.mxu1 %v3455_v0  ;;  %3299 = vmatprep.mubr.msk.bf16.mxu0 %vm365_vm0, %v3403_v54  ;;  %v3412_v0 = vld [vmem:[%s3474_s21 + $0x1f0] sm:$0xff]   ;;  %324 = vst [vmem:[%s3639_s25 + $0x11c] sm:$0x1] %v323_v53 }
  0x75   : > { %3311 = vmatprep.mubr.msk.bf16.mxu1 %vm365_vm0, %v3404_v55  ;;  %3317 = vmatprep.subr.bf16.mxu0 %v3460_v1  ;;  %v270_v54 = vld [vmem:[%s3639_s25 + $0xb4] sm:$0x1] }
  0x76   : > { %3329 = vmatprep.subr.bf16.mxu1 %v3460_v1  ;;  %v271_v55 = vsel %vm3741_vm4, 0, %v270_v54 }
  0x77   : > { %3318 = vmatpush3.bf16.msra.mxu0 %v3460_v1  ;;  %272 = vst [vmem:[%s3639_s25 + $0xb4] sm:$0x1] %v271_v55 }
  0x78   : > { %3330 = vmatpush3.bf16.msra.mxu1 %v3460_v1  ;;  %v3413_v1 = vld [vmem:[%s3474_s21 + $0x1d8] sm:$0xff]  }
  0x7a   : > { %3300 = vmatmul.mubr.msk.bf16.gmra.mrb[52].mxu0 %vm365_vm0, %v3405_v56  ;;  %v282_v56 = vld [vmem:[%s3639_s25 + $0xcc] sm:$0x1] }
  0x7b   : > { %3312 = vmatmul.mubr.msk.bf16.gmra.mrb[52].mxu1 %vm365_vm0, %v3406_v57  ;;  %3319 = vmatprep.mubr.msk.bf16.mxu0 %vm365_vm0, %v3407_v58  ;;  %v283_v57 = vsel %vm3741_vm4, 0, %v282_v56  ;;  %v274_v58 = vld [vmem:[%s3639_s25 + $0xbc] sm:$0x1] }
  0x7c   : > { %3331 = vmatprep.mubr.msk.bf16.mxu1 %vm365_vm0, %v3408_v60  ;;  %284 = vst [vmem:[%s3639_s25 + $0xcc] sm:$0x1] %v283_v57  ;;  %v275_v59 = vsel %vm3741_vm4, 0, %v274_v58  ;;  %v194_v60 = vld [vmem:[%s3639_s25 + $0x1c] sm:$0x1] }
  0x7d   : > { %276 = vst [vmem:[%s3639_s25 + $0xbc] sm:$0x1] %v275_v59 }
  0x82   : > { %3320 = vmatmul.mubr.msk.bf16.vlgmr.msra.gmra.mrb[56].mxu0 %vm365_vm0, %v3409_v61  ;;  %v195_v61 = vsel %vm3741_vm4, 0, %v194_v60 }
  0x83   : > { %3332 = vmatmul.mubr.msk.bf16.vlgmr.msra.gmra.mrb[56].mxu1 %vm365_vm0, %v3410_v62  ;;  %3323 = vmatprep.mubr.msk.bf16.mxu0 %vm365_vm0, %v3411_v63  ;;  %196 = vst [vmem:[%s3639_s25 + $0x1c] sm:$0x1] %v195_v61 }
  0x84   : > { %3335 = vmatprep.mubr.msk.bf16.mxu1 %vm365_vm0, %v3412_v0 }
  0x8a   : > { %3324 = vmatmul.mubr.msk.bf16.gmra.mrb[60].mxu0 %vm365_vm0, %v3413_v1  ;;  %v186_v1 = vld [vmem:[%s3639_s25 + $0xc] sm:$0x1] }
  0x8b   : > { %3336 = vmatmul.mubr.msk.bf16.gmra.mrb[60].mxu1 %vm365_vm0, %v3414_v2  ;;  %v187_v6 = vsel %vm3741_vm4, 0, %v186_v1 }
  0x8c   : > { %188 = vst [vmem:[%s3639_s25 + $0xc] sm:$0x1] %v187_v6 }
  0xe5   : > { %v3153_v62 = vpop.f32.mrb[0].mxu0 }
  0xe6   : > { %v3165_v63 = vpop.f32.mrb[0].mxu1  ;;  %v412_v0 = vpop.f32.mrb[1].mxu0 }
  0xe7   : > { %v551_v2 = vmax.f32 %v3153_v62, %v3165_v63  ;;  %v518_v3 = vpop.f32.mrb[1].mxu1  ;;  %v3154_v5 = vpop.f32.mrb[2].mxu0 }
  0xe8   : > { %v549_v7 = vmax.f32 %v412_v0, %v518_v3  ;;  %v3166_v8 = vpop.f32.mrb[2].mxu1  ;;  %v415_v9 = vpop.f32.mrb[3].mxu0 }
  0xe9   : > { %v552_v11 = vmax.f32 %v3154_v5, %v3166_v8  ;;  %v521_v12 = vpop.f32.mrb[3].mxu1 }
  0xea   : > { %v550_v15 = vmax.f32 %v415_v9, %v521_v12 }
  0xed   : > { %v3157_v19 = vpop.f32.mrb[4].mxu0 }
  0xee   : > { %v3169_v20 = vpop.f32.mrb[4].mxu1  ;;  %v428_v21 = vpop.f32.mrb[5].mxu0 }
  0xef   : > { %v555_v23 = vmax.f32 %v3157_v19, %v3169_v20  ;;  %v534_v24 = vpop.f32.mrb[5].mxu1  ;;  %v3158_v25 = vpop.f32.mrb[6].mxu0 }
  0xf0   : > { %v553_v27 = vmax.f32 %v428_v21, %v534_v24  ;;  %v3170_v28 = vpop.f32.mrb[6].mxu1  ;;  %v431_v29 = vpop.f32.mrb[7].mxu0 }
  0xf1   : > { %v556_v32 = vmax.f32 %v3158_v25, %v3170_v28  ;;  %v537_v33 = vpop.f32.mrb[7].mxu1 }
  0xf2   : > { %v554_v35 = vmax.f32 %v431_v29, %v537_v33 }
  0xf5   : > { %v3177_v37 = vpop.f32.mrb[8].mxu0 }
  0xf6   : > { %v665_v38 = vmax.f32 %v551_v2, %v3177_v37  ;;  %v3189_v39 = vpop.f32.mrb[8].mxu1  ;;  %v632_v40 = vpop.f32.mrb[9].mxu0 }
  0xf7   : > { %v663_v42 = vmax.f32 %v549_v7, %v632_v40  ;;  %v746_v43 = vpop.f32.mrb[9].mxu1  ;;  %v3178_v44 = vpop.f32.mrb[10].mxu0 }
  0xf8   : > { %v779_v45 = vmax.f32 %v665_v38, %v3189_v39  ;;  %v666_v46 = vmax.f32 %v552_v11, %v3178_v44  ;;  %v3190_v47 = vpop.f32.mrb[10].mxu1  ;;  %v635_v48 = vpop.f32.mrb[11].mxu0 }
  0xf9   : > { %v777_v49 = vmax.f32 %v663_v42, %v746_v43  ;;  %v664_v50 = vmax.f32 %v550_v15, %v635_v48  ;;  %v749_v51 = vpop.f32.mrb[11].mxu1 }
  0xfa   : > { %v793_v52 = vadd.f32 %v3891_v41, %v779_v45  ;;  %v780_v53 = vmax.f32 %v666_v46, %v3190_v47 }
  0xfb   : > { %v791_v54 = vadd.f32 %v3891_v41, %v777_v49  ;;  %v778_v55 = vmax.f32 %v664_v50, %v749_v51 }
  0xfc   : > { %v801_v56 = vmax.f32 %v793_v52, 0.0  ;;  %v794_v57 = vadd.f32 %v3891_v41, %v780_v53 }
  0xfd   : > { %v799_v58 = vmax.f32 %v791_v54, 0.0  ;;  %v792_v59 = vadd.f32 %v3891_v41, %v778_v55  ;;  %v3181_v60 = vpop.f32.mrb[12].mxu0 }
  0xfe   : > { %v3021_v61 = vpack.c.bf16 %v801_v56, %v801_v56  ;;  %v802_v62 = vmax.f32 %v794_v57, 0.0  ;;  %v669_v63 = vmax.f32 %v555_v23, %v3181_v60  ;;  %v3193_v0 = vpop.f32.mrb[12].mxu1  ;;  %v648_v1 = vpop.f32.mrb[13].mxu0 }
  0xff   : > { %v3019_v2 = vpack.c.bf16 %v799_v58, %v799_v58  ;;  %v800_v3 = vmax.f32 %v792_v59, 0.0  ;;  %v667_v5 = vmax.f32 %v553_v27, %v648_v1  ;;  %v762_v6 = vpop.f32.mrb[13].mxu1  ;;  %v3182_v7 = vpop.f32.mrb[14].mxu0 }
 0x100   : > { %2722 = vst.msk [vmem:[%s3639_s25 + $0xe8] sm:$0xf] %vm177_vm1, %v3021_v61  ;;  %v3022_v8 = vpack.c.bf16 %v802_v62, %v802_v62  ;;  %v783_v9 = vmax.f32 %v669_v63, %v3193_v0  ;;  %v670_v10 = vmax.f32 %v556_v32, %v3182_v7  ;;  %v3194_v11 = vpop.f32.mrb[14].mxu1  ;;  %v651_v12 = vpop.f32.mrb[15].mxu0 }
 0x101   : > { %2720 = vst.msk [vmem:[%s3639_s25 + $0xd8] sm:$0xf] %vm177_vm1, %v3019_v2  ;;  %v3020_v13 = vpack.c.bf16 %v800_v3, %v800_v3  ;;  %v781_v14 = vmax.f32 %v667_v5, %v762_v6  ;;  %v668_v15 = vmax.f32 %v554_v35, %v651_v12  ;;  %v765_v16 = vpop.f32.mrb[15].mxu1 }
 0x102   : > { %2723 = vst.msk [vmem:[%s3639_s25 + $0xf0] sm:$0xf] %vm177_vm1, %v3022_v8  ;;  %v797_v17 = vadd.f32 %v3891_v41, %v783_v9  ;;  %v784_v18 = vmax.f32 %v670_v10, %v3194_v11 }
 0x103   : > { %2721 = vst.msk [vmem:[%s3639_s25 + $0xe0] sm:$0xf] %vm177_vm1, %v3020_v13  ;;  %v795_v19 = vadd.f32 %v3891_v41, %v781_v14  ;;  %v782_v20 = vmax.f32 %v668_v15, %v765_v16 }
 0x104   : > { %v805_v21 = vmax.f32 %v797_v17, 0.0  ;;  %v798_v22 = vadd.f32 %v3891_v41, %v784_v18 }
 0x105   : > { %v803_v23 = vmax.f32 %v795_v19, 0.0  ;;  %v796_v24 = vadd.f32 %v3891_v41, %v782_v20  ;;  %v3201_v25 = vpop.f32.mrb[16].mxu0 }
 0x106   : > { %v3025_v26 = vpack.c.bf16 %v805_v21, %v805_v21  ;;  %v806_v27 = vmax.f32 %v798_v22, 0.0  ;;  %v3213_v28 = vpop.f32.mrb[16].mxu1  ;;  %v923_v29 = vpop.f32.mrb[17].mxu0 }
 0x107   : > { %v3023_v30 = vpack.c.bf16 %v803_v23, %v803_v23  ;;  %v804_v31 = vmax.f32 %v796_v24, 0.0  ;;  %v1062_v32 = vmax.f32 %v3201_v25, %v3213_v28  ;;  %v1029_v33 = vpop.f32.mrb[17].mxu1  ;;  %v3202_v34 = vpop.f32.mrb[18].mxu0 }
 0x108   : > { %2726 = vst.msk [vmem:[%s3639_s25 + $0x108] sm:$0xf] %vm177_vm1, %v3025_v26  ;;  %v3026_v35 = vpack.c.bf16 %v806_v27, %v806_v27  ;;  %v1060_v36 = vmax.f32 %v923_v29, %v1029_v33  ;;  %v3214_v37 = vpop.f32.mrb[18].mxu1  ;;  %v926_v38 = vpop.f32.mrb[19].mxu0  ;;  %v2810_v33 = vld [vmem:[%s3639_s25 + $0xa4] sm:$0x1] }
 0x109   : > { %2724 = vst.msk [vmem:[%s3639_s25 + $0xf8] sm:$0xf] %vm177_vm1, %v3023_v30  ;;  %v3024_v39 = vpack.c.bf16 %v804_v31, %v804_v31  ;;  %v1063_v40 = vmax.f32 %v3202_v34, %v3214_v37  ;;  %v1032_v42 = vpop.f32.mrb[19].mxu1 }
 0x10a   : > { %2727 = vst.msk [vmem:[%s3639_s25 + $0x110] sm:$0xf] %vm177_vm1, %v3026_v35  ;;  %v1061_v43 = vmax.f32 %v926_v38, %v1032_v42  ;;  %v2802_v42 = vld [vmem:[%s3639_s25 + $0x94] sm:$0x1] }
 0x10b   : > { %2725 = vst.msk [vmem:[%s3639_s25 + $0x100] sm:$0xf] %vm177_vm1, %v3024_v39 }
 0x10d   : > { %v3205_v44 = vpop.f32.mrb[20].mxu0 }
 0x10e   : > { %v3217_v45 = vpop.f32.mrb[20].mxu1  ;;  %v939_v46 = vpop.f32.mrb[21].mxu0 }
 0x10f   : > { %v1066_v47 = vmax.f32 %v3205_v44, %v3217_v45  ;;  %v1045_v48 = vpop.f32.mrb[21].mxu1  ;;  %v3917_v49 = vpop.f32.mrb[22].mxu0 }
 0x110   : > { %v1064_v50 = vmax.f32 %v939_v46, %v1045_v48  ;;  %v3919_v51 = vpop.f32.mrb[22].mxu1  ;;  %v3921_v52 = vpop.f32.mrb[23].mxu0  ;;  %v2812_v48 = vld [vmem:[%s3639_s25 + $0xa8] sm:$0xf] }
 0x111   : > { %v1067_v53 = vmax.f32 %v3917_v49, %v3919_v51  ;;  %v3925_v54 = vpop.f32.mrb[23].mxu1 }
 0x112   : > { %v1065_v55 = vmax.f32 %v3921_v52, %v3925_v54  ;;  %v2824_v54 = vld [vmem:[%s3639_s25 + $0xc0] sm:$0xf] }
 0x115   : > { %v3225_v56 = vpop.f32.mrb[24].mxu0 }
 0x116   : > { %v1176_v57 = vmax.f32 %v1062_v32, %v3225_v56  ;;  %v3237_v58 = vpop.f32.mrb[24].mxu1  ;;  %v1143_v59 = vpop.f32.mrb[25].mxu0  ;;  %v2808_v32 = vld [vmem:[%s3639_s25 + $0xa0] sm:$0xf] }
 0x117   : > { %v1174_v60 = vmax.f32 %v1060_v36, %v1143_v59  ;;  %v1257_v61 = vpop.f32.mrb[25].mxu1  ;;  %v3226_v62 = vpop.f32.mrb[26].mxu0 }
 0x118   : > { %v1290_v63 = vmax.f32 %v1176_v57, %v3237_v58  ;;  %v1177_v0 = vmax.f32 %v1063_v40, %v3226_v62  ;;  %v3238_v1 = vpop.f32.mrb[26].mxu1  ;;  %v1146_v2 = vpop.f32.mrb[27].mxu0  ;;  %v2800_v40 = vld [vmem:[%s3639_s25 + $0x90] sm:$0xf] }
 0x119   : > { %v1288_v3 = vmax.f32 %v1174_v60, %v1257_v61  ;;  %v1175_v5 = vmax.f32 %v1061_v43, %v1146_v2  ;;  %v1260_v6 = vpop.f32.mrb[27].mxu1  ;;  %v2814_v61 = vld [vmem:[%s3639_s25 + $0xac] sm:$0x1]  ;;  %v2804_v2 = vld [vmem:[%s3639_s25 + $0x98] sm:$0xf] }
 0x11a   : > { %v1298_v7 = vadd.f32 %v3891_v41, %v1290_v63  ;;  %v1291_v8 = vmax.f32 %v1177_v0, %v3238_v1 }
 0x11b   : > { %v1296_v9 = vadd.f32 %v3891_v41, %v1288_v3  ;;  %v1289_v10 = vmax.f32 %v1175_v5, %v1260_v6 }
 0x11c   : > { %v1306_v11 = vmax.f32 %v1298_v7, 0.0  ;;  %v1299_v12 = vadd.f32 %v3891_v41, %v1291_v8 }
 0x11d   : > { %v1304_v13 = vmax.f32 %v1296_v9, 0.0  ;;  %v1297_v14 = vadd.f32 %v3891_v41, %v1289_v10  ;;  %v3229_v15 = vpop.f32.mrb[28].mxu0  ;;  %v2806_v10 = vld [vmem:[%s3639_s25 + $0x9c] sm:$0x1] }
 0x11e   : > { %v3029_v16 = vpack.c.bf16 %v1306_v11, %v1306_v11  ;;  %v1307_v17 = vmax.f32 %v1299_v12, 0.0  ;;  %v1180_v18 = vmax.f32 %v1066_v47, %v3229_v15  ;;  %v3241_v19 = vpop.f32.mrb[28].mxu1  ;;  %v1159_v20 = vpop.f32.mrb[29].mxu0 }
 0x11f   : > { %v3027_v21 = vpack.c.bf16 %v1304_v13, %v1304_v13  ;;  %v1305_v22 = vmax.f32 %v1297_v14, 0.0  ;;  %v1178_v23 = vmax.f32 %v1064_v50, %v1159_v20  ;;  %v1273_v24 = vpop.f32.mrb[29].mxu1  ;;  %v3933_v25 = vpop.f32.mrb[30].mxu0 }
 0x120   : > { %v1353_v26 = vshrl.u32 %v3029_v16, 16  ;;  %v1356_v27 = vshll.u32 %v3029_v16, 16  ;;  %v3030_v28 = vpack.c.bf16 %v1307_v17, %v1307_v17  ;;  %v1294_v29 = vmax.f32 %v1180_v18, %v3241_v19  ;;  %v3935_v30 = vpop.f32.mrb[30].mxu1  ;;  %v1162_v31 = vpop.f32.mrb[31].mxu0 }
 0x121   : > { %v1337_v34 = vshrl.u32 %v3027_v21, 16  ;;  %v1340_v35 = vshll.u32 %v3027_v21, 16  ;;  %v3028_v36 = vpack.c.bf16 %v1305_v22, %v1305_v22  ;;  %v1292_v37 = vmax.f32 %v1178_v23, %v1273_v24  ;;  %v3939_v38 = vpop.f32.mrb[31].mxu1 }
 0x122   : > { %v1355_v39 = vrot.slane %v1353_v26, 7  ;;  %v1361_v43 = vshrl.u32 %v3030_v28, 16  ;;  %v1364_v44 = vshll.u32 %v3030_v28, 16  ;;  %v1302_v45 = vadd.f32 %v3891_v41, %v1294_v29 }
 0x123   : > { %v1339_v47 = vrot.slane %v1337_v34, 7  ;;  %v1345_v50 = vshrl.u32 %v3028_v36, 16  ;;  %v1348_v56 = vshll.u32 %v3028_v36, 16  ;;  %v1300_v57 = vadd.f32 %v3891_v41, %v1292_v37 }
 0x124   : > { %v1358_v58 = vor.u32 %v1356_v27, %v1355_v39  ;;  %v1359_v59 = vrot.slane %v1355_v39, 4  ;;  %v1363_v60 = vrot.slane %v1361_v43, 7  ;;  %v1310_v62 = vmax.f32 %v1302_v45, 0.0 }
 0x125   : > { %v1342_v63 = vor.u32 %v1340_v35, %v1339_v47  ;;  %v1343_v0 = vrot.slane %v1339_v47, 4  ;;  %v1347_v1 = vrot.slane %v1345_v50, 7  ;;  %v1308_v3 = vmax.f32 %v1300_v57, 0.0  ;;  %v3954_v5 = vpop.f32.mrb[32].mxu0 }
 0x126   : > { %v1433_v6 = vsel %vm3946_vm6, %v1358_v58, %v2808_v32  ;;  %v1436_v7 = vsel %vm3741_vm4, %v1359_v59, %v2810_v33  ;;  %v1366_v8 = vor.u32 %v1364_v44, %v1363_v60  ;;  %v1367_v9 = vrot.slane %v1363_v60, 4  ;;  %v3961_v11 = vpop.f32.mrb[32].mxu1  ;;  %v3963_v12 = vpop.f32.mrb[33].mxu0 }
 0x127   : > { %2809 = vst [vmem:[%s3639_s25 + $0xa0] sm:$0xf] %v1433_v6  ;;  %2811 = vst [vmem:[%s3639_s25 + $0xa4] sm:$0x1] %v1436_v7  ;;  %v1421_v13 = vsel %vm3946_vm6, %v1342_v63, %v2800_v40  ;;  %v1424_v14 = vsel %vm3741_vm4, %v1343_v0, %v2802_v42  ;;  %v1350_v15 = vor.u32 %v1348_v56, %v1347_v1  ;;  %v1351_v16 = vrot.slane %v1347_v1, 4  ;;  %v3971_v17 = vpop.f32.mrb[33].mxu1 }
 0x128   : > { %v3973_v18 = vpop.f32.mrb[34].mxu0  ;;  %2801 = vst [vmem:[%s3639_s25 + $0x90] sm:$0xf] %v1421_v13  ;;  %2803 = vst [vmem:[%s3639_s25 + $0x94] sm:$0x1] %v1424_v14  ;;  %v1439_v19 = vsel %vm3946_vm6, %v1366_v8, %v2812_v48  ;;  %v1442_v20 = vsel %vm3741_vm4, %v1367_v9, %v2814_v61  ;;  %v3033_v21 = vpack.c.bf16 %v1310_v62, %v1310_v62  ;;  %v3981_v23 = vpop.f32.mrb[34].mxu1 }
 0x129   : > { %v3031_v22 = vpack.c.bf16 %v1308_v3, %v1308_v3  ;;  %v3983_v24 = vpop.f32.mrb[35].mxu0  ;;  %2813 = vst [vmem:[%s3639_s25 + $0xa8] sm:$0xf] %v1439_v19  ;;  %2815 = vst [vmem:[%s3639_s25 + $0xac] sm:$0x1] %v1442_v20  ;;  %v1427_v26 = vsel %vm3946_vm6, %v1350_v15, %v2804_v2  ;;  %v1430_v27 = vsel %vm3741_vm4, %v1351_v16, %v2806_v10  ;;  %v3998_v32 = vpop.f32.mrb[35].mxu1 }
 0x12a   : > { %v1181_v28 = vmax.f32 %v1067_v53, %v3933_v25  ;;  %v1179_v29 = vmax.f32 %v1065_v55, %v1162_v31  ;;  %2805 = vst [vmem:[%s3639_s25 + $0x98] sm:$0xf] %v1427_v26  ;;  %2807 = vst [vmem:[%s3639_s25 + $0x9c] sm:$0x1] %v1430_v27  ;;  %v1385_v33 = vshrl.u32 %v3033_v21, 16  ;;  %v1388_v34 = vshll.u32 %v3033_v21, 16 }
 0x12b   : > { %v1369_v35 = vshrl.u32 %v3031_v22, 16  ;;  %v1372_v36 = vshll.u32 %v3031_v22, 16  ;;  %v1682_v51 = vmax.f32 %v3954_v5, %v3961_v11  ;;  %v1680_v52 = vmax.f32 %v3963_v12, %v3971_v17  ;;  %v2826_v55 = vld [vmem:[%s3639_s25 + $0xc4] sm:$0x1]  ;;  %v2816_v40 = vld [vmem:[%s3639_s25 + $0xb0] sm:$0xf] }
 0x12c   : > { %v1295_v37 = vmax.f32 %v1181_v28, %v3935_v30  ;;  %v1293_v49 = vmax.f32 %v1179_v29, %v3939_v38  ;;  %v1387_v53 = vrot.slane %v1385_v33, 7  ;;  %v1683_v31 = vmax.f32 %v3973_v18, %v3981_v23  ;;  %v2818_v30 = vld [vmem:[%s3639_s25 + $0xb4] sm:$0x1]  ;;  %v2828_v13 = vld [vmem:[%s3639_s25 + $0xc8] sm:$0xf] }
 0x12d   : > { %v1371_v25 = vrot.slane %v1369_v35, 7  ;;  %v1681_v39 = vmax.f32 %v3983_v24, %v3998_v32  ;;  %v4018_v43 = vpop.f32.mrb[36].mxu0  ;;  %v2830_v14 = vld [vmem:[%s3639_s25 + $0xcc] sm:$0x1]  ;;  %v2820_v20 = vld [vmem:[%s3639_s25 + $0xb8] sm:$0xf] }
 0x12e   : > { %v1303_v38 = vadd.f32 %v3891_v41, %v1295_v37  ;;  %v1301_v42 = vadd.f32 %v3891_v41, %v1293_v49  ;;  %v1390_v44 = vor.u32 %v1388_v34, %v1387_v53  ;;  %v1391_v45 = vrot.slane %v1387_v53, 4  ;;  %v4020_v50 = vpop.f32.mrb[36].mxu1  ;;  %v4022_v56 = vpop.f32.mrb[37].mxu0  ;;  %v2822_v21 = vld [vmem:[%s3639_s25 + $0xbc] sm:$0x1] }
 0x12f   : > { %v1374_v47 = vor.u32 %v1372_v36, %v1371_v25  ;;  %v1375_v48 = vrot.slane %v1371_v25, 4  ;;  %v1686_v59 = vmax.f32 %v4018_v43, %v4020_v50  ;;  %v4026_v60 = vpop.f32.mrb[37].mxu1  ;;  %v4028_v61 = vpop.f32.mrb[38].mxu0 }
 0x130   : > { %v1311_v57 = vmax.f32 %v1303_v38, 0.0  ;;  %v1309_v58 = vmax.f32 %v1301_v42, 0.0  ;;  %v1457_v62 = vsel %vm3946_vm6, %v1390_v44, %v2824_v54  ;;  %v1460_v63 = vsel %vm3741_vm4, %v1391_v45, %v2826_v55  ;;  %v4038_v2 = vpop.f32.mrb[38].mxu1  ;;  %v4040_v3 = vpop.f32.mrb[39].mxu0 }
 0x131   : > { %v1445_v0 = vsel %vm3946_vm6, %v1374_v47, %v2816_v40  ;;  %v1448_v1 = vsel %vm3741_vm4, %v1375_v48, %v2818_v30  ;;  %2825 = vst [vmem:[%s3639_s25 + $0xc0] sm:$0xf] %v1457_v62  ;;  %2827 = vst [vmem:[%s3639_s25 + $0xc4] sm:$0x1] %v1460_v63  ;;  %v1684_v7 = vmax.f32 %v4022_v56, %v4026_v60  ;;  %v4050_v9 = vpop.f32.mrb[39].mxu1 }
 0x132   : > { %2817 = vst [vmem:[%s3639_s25 + $0xb0] sm:$0xf] %v1445_v0  ;;  %2819 = vst [vmem:[%s3639_s25 + $0xb4] sm:$0x1] %v1448_v1  ;;  %v3034_v5 = vpack.c.bf16 %v1311_v57, %v1311_v57  ;;  %v3032_v6 = vpack.c.bf16 %v1309_v58, %v1309_v58  ;;  %v1687_v8 = vmax.f32 %v4028_v61, %v4038_v2 }
 0x133   : > { %v1685_v10 = vmax.f32 %v4040_v3, %v4050_v9 }
 0x134   : > { %v1393_v11 = vshrl.u32 %v3034_v5, 16  ;;  %v1377_v12 = vshrl.u32 %v3032_v6, 16  ;;  %v1396_v16 = vshll.u32 %v3034_v5, 16  ;;  %v1380_v18 = vshll.u32 %v3032_v6, 16 }
 0x135   : > { %v3273_v19 = vpop.f32.mrb[40].mxu0 }
 0x136   : > { %v1395_v15 = vrot.slane %v1393_v11, 7  ;;  %v1379_v17 = vrot.slane %v1377_v12, 7  ;;  %v1796_v22 = vmax.f32 %v1682_v51, %v3273_v19  ;;  %v3285_v23 = vpop.f32.mrb[40].mxu1  ;;  %v1763_v26 = vpop.f32.mrb[41].mxu0 }
 0x137   : > { %v1877_v34 = vpop.f32.mrb[41].mxu1  ;;  %v3274_v35 = vpop.f32.mrb[42].mxu0  ;;  %v1794_v37 = vmax.f32 %v1680_v52, %v1763_v26 }
 0x138   : > { %v1398_v27 = vor.u32 %v1396_v16, %v1395_v15  ;;  %v1399_v28 = vrot.slane %v1395_v15, 4  ;;  %v1382_v29 = vor.u32 %v1380_v18, %v1379_v17  ;;  %v1383_v33 = vrot.slane %v1379_v17, 4  ;;  %v3286_v53 = vpop.f32.mrb[42].mxu1  ;;  %v1766_v54 = vpop.f32.mrb[43].mxu0 }
 0x139   : > { %v1910_v36 = vmax.f32 %v1796_v22, %v3285_v23  ;;  %v1797_v49 = vmax.f32 %v1683_v31, %v3274_v35  ;;  %v1880_v30 = vpop.f32.mrb[43].mxu1  ;;  %v1908_v31 = vmax.f32 %v1794_v37, %v1877_v34  ;;  %v1795_v42 = vmax.f32 %v1681_v39, %v1766_v54 }
 0x13a   : > { %v1463_v51 = vsel %vm3946_vm6, %v1398_v27, %v2828_v13  ;;  %v1466_v55 = vsel %vm3741_vm4, %v1399_v28, %v2830_v14  ;;  %v1451_v25 = vsel %vm3946_vm6, %v1382_v29, %v2820_v20  ;;  %v1454_v40 = vsel %vm3741_vm4, %v1383_v33, %v2822_v21 }
 0x13b   : > { %2829 = vst [vmem:[%s3639_s25 + $0xc8] sm:$0xf] %v1463_v51  ;;  %2831 = vst [vmem:[%s3639_s25 + $0xcc] sm:$0x1] %v1466_v55  ;;  %v1918_v52 = vadd.f32 %v3891_v41, %v1910_v36  ;;  %v1911_v38 = vmax.f32 %v1797_v49, %v3286_v53  ;;  %v1916_v45 = vadd.f32 %v3891_v41, %v1908_v31 }
 0x13c   : > { %2821 = vst [vmem:[%s3639_s25 + $0xb8] sm:$0xf] %v1451_v25  ;;  %2823 = vst [vmem:[%s3639_s25 + $0xbc] sm:$0x1] %v1454_v40  ;;  %v1909_v48 = vmax.f32 %v1795_v42, %v1880_v30 }
 0x13d   : > { %v1926_v44 = vmax.f32 %v1918_v52, 0.0  ;;  %v1919_v47 = vadd.f32 %v3891_v41, %v1911_v38  ;;  %v3277_v56 = vpop.f32.mrb[44].mxu0  ;;  %v1924_v58 = vmax.f32 %v1916_v45, 0.0 }
 0x13e   : > { %v1917_v61 = vadd.f32 %v3891_v41, %v1909_v48  ;;  %v3289_v62 = vpop.f32.mrb[44].mxu1  ;;  %v1779_v63 = vpop.f32.mrb[45].mxu0  ;;  %v1800_v24 = vmax.f32 %v1686_v59, %v3277_v56 }
 0x13f   : > { %v3037_v57 = vpack.c.bf16 %v1926_v44, %v1926_v44  ;;  %v1927_v60 = vmax.f32 %v1919_v47, 0.0  ;;  %v1798_v32 = vmax.f32 %v1684_v7, %v1779_v63  ;;  %v1893_v39 = vpop.f32.mrb[45].mxu1  ;;  %v3278_v0 = vpop.f32.mrb[46].mxu0  ;;  %v3035_v1 = vpack.c.bf16 %v1924_v58, %v1924_v58 }
 0x140   : > { %v1925_v5 = vmax.f32 %v1917_v61, 0.0  ;;  %v1801_v6 = vmax.f32 %v1687_v8, %v3278_v0  ;;  %v3290_v11 = vpop.f32.mrb[46].mxu1  ;;  %v1782_v12 = vpop.f32.mrb[47].mxu0  ;;  %v1914_v13 = vmax.f32 %v1800_v24, %v3289_v62 }
 0x141   : > { %2906 = vst.msk [vmem:[%s3639_s25 + $0x60] sm:$0xf] %vm177_vm1, %v3037_v57  ;;  %v3038_v2 = vpack.c.bf16 %v1927_v60, %v1927_v60  ;;  %v1912_v14 = vmax.f32 %v1798_v32, %v1893_v39  ;;  %v1799_v43 = vmax.f32 %v1685_v10, %v1782_v12  ;;  %v1896_v50 = vpop.f32.mrb[47].mxu1  ;;  %2904 = vst.msk [vmem:[%s3639_s25 + $0x50] sm:$0xf] %vm177_vm1, %v3035_v1 }
 0x142   : > { %v3036_v59 = vpack.c.bf16 %v1925_v5, %v1925_v5  ;;  %v1915_v7 = vmax.f32 %v1801_v6, %v3290_v11  ;;  %v1922_v15 = vadd.f32 %v3891_v41, %v1914_v13 }
 0x143   : > { %2907 = vst.msk [vmem:[%s3639_s25 + $0x68] sm:$0xf] %vm177_vm1, %v3038_v2  ;;  %v1920_v16 = vadd.f32 %v3891_v41, %v1912_v14  ;;  %v1913_v8 = vmax.f32 %v1799_v43, %v1896_v50 }
 0x144   : > { %2905 = vst.msk [vmem:[%s3639_s25 + $0x58] sm:$0xf] %vm177_vm1, %v3036_v59  ;;  %v1923_v17 = vadd.f32 %v3891_v41, %v1915_v7  ;;  %v1930_v18 = vmax.f32 %v1922_v15, 0.0 }
 0x145   : > { %v1928_v19 = vmax.f32 %v1920_v16, 0.0  ;;  %v1921_v3 = vadd.f32 %v3891_v41, %v1913_v8  ;;  %v3297_v9 = vpop.f32.mrb[48].mxu0 }
 0x146   : > { %v1931_v10 = vmax.f32 %v1923_v17, 0.0  ;;  %v3309_v20 = vpop.f32.mrb[48].mxu1  ;;  %v2048_v21 = vpop.f32.mrb[49].mxu0  ;;  %v3041_v22 = vpack.c.bf16 %v1930_v18, %v1930_v18 }
 0x147   : > { %v3039_v23 = vpack.c.bf16 %v1928_v19, %v1928_v19  ;;  %v1929_v26 = vmax.f32 %v1921_v3, 0.0  ;;  %v2187_v27 = vmax.f32 %v3297_v9, %v3309_v20  ;;  %v2154_v28 = vpop.f32.mrb[49].mxu1  ;;  %v3298_v29 = vpop.f32.mrb[50].mxu0 }
 0x148   : > { %v3042_v33 = vpack.c.bf16 %v1931_v10, %v1931_v10  ;;  %v2185_v34 = vmax.f32 %v2048_v21, %v2154_v28  ;;  %v3310_v35 = vpop.f32.mrb[50].mxu1  ;;  %v2051_v36 = vpop.f32.mrb[51].mxu0  ;;  %2910 = vst.msk [vmem:[%s3639_s25 + $0x80] sm:$0xf] %vm177_vm1, %v3041_v22  ;;  %v2992_v28 = vld [vmem:[%s3639_s25 + $0x18] sm:$0xf] }
 0x149   : > { %2908 = vst.msk [vmem:[%s3639_s25 + $0x70] sm:$0xf] %vm177_vm1, %v3039_v23  ;;  %v3040_v37 = vpack.c.bf16 %v1929_v26, %v1929_v26  ;;  %v2188_v49 = vmax.f32 %v3298_v29, %v3310_v35  ;;  %v2157_v53 = vpop.f32.mrb[51].mxu1  ;;  %v2994_v29 = vld [vmem:[%s3639_s25 + $0x1c] sm:$0x1] }
 0x14a   : > { %2911 = vst.msk [vmem:[%s3639_s25 + $0x88] sm:$0xf] %vm177_vm1, %v3042_v33  ;;  %v2186_v54 = vmax.f32 %v2051_v36, %v2157_v53  ;;  %v2984_v53 = vld [vmem:[%s3639_s25 + $0x8] sm:$0xf] }
 0x14b   : > { %2909 = vst.msk [vmem:[%s3639_s25 + $0x78] sm:$0xf] %vm177_vm1, %v3040_v37 }
 0x14d   : > { %v3301_v51 = vpop.f32.mrb[52].mxu0 }
 0x14e   : > { %v3313_v55 = vpop.f32.mrb[52].mxu1  ;;  %v2064_v25 = vpop.f32.mrb[53].mxu0 }
 0x14f   : > { %v2191_v40 = vmax.f32 %v3301_v51, %v3313_v55  ;;  %v2170_v30 = vpop.f32.mrb[53].mxu1  ;;  %v4103_v52 = vpop.f32.mrb[54].mxu0 }
 0x150   : > { %v2189_v31 = vmax.f32 %v2064_v25, %v2170_v30  ;;  %v4105_v38 = vpop.f32.mrb[54].mxu1  ;;  %v4107_v42 = vpop.f32.mrb[55].mxu0 }
 0x151   : > { %v2192_v44 = vmax.f32 %v4103_v52, %v4105_v38  ;;  %v4111_v45 = vpop.f32.mrb[55].mxu1  ;;  %v3010_v52 = vld [vmem:[%s3639_s25 + $0x3c] sm:$0x1]  ;;  %v3000_v38 = vld [vmem:[%s3639_s25 + $0x28] sm:$0xf] }
 0x152   : > { %v2190_v47 = vmax.f32 %v4107_v42, %v4111_v45 }
 0x155   : > { %v3321_v48 = vpop.f32.mrb[56].mxu0 }
 0x156   : > { %v2301_v56 = vmax.f32 %v2187_v27, %v3321_v48  ;;  %v3333_v57 = vpop.f32.mrb[56].mxu1  ;;  %v2268_v58 = vpop.f32.mrb[57].mxu0 }
 0x157   : > { %v2299_v60 = vmax.f32 %v2185_v34, %v2268_v58  ;;  %v2382_v61 = vpop.f32.mrb[57].mxu1  ;;  %v3322_v62 = vpop.f32.mrb[58].mxu0  ;;  %v2986_v58 = vld [vmem:[%s3639_s25 + $0xc] sm:$0x1] }
 0x158   : > { %v2415_v63 = vmax.f32 %v2301_v56, %v3333_v57  ;;  %v2302_v24 = vmax.f32 %v2188_v49, %v3322_v62  ;;  %v3334_v32 = vpop.f32.mrb[58].mxu1  ;;  %v2271_v39 = vpop.f32.mrb[59].mxu0 }
 0x159   : > { %v2413_v0 = vmax.f32 %v2299_v60, %v2382_v61  ;;  %v2300_v1 = vmax.f32 %v2186_v54, %v2271_v39  ;;  %v2385_v2 = vpop.f32.mrb[59].mxu1 }
 0x15a   : > { %v2423_v5 = vadd.f32 %v3891_v41, %v2415_v63  ;;  %v2416_v6 = vmax.f32 %v2302_v24, %v3334_v32  ;;  %v2998_v24 = vld [vmem:[%s3639_s25 + $0x24] sm:$0x1] }
 0x15b   : > { %v2421_v11 = vadd.f32 %v3891_v41, %v2413_v0  ;;  %v2414_v12 = vmax.f32 %v2300_v1, %v2385_v2 }
 0x15c   : > { %v2431_v13 = vmax.f32 %v2423_v5, 0.0  ;;  %v2424_v14 = vadd.f32 %v3891_v41, %v2416_v6  ;;  %v2988_v6 = vld [vmem:[%s3639_s25 + $0x10] sm:$0xf] }
 0x15d   : > { %v2429_v43 = vmax.f32 %v2421_v11, 0.0  ;;  %v2422_v50 = vadd.f32 %v3891_v41, %v2414_v12  ;;  %v3325_v59 = vpop.f32.mrb[60].mxu0  ;;  %v2990_v11 = vld [vmem:[%s3639_s25 + $0x14] sm:$0x1] }
 0x15e   : > { %v3045_v7 = vpack.c.bf16 %v2431_v13, %v2431_v13  ;;  %v2432_v15 = vmax.f32 %v2424_v14, 0.0  ;;  %v2305_v16 = vmax.f32 %v2191_v40, %v3325_v59  ;;  %v3337_v8 = vpop.f32.mrb[60].mxu1  ;;  %v2284_v17 = vpop.f32.mrb[61].mxu0  ;;  %v2996_v40 = vld [vmem:[%s3639_s25 + $0x20] sm:$0xf] }
 0x15f   : > { %v3043_v18 = vpack.c.bf16 %v2429_v43, %v2429_v43  ;;  %v2430_v19 = vmax.f32 %v2422_v50, 0.0  ;;  %v2303_v3 = vmax.f32 %v2189_v31, %v2284_v17  ;;  %v2398_v9 = vpop.f32.mrb[61].mxu1  ;;  %v3326_v10 = vpop.f32.mrb[62].mxu0 }
 0x160   : > { %v2478_v20 = vshrl.u32 %v3045_v7, 16  ;;  %v2481_v21 = vshll.u32 %v3045_v7, 16  ;;  %v3046_v22 = vpack.c.bf16 %v2432_v15, %v2432_v15  ;;  %v2419_v23 = vmax.f32 %v2305_v16, %v3337_v8  ;;  %v4119_v26 = vpop.f32.mrb[62].mxu1  ;;  %v2287_v27 = vpop.f32.mrb[63].mxu0 }
 0x161   : > { %v2462_v33 = vshrl.u32 %v3043_v18, 16  ;;  %v2465_v34 = vshll.u32 %v3043_v18, 16  ;;  %v3044_v35 = vpack.c.bf16 %v2430_v19, %v2430_v19  ;;  %v2417_v36 = vmax.f32 %v2303_v3, %v2398_v9  ;;  %v2401_v37 = vpop.f32.mrb[63].mxu1 }
 0x162   : > { %v2480_v49 = vrot.slane %v2478_v20, 7  ;;  %v2486_v54 = vshrl.u32 %v3046_v22, 16  ;;  %v2489_v51 = vshll.u32 %v3046_v22, 16  ;;  %v2427_v55 = vadd.f32 %v3891_v41, %v2419_v23  ;;  %v3008_v23 = vld [vmem:[%s3639_s25 + $0x38] sm:$0xf] }
 0x163   : > { %v2464_v25 = vrot.slane %v2462_v33, 7  ;;  %v2470_v30 = vshrl.u32 %v3044_v35, 16  ;;  %v2473_v31 = vshll.u32 %v3044_v35, 16  ;;  %v2425_v48 = vadd.f32 %v3891_v41, %v2417_v36 }
 0x164   : > { %v2483_v56 = vor.u32 %v2481_v21, %v2480_v49  ;;  %v2484_v57 = vrot.slane %v2480_v49, 4  ;;  %v2488_v60 = vrot.slane %v2486_v54, 7  ;;  %v2435_v61 = vmax.f32 %v2427_v55, 0.0 }
 0x165   : > { %v2467_v62 = vor.u32 %v2465_v34, %v2464_v25  ;;  %v2468_v63 = vrot.slane %v2464_v25, 4  ;;  %v2472_v32 = vrot.slane %v2470_v30, 7  ;;  %v2433_v39 = vmax.f32 %v2425_v48, 0.0  ;;  %v3014_v48 = vld [vmem:[%s3639_s25 + $0x44] sm:$0x1] }
 0x166   : > { %v2555_v0 = vsel %vm3946_vm6, %v2483_v56, %v2992_v28  ;;  %v2558_v1 = vsel %vm3741_vm4, %v2484_v57, %v2994_v29  ;;  %v2491_v2 = vor.u32 %v2489_v51, %v2488_v60  ;;  %v2492_v5 = vrot.slane %v2488_v60, 4  ;;  %v3004_v56 = vld [vmem:[%s3639_s25 + $0x30] sm:$0xf]  ;;  %v3006_v57 = vld [vmem:[%s3639_s25 + $0x34] sm:$0x1] }
 0x167   : > { %2993 = vst [vmem:[%s3639_s25 + $0x18] sm:$0xf] %v2555_v0  ;;  %2995 = vst [vmem:[%s3639_s25 + $0x1c] sm:$0x1] %v2558_v1  ;;  %v2543_v12 = vsel %vm3946_vm6, %v2467_v62, %v2984_v53  ;;  %v2546_v13 = vsel %vm3741_vm4, %v2468_v63, %v2986_v58  ;;  %v2475_v14 = vor.u32 %v2473_v31, %v2472_v32  ;;  %v2476_v43 = vrot.slane %v2472_v32, 4 }
 0x168   : > { %2985 = vst [vmem:[%s3639_s25 + $0x8] sm:$0xf] %v2543_v12  ;;  %2987 = vst [vmem:[%s3639_s25 + $0xc] sm:$0x1] %v2546_v13  ;;  %v2561_v50 = vsel %vm3946_vm6, %v2491_v2, %v2996_v40  ;;  %v2564_v59 = vsel %vm3741_vm4, %v2492_v5, %v2998_v24  ;;  %v3049_v7 = vpack.c.bf16 %v2435_v61, %v2435_v61  ;;  %v3012_v40 = vld [vmem:[%s3639_s25 + $0x40] sm:$0xf] }
 0x169   : > { %v3047_v15 = vpack.c.bf16 %v2433_v39, %v2433_v39  ;;  %2997 = vst [vmem:[%s3639_s25 + $0x20] sm:$0xf] %v2561_v50  ;;  %2999 = vst [vmem:[%s3639_s25 + $0x24] sm:$0x1] %v2564_v59  ;;  %v2549_v16 = vsel %vm3946_vm6, %v2475_v14, %v2988_v6  ;;  %v2552_v8 = vsel %vm3741_vm4, %v2476_v43, %v2990_v11 }
 0x16a   : > { %v2306_v17 = vmax.f32 %v2192_v44, %v3326_v10  ;;  %v2304_v18 = vmax.f32 %v2190_v47, %v2287_v27  ;;  %2989 = vst [vmem:[%s3639_s25 + $0x10] sm:$0xf] %v2549_v16  ;;  %2991 = vst [vmem:[%s3639_s25 + $0x14] sm:$0x1] %v2552_v8  ;;  %v2510_v19 = vshrl.u32 %v3049_v7, 16  ;;  %v2513_v22 = vshll.u32 %v3049_v7, 16 }
 0x16b   : > { %v2494_v3 = vshrl.u32 %v3047_v15, 16  ;;  %v2497_v29 = vshll.u32 %v3047_v15, 16  ;;  %v3002_v44 = vld [vmem:[%s3639_s25 + $0x2c] sm:$0x1] }
 0x16c   : > { %v2420_v9 = vmax.f32 %v2306_v17, %v4119_v26  ;;  %v2418_v20 = vmax.f32 %v2304_v18, %v2401_v37  ;;  %v2512_v21 = vrot.slane %v2510_v19, 7 }
 0x16d   : > { %v2496_v28 = vrot.slane %v2494_v3, 7 }
 0x16e   : > { %v2428_v42 = vadd.f32 %v3891_v41, %v2420_v9  ;;  %v2426_v45 = vadd.f32 %v3891_v41, %v2418_v20  ;;  %v2515_v47 = vor.u32 %v2513_v22, %v2512_v21  ;;  %v2516_v10 = vrot.slane %v2512_v21, 4 }
 0x16f   : > { %v2499_v26 = vor.u32 %v2497_v29, %v2496_v28  ;;  %v2500_v27 = vrot.slane %v2496_v28, 4 }
 0x170   : > { %v2436_v33 = vmax.f32 %v2428_v42, 0.0  ;;  %v2434_v34 = vmax.f32 %v2426_v45, 0.0  ;;  %v2579_v35 = vsel %vm3946_vm6, %v2515_v47, %v3008_v23  ;;  %v2582_v36 = vsel %vm3741_vm4, %v2516_v10, %v3010_v52 }
 0x171   : > { %v2567_v37 = vsel %vm3946_vm6, %v2499_v26, %v3000_v38  ;;  %v2570_v41 = vsel %vm3741_vm4, %v2500_v27, %v3002_v44  ;;  %3009 = vst [vmem:[%s3639_s25 + $0x38] sm:$0xf] %v2579_v35  ;;  %3011 = vst [vmem:[%s3639_s25 + $0x3c] sm:$0x1] %v2582_v36 }
 0x172   : > { %3001 = vst [vmem:[%s3639_s25 + $0x28] sm:$0xf] %v2567_v37  ;;  %3003 = vst [vmem:[%s3639_s25 + $0x2c] sm:$0x1] %v2570_v41  ;;  %v3050_v49 = vpack.c.bf16 %v2436_v33, %v2436_v33  ;;  %v3048_v53 = vpack.c.bf16 %v2434_v34, %v2434_v34 }
 0x174   : > { %v2518_v54 = vshrl.u32 %v3050_v49, 16  ;;  %v2502_v51 = vshrl.u32 %v3048_v53, 16  ;;  %v2521_v25 = vshll.u32 %v3050_v49, 16  ;;  %v2505_v31 = vshll.u32 %v3048_v53, 16 }
 0x176   : > { %v2520_v55 = vrot.slane %v2518_v54, 7  ;;  %v2504_v30 = vrot.slane %v2502_v51, 7 }
 0x178   : > { %v2523_v58 = vor.u32 %v2521_v25, %v2520_v55  ;;  %v2524_v60 = vrot.slane %v2520_v55, 4  ;;  %v2507_v61 = vor.u32 %v2505_v31, %v2504_v30  ;;  %v2508_v62 = vrot.slane %v2504_v30, 4 }
 0x17a   : > { %v2585_v63 = vsel %vm3946_vm6, %v2523_v58, %v3012_v40  ;;  %v2588_v24 = vsel %vm3741_vm4, %v2524_v60, %v3014_v48  ;;  %v2573_v32 = vsel %vm3946_vm6, %v2507_v61, %v3004_v56  ;;  %v2576_v39 = vsel %vm3741_vm4, %v2508_v62, %v3006_v57 }
 0x17b   : > { %3013 = vst [vmem:[%s3639_s25 + $0x40] sm:$0xf] %v2585_v63  ;;  %3015 = vst [vmem:[%s3639_s25 + $0x44] sm:$0x1] %v2588_v24 }
 0x17c   : > { %3005 = vst [vmem:[%s3639_s25 + $0x30] sm:$0xf] %v2573_v32  ;;  %3007 = vst [vmem:[%s3639_s25 + $0x34] sm:$0x1] %v2576_v39 }
 0x17d PF: > { %s13_s12 = sadd.s32 1, %s3421_s12  }
 0x17e   : > { %p10_p4 = scmp.ge.s32.totalorder %s13_s12, 4  }
 0x180   :  { %12 = sbr.rel (!%p10_p4) target bundleno = 1 (0x1), region = 81 }

// kernel: cnn_forward.5
= control target key start
LH: loop header
LB: loop body
LE: loop exit
PB: predicated region body
PF: predicated region fallthrough
CT: control target
= control target key end

     0   :  { %v570_v28 = vlaneseq  ;;  %v4024_v36 = vmov 1966171168   ;;  %s4926_s0 = inlined_call_operand.vmem [shape: bf16[2,4096], index: 0, kind: input, shape index: {}]   ;;  %s4927_s1 = inlined_call_operand.vmem [shape: bf16[4096,128], index: 1, kind: input, shape index: {}]   ;;  %s4928_s2 = inlined_call_operand.vmem [shape: f32[1,128], index: 2, kind: input, shape index: {}]   ;;  %s4929_s3 = inlined_call_operand.vmem [shape: bf16[128,128], index: 3, kind: input, shape index: {}]   ;;  %s4930_s4 = inlined_call_operand.vmem [shape: f32[1,128], index: 4, kind: input, shape index: {}]   ;;  %s4931_s5 = inlined_call_operand.hbm [shape: f32[2,128], index: 5, kind: output, shape index: {}]  }
   0x1   :  { %v3732_v0 = vld [vmem:[%s4927_s1 + $0x40] sm:$0xff]   ;;  %v3736_v4 = vld [vmem:[%s4927_s1 + $0x48] sm:$0xff]   ;;  %v3740_v8 = vld [vmem:[%s4927_s1 + $0x50] sm:$0xff]   ;;  %v568_v37 = vunpack.c.l.s4 %v4024_v36 }
   0x2   :  { %v3733_v1 = vld [vmem:[%s4927_s1 + $0xc0] sm:$0xff]   ;;  %3347 = vmatprep.subr.bf16.mxu0 %v3732_v0  ;;  %v3737_v5 = vld [vmem:[%s4927_s1 + $0xc8] sm:$0xff]   ;;  %v3741_v9 = vld [vmem:[%s4927_s1 + $0xd0] sm:$0xff]   ;;  %v571_v33 = vshrl.u32 %v570_v28, 7 }
   0x3   :  { %v3734_v2 = vld [vmem:[%s4927_s1] sm:$0xff]   ;;  %3369 = vmatprep.subr.bf16.mxu1 %v3733_v1  ;;  %v3738_v6 = vld [vmem:[%s4927_s1 + $0x8] sm:$0xff]   ;;  %v3742_v10 = vld [vmem:[%s4927_s1 + $0x10] sm:$0xff]   ;;  %v569_v40 = vunpack.c.0.s8 %v568_v37 }
   0x4   :  { %v3735_v3 = vld [vmem:[%s4927_s1 + $0x80] sm:$0xff]   ;;  %3348 = vmatpush3.bf16.msra.mxu0 %v3734_v2  ;;  %v3739_v7 = vld [vmem:[%s4927_s1 + $0x88] sm:$0xff]   ;;  %v3743_v11 = vld [vmem:[%s4927_s1 + $0x90] sm:$0xff]  }
   0x5   :  { %3370 = vmatpush3.bf16.msra.mxu1 %v3735_v3  ;;  %3349 = vmatprep.subr.bf16.mxu0 %v3736_v4  ;;  %v3744_v12 = vld [vmem:[%s4927_s1 + $0x58] sm:$0xff]   ;;  %v3748_v16 = vld [vmem:[%s4927_s1 + $0x60] sm:$0xff]   ;;  %v3752_v20 = vld [vmem:[%s4927_s1 + $0x68] sm:$0xff]   ;;  %v4163_v41 = vsub.s32 %v569_v40, %v571_v33 }
   0x6   :  { %3371 = vmatprep.subr.bf16.mxu1 %v3737_v5  ;;  %v3745_v13 = vld [vmem:[%s4927_s1 + $0xd8] sm:$0xff]   ;;  %v3749_v17 = vld [vmem:[%s4927_s1 + $0xe0] sm:$0xff]   ;;  %v3753_v21 = vld [vmem:[%s4927_s1 + $0xe8] sm:$0xff]  }
   0x7   :  { %v3746_v14 = vld [vmem:[%s4927_s1 + $0x18] sm:$0xff]   ;;  %v3750_v18 = vld [vmem:[%s4927_s1 + $0x20] sm:$0xff]   ;;  %v3754_v22 = vld [vmem:[%s4927_s1 + $0x28] sm:$0xff]  }
   0x8   :  { %3350 = vmatpush3.bf16.msra.mxu0 %v3738_v6  ;;  %v3747_v15 = vld [vmem:[%s4927_s1 + $0x98] sm:$0xff]   ;;  %v3751_v19 = vld [vmem:[%s4927_s1 + $0xa0] sm:$0xff]   ;;  %v3755_v23 = vld [vmem:[%s4927_s1 + $0xa8] sm:$0xff]  }
   0x9   :  { %3372 = vmatpush3.bf16.msra.mxu1 %v3739_v7  ;;  %3351 = vmatprep.subr.bf16.mxu0 %v3740_v8  ;;  %v3756_v24 = vld [vmem:[%s4927_s1 + $0x70] sm:$0xff]   ;;  %v3760_v29 = vld [vmem:[%s4927_s1 + $0x78] sm:$0xff]   ;;  %v552_v34 = vld [vmem:[%s4926_s0] sm:$0xff] }
   0xa   :  { %3373 = vmatprep.subr.bf16.mxu1 %v3741_v9  ;;  %v3757_v25 = vld [vmem:[%s4927_s1 + $0xf0] sm:$0xff]   ;;  %v3761_v30 = vld [vmem:[%s4927_s1 + $0xf8] sm:$0xff]   ;;  %v3765_v35 = vld [vmem:[%s4927_s1 + $0x140] sm:$0xff]   ;;  %v566_v39 = vcombine.high %v552_v34, %v552_v34  ;;  %v573_v42 = vrot.slane %v552_v34, %v4163_v41 }
   0xb   :  { %v3758_v26 = vld [vmem:[%s4927_s1 + $0x30] sm:$0xff]   ;;  %v3762_v31 = vld [vmem:[%s4927_s1 + $0x38] sm:$0xff]   ;;  %v3766_v38 = vld [vmem:[%s4927_s1 + $0x1c0] sm:$0xff]  }
   0xc   :  { %3352 = vmatpush3.bf16.msra.mxu0 %v3742_v10  ;;  %v3759_v27 = vld [vmem:[%s4927_s1 + $0xb0] sm:$0xff]   ;;  %v3763_v32 = vld [vmem:[%s4927_s1 + $0xb8] sm:$0xff]   ;;  %v4167_v43 = vrot.slane %v566_v39, %v4163_v41  ;;  %v581_v44 = vcombine.high %v573_v42, %v573_v42  ;;  %v589_v45 = vrot.slane %v573_v42, %v4163_v41  ;;  %v3767_v47 = vld [vmem:[%s4927_s1 + $0x100] sm:$0xff]  }
   0xd   :  { %3374 = vmatpush3.bf16.msra.mxu1 %v3743_v11  ;;  %3353 = vmatprep.subr.bf16.mxu0 %v3744_v12  ;;  %v3768_v49 = vld [vmem:[%s4927_s1 + $0x180] sm:$0xff]   ;;  %v3769_v52 = vld [vmem:[%s4927_s1 + $0x148] sm:$0xff]   ;;  %v3773_v58 = vld [vmem:[%s4927_s1 + $0x150] sm:$0xff]  }
   0xe   :  { %3375 = vmatprep.subr.bf16.mxu1 %v3745_v13  ;;  %v582_v46 = vcombine.high %v4167_v43, %v4167_v43  ;;  %v603_v48 = vrot.slane %v581_v44, %v4163_v41  ;;  %v611_v51 = vcombine.high %v589_v45, %v589_v45  ;;  %v3770_v54 = vld [vmem:[%s4927_s1 + $0x1c8] sm:$0xff]   ;;  %v3774_v59 = vld [vmem:[%s4927_s1 + $0x1d0] sm:$0xff]   ;;  %v3777_v62 = vld [vmem:[%s4927_s1 + $0x158] sm:$0xff]  }
   0xf   :  { %v3771_v55 = vld [vmem:[%s4927_s1 + $0x108] sm:$0xff]   ;;  %v3775_v60 = vld [vmem:[%s4927_s1 + $0x110] sm:$0xff]   ;;  %v3778_v63 = vld [vmem:[%s4927_s1 + $0x1d8] sm:$0xff]  }
  0x10   :  { %3354 = vmatpush3.bf16.msra.mxu0 %v3746_v14  ;;  %v610_v50 = vrot.slane %v582_v46, %v4163_v41  ;;  %2362 = vmatprep.mubr.bf16.mxu0 %v603_v48  ;;  %v613_v53 = vcombine.high %v603_v48, %v603_v48  ;;  %v3772_v57 = vld [vmem:[%s4927_s1 + $0x188] sm:$0xff]   ;;  %v3776_v61 = vld [vmem:[%s4927_s1 + $0x190] sm:$0xff]   ;;  %v3779_v0 = vld [vmem:[%s4927_s1 + $0x118] sm:$0xff]  }
  0x11   :  { %3376 = vmatpush3.bf16.msra.mxu1 %v3747_v15  ;;  %3355 = vmatprep.subr.bf16.mxu0 %v3748_v16  ;;  %v3780_v1 = vld [vmem:[%s4927_s1 + $0x198] sm:$0xff]   ;;  %v3781_v2 = vld [vmem:[%s4927_s1 + $0x160] sm:$0xff]   ;;  %v3785_v6 = vld [vmem:[%s4927_s1 + $0x168] sm:$0xff]  }
  0x12   :  { %3377 = vmatprep.subr.bf16.mxu1 %v3749_v17  ;;  %v614_v56 = vcombine.high %v610_v50, %v610_v50  ;;  %2402 = vmatprep.mubr.bf16.mxu1 %v613_v53  ;;  %v3782_v3 = vld [vmem:[%s4927_s1 + $0x1e0] sm:$0xff]   ;;  %v3786_v7 = vld [vmem:[%s4927_s1 + $0x1e8] sm:$0xff]   ;;  %v3789_v10 = vld [vmem:[%s4927_s1 + $0x170] sm:$0xff]  }
  0x13   :  { %v3783_v4 = vld [vmem:[%s4927_s1 + $0x120] sm:$0xff]   ;;  %v3787_v8 = vld [vmem:[%s4927_s1 + $0x128] sm:$0xff]   ;;  %v3790_v11 = vld [vmem:[%s4927_s1 + $0x1f0] sm:$0xff]  }
  0x14   :  { %3356 = vmatpush3.bf16.msra.mxu0 %v3750_v18  ;;  %v3784_v5 = vld [vmem:[%s4927_s1 + $0x1a0] sm:$0xff]   ;;  %v3788_v9 = vld [vmem:[%s4927_s1 + $0x1a8] sm:$0xff]   ;;  %v3791_v12 = vld [vmem:[%s4927_s1 + $0x130] sm:$0xff]   ;;  %v596_v18 = vrot.slane %v4167_v43, %v4163_v41 }
  0x15   :  { %3378 = vmatpush3.bf16.msra.mxu1 %v3751_v19  ;;  %3357 = vmatprep.subr.bf16.mxu0 %v3752_v20  ;;  %v3792_v13 = vld [vmem:[%s4927_s1 + $0x1b0] sm:$0xff]   ;;  %v3793_v14 = vld [vmem:[%s4927_s1 + $0x178] sm:$0xff]   ;;  %v3797_v19 = vld [vmem:[%s4927_s1 + $0x240] sm:$0xff]  }
  0x16   :  { %3379 = vmatprep.subr.bf16.mxu1 %v3753_v21  ;;  %v3794_v15 = vld [vmem:[%s4927_s1 + $0x1f8] sm:$0xff]   ;;  %v3798_v20 = vld [vmem:[%s4927_s1 + $0x2c0] sm:$0xff]   ;;  %v3805_v28 = vld [vmem:[%s4927_s1 + $0x250] sm:$0xff]  }
  0x17   :  { %v3795_v16 = vld [vmem:[%s4927_s1 + $0x138] sm:$0xff]   ;;  %v3799_v21 = vld [vmem:[%s4927_s1 + $0x200] sm:$0xff]   ;;  %v3817_v40 = vld [vmem:[%s4927_s1 + $0x268] sm:$0xff]  }
  0x18   :  { %3358 = vmatpush3.bf16.msra.mxu0 %v3754_v22  ;;  %v3796_v17 = vld [vmem:[%s4927_s1 + $0x1b8] sm:$0xff]   ;;  %v3800_v22 = vld [vmem:[%s4927_s1 + $0x280] sm:$0xff]   ;;  %v3818_v42 = vld [vmem:[%s4927_s1 + $0x2e8] sm:$0xff]  }
  0x19   :  { %3380 = vmatpush3.bf16.msra.mxu1 %v3755_v23  ;;  %3359 = vmatprep.subr.bf16.mxu0 %v3756_v24  ;;  %v612_v23 = vcombine.high %v596_v18, %v596_v18  ;;  %v3801_v24 = vld [vmem:[%s4927_s1 + $0x248] sm:$0xff]   ;;  %v3810_v33 = vld [vmem:[%s4927_s1 + $0x2d8] sm:$0xff]   ;;  %v3813_v36 = vld [vmem:[%s4927_s1 + $0x260] sm:$0xff]  }
  0x1a   :  { %3381 = vmatprep.subr.bf16.mxu1 %v3757_v25  ;;  %v3802_v25 = vld [vmem:[%s4927_s1 + $0x2c8] sm:$0xff]   ;;  %v3811_v34 = vld [vmem:[%s4927_s1 + $0x218] sm:$0xff]   ;;  %v3814_v37 = vld [vmem:[%s4927_s1 + $0x2e0] sm:$0xff]  }
  0x1b   :  { %v3816_v39 = vld [vmem:[%s4927_s1 + $0x2a0] sm:$0xff]   ;;  %v3819_v43 = vld [vmem:[%s4927_s1 + $0x228] sm:$0xff]  }
  0x1c   :  { %3360 = vmatpush3.bf16.msra.mxu0 %v3758_v26  ;;  %v3803_v26 = vld [vmem:[%s4927_s1 + $0x208] sm:$0xff]  }
  0x1d   :  { %3382 = vmatpush3.bf16.msra.mxu1 %v3759_v27  ;;  %3361 = vmatprep.subr.bf16.mxu0 %v3760_v29  ;;  %v3804_v27 = vld [vmem:[%s4927_s1 + $0x288] sm:$0xff]   ;;  %v3806_v29 = vld [vmem:[%s4927_s1 + $0x2d0] sm:$0xff]  }
  0x1e   :  { %3383 = vmatprep.subr.bf16.mxu1 %v3761_v30  ;;  %v3807_v30 = vld [vmem:[%s4927_s1 + $0x210] sm:$0xff]   ;;  %v3820_v44 = vld [vmem:[%s4927_s1 + $0x2a8] sm:$0xff]  }
  0x1f   :  { %v553_v46 = vld [vmem:[%s4926_s0 + $0x8] sm:$0xff] }
  0x20   :  { %3362 = vmatpush3.bf16.msra.mxu0 %v3762_v31  ;;  %v3808_v31 = vld [vmem:[%s4927_s1 + $0x290] sm:$0xff]   ;;  %v622_v48 = vrot.slane %v553_v46, %v4163_v41 }
  0x21   :  { %3384 = vmatpush3.bf16.msra.mxu1 %v3763_v32  ;;  %3391 = vmatprep.subr.bf16.mxu0 %v3765_v35  ;;  %v3809_v32 = vld [vmem:[%s4927_s1 + $0x258] sm:$0xff]  }
  0x22   :  { %3413 = vmatprep.subr.bf16.mxu1 %v3766_v38  ;;  %v3812_v35 = vld [vmem:[%s4927_s1 + $0x298] sm:$0xff]   ;;  %v3815_v38 = vld [vmem:[%s4927_s1 + $0x220] sm:$0xff]  }
  0x23   :  { %2363 = vmatmul.mubr.bf16.vlgmr.msra.gmra.mrb[0].mxu0 %v589_v45  ;;  %v3821_v45 = vld [vmem:[%s4927_s1 + $0x270] sm:$0xff]  }
  0x24   :  { %3392 = vmatpush3.bf16.msra.mxu0 %v3767_v47  ;;  %2403 = vmatmul.mubr.bf16.vlgmr.msra.gmra.mrb[0].mxu1 %v611_v51  ;;  %v3822_v47 = vld [vmem:[%s4927_s1 + $0x2f0] sm:$0xff]  }
  0x25   :  { %3393 = vmatprep.subr.bf16.mxu0 %v3769_v52  ;;  %3414 = vmatpush3.bf16.msra.mxu1 %v3768_v49  ;;  %v615_v49 = vcombine.high %v553_v46, %v553_v46  ;;  %v3824_v51 = vld [vmem:[%s4927_s1 + $0x2b0] sm:$0xff]   ;;  %v630_v52 = vcombine.high %v622_v48, %v622_v48 }
  0x26   :  { %2442 = vmatprep.mubr.bf16.mxu0 %v610_v50  ;;  %3415 = vmatprep.subr.bf16.mxu1 %v3770_v54  ;;  %v3823_v50 = vld [vmem:[%s4927_s1 + $0x230] sm:$0xff]   ;;  %v3825_v54 = vld [vmem:[%s4927_s1 + $0x278] sm:$0xff]  }
  0x27   :  { %2482 = vmatprep.mubr.bf16.mxu1 %v614_v56  ;;  %v4355_v53 = vrot.slane %v615_v49, %v4163_v41  ;;  %v652_v56 = vrot.slane %v630_v52, %v4163_v41  ;;  %v3872_v46 = vld [vmem:[%s4927_s1 + $0x410] sm:$0xff]   ;;  %v3875_v49 = vld [vmem:[%s4927_s1 + $0x4d8] sm:$0xff]   ;;  %v3878_v52 = vld [vmem:[%s4927_s1 + $0x460] sm:$0xff]  }
  0x28   :  { %3394 = vmatpush3.bf16.msra.mxu0 %v3771_v55  ;;  %v3826_v55 = vld [vmem:[%s4927_s1 + $0x2f8] sm:$0xff]  }
  0x29   :  { %3395 = vmatprep.subr.bf16.mxu0 %v3773_v58  ;;  %3416 = vmatpush3.bf16.msra.mxu1 %v3772_v57  ;;  %v631_v57 = vcombine.high %v4355_v53, %v4355_v53  ;;  %v3827_v58 = vld [vmem:[%s4927_s1 + $0x238] sm:$0xff]  }
  0x2a   :  { %3417 = vmatprep.subr.bf16.mxu1 %v3774_v59  ;;  %v3828_v59 = vld [vmem:[%s4927_s1 + $0x2b8] sm:$0xff]  }
  0x2c   :  { %3396 = vmatpush3.bf16.msra.mxu0 %v3775_v60  ;;  %v662_v60 = vcombine.high %v652_v56, %v652_v56 }
  0x2d   :  { %3397 = vmatprep.subr.bf16.mxu0 %v3777_v62  ;;  %3418 = vmatpush3.bf16.msra.mxu1 %v3776_v61  ;;  %v638_v61 = vrot.slane %v622_v48, %v4163_v41  ;;  %v3829_v62 = vld [vmem:[%s4927_s1 + $0x340] sm:$0xff]   ;;  %v3874_v48 = vld [vmem:[%s4927_s1 + $0x458] sm:$0xff]  }
  0x2e   :  { %3419 = vmatprep.subr.bf16.mxu1 %v3778_v63  ;;  %v3830_v63 = vld [vmem:[%s4927_s1 + $0x3c0] sm:$0xff]  }
  0x30   :  { %3398 = vmatpush3.bf16.msra.mxu0 %v3779_v0  ;;  %v659_v0 = vrot.slane %v631_v57, %v4163_v41  ;;  %v3883_v57 = vld [vmem:[%s4927_s1 + $0x4e8] sm:$0xff]  }
  0x31   :  { %3399 = vmatprep.subr.bf16.mxu0 %v3781_v2  ;;  %3420 = vmatpush3.bf16.msra.mxu1 %v3780_v1  ;;  %v3831_v1 = vld [vmem:[%s4927_s1 + $0x300] sm:$0xff]  }
  0x32   :  { %3421 = vmatprep.subr.bf16.mxu1 %v3782_v3  ;;  %v3832_v2 = vld [vmem:[%s4927_s1 + $0x380] sm:$0xff]   ;;  %v660_v3 = vcombine.high %v638_v61, %v638_v61 }
  0x34   :  { %3400 = vmatpush3.bf16.msra.mxu0 %v3783_v4  ;;  %v3833_v4 = vld [vmem:[%s4927_s1 + $0x348] sm:$0xff]  }
  0x35   :  { %3401 = vmatprep.subr.bf16.mxu0 %v3785_v6  ;;  %3422 = vmatpush3.bf16.msra.mxu1 %v3784_v5  ;;  %v3834_v5 = vld [vmem:[%s4927_s1 + $0x3c8] sm:$0xff]   ;;  %v663_v6 = vcombine.high %v659_v0, %v659_v0 }
  0x36   :  { %3423 = vmatprep.subr.bf16.mxu1 %v3786_v7  ;;  %v3835_v7 = vld [vmem:[%s4927_s1 + $0x308] sm:$0xff]  }
  0x38   :  { %3402 = vmatpush3.bf16.msra.mxu0 %v3787_v8  ;;  %v3836_v8 = vld [vmem:[%s4927_s1 + $0x388] sm:$0xff]  }
  0x39   :  { %3403 = vmatprep.subr.bf16.mxu0 %v3789_v10  ;;  %3424 = vmatpush3.bf16.msra.mxu1 %v3788_v9  ;;  %v3837_v9 = vld [vmem:[%s4927_s1 + $0x350] sm:$0xff]  }
  0x3a   :  { %3425 = vmatprep.subr.bf16.mxu1 %v3790_v11  ;;  %v3838_v10 = vld [vmem:[%s4927_s1 + $0x3d0] sm:$0xff]  }
  0x3b   :  { %v3839_v11 = vld [vmem:[%s4927_s1 + $0x310] sm:$0xff]  }
  0x3c   :  { %3404 = vmatpush3.bf16.msra.mxu0 %v3791_v12  ;;  %v3840_v12 = vld [vmem:[%s4927_s1 + $0x390] sm:$0xff]  }
  0x3d   :  { %3405 = vmatprep.subr.bf16.mxu0 %v3793_v14  ;;  %3426 = vmatpush3.bf16.msra.mxu1 %v3792_v13  ;;  %v3841_v13 = vld [vmem:[%s4927_s1 + $0x358] sm:$0xff]  }
  0x3e   :  { %3427 = vmatprep.subr.bf16.mxu1 %v3794_v15  ;;  %v3842_v14 = vld [vmem:[%s4927_s1 + $0x3d8] sm:$0xff]  }
  0x3f   :  { %v3843_v15 = vld [vmem:[%s4927_s1 + $0x318] sm:$0xff]  }
  0x40   :  { %3406 = vmatpush3.bf16.msra.mxu0 %v3795_v16  ;;  %v3844_v16 = vld [vmem:[%s4927_s1 + $0x398] sm:$0xff]  }
  0x41   :  { %3435 = vmatprep.subr.bf16.mxu0 %v3797_v19  ;;  %3428 = vmatpush3.bf16.msra.mxu1 %v3796_v17  ;;  %v3845_v17 = vld [vmem:[%s4927_s1 + $0x360] sm:$0xff]  }
  0x42   :  { %3457 = vmatprep.subr.bf16.mxu1 %v3798_v20  ;;  %v3847_v19 = vld [vmem:[%s4927_s1 + $0x320] sm:$0xff]  }
  0x43   :  { %2443 = vmatmul.mubr.bf16.vlgmr.msra.gmra.mrb[4].mxu0 %v596_v18  ;;  %v3846_v18 = vld [vmem:[%s4927_s1 + $0x3e0] sm:$0xff]  }
  0x44   :  { %3436 = vmatpush3.bf16.msra.mxu0 %v3799_v21  ;;  %2483 = vmatmul.mubr.bf16.vlgmr.msra.gmra.mrb[4].mxu1 %v612_v23  ;;  %v3848_v20 = vld [vmem:[%s4927_s1 + $0x3a0] sm:$0xff]   ;;  %v3849_v21 = vld [vmem:[%s4927_s1 + $0x368] sm:$0xff]  }
  0x45   :  { %3437 = vmatprep.subr.bf16.mxu0 %v3801_v24  ;;  %3458 = vmatpush3.bf16.msra.mxu1 %v3800_v22  ;;  %v3850_v22 = vld [vmem:[%s4927_s1 + $0x3e8] sm:$0xff]  }
  0x46   :  { %3459 = vmatprep.subr.bf16.mxu1 %v3802_v25  ;;  %2522 = vmatprep.mubr.bf16.mxu0 %v652_v56  ;;  %v3851_v23 = vld [vmem:[%s4927_s1 + $0x328] sm:$0xff]   ;;  %v3853_v25 = vld [vmem:[%s4927_s1 + $0x370] sm:$0xff]  }
  0x47   :  { %2562 = vmatprep.mubr.bf16.mxu1 %v662_v60  ;;  %v3852_v24 = vld [vmem:[%s4927_s1 + $0x3a8] sm:$0xff]   ;;  %v3886_v60 = vld [vmem:[%s4927_s1 + $0x470] sm:$0xff]  }
  0x48   :  { %3438 = vmatpush3.bf16.msra.mxu0 %v3803_v26  ;;  %v3854_v26 = vld [vmem:[%s4927_s1 + $0x3f0] sm:$0xff]   ;;  %v3882_v56 = vld [vmem:[%s4927_s1 + $0x468] sm:$0xff]  }
  0x49   :  { %3439 = vmatprep.subr.bf16.mxu0 %v3805_v28  ;;  %3460 = vmatpush3.bf16.msra.mxu1 %v3804_v27  ;;  %v3855_v27 = vld [vmem:[%s4927_s1 + $0x330] sm:$0xff]  }
  0x4a   :  { %3461 = vmatprep.subr.bf16.mxu1 %v3806_v29  ;;  %v3856_v28 = vld [vmem:[%s4927_s1 + $0x3b0] sm:$0xff]   ;;  %v3857_v29 = vld [vmem:[%s4927_s1 + $0x378] sm:$0xff]  }
  0x4c   :  { %3440 = vmatpush3.bf16.msra.mxu0 %v3807_v30  ;;  %v3858_v30 = vld [vmem:[%s4927_s1 + $0x3f8] sm:$0xff]  }
  0x4d   :  { %3441 = vmatprep.subr.bf16.mxu0 %v3809_v32  ;;  %3462 = vmatpush3.bf16.msra.mxu1 %v3808_v31  ;;  %v3859_v31 = vld [vmem:[%s4927_s1 + $0x338] sm:$0xff]  }
  0x4e   :  { %3463 = vmatprep.subr.bf16.mxu1 %v3810_v33  ;;  %v3860_v32 = vld [vmem:[%s4927_s1 + $0x3b8] sm:$0xff]   ;;  %v645_v33 = vrot.slane %v4355_v53, %v4163_v41  ;;  %v3879_v53 = vld [vmem:[%s4927_s1 + $0x4e0] sm:$0xff]  }
  0x50   :  { %3442 = vmatpush3.bf16.msra.mxu0 %v3811_v34  ;;  %v3862_v34 = vld [vmem:[%s4927_s1 + $0x440] sm:$0xff]  }
  0x51   :  { %3443 = vmatprep.subr.bf16.mxu0 %v3813_v36  ;;  %3464 = vmatpush3.bf16.msra.mxu1 %v3812_v35  ;;  %v3863_v35 = vld [vmem:[%s4927_s1 + $0x4c0] sm:$0xff]  }
  0x52   :  { %3465 = vmatprep.subr.bf16.mxu1 %v3814_v37  ;;  %v3864_v36 = vld [vmem:[%s4927_s1 + $0x400] sm:$0xff]  }
  0x53   :  { %v3865_v37 = vld [vmem:[%s4927_s1 + $0x480] sm:$0xff]  }
  0x54   :  { %3444 = vmatpush3.bf16.msra.mxu0 %v3815_v38  ;;  %v661_v38 = vcombine.high %v645_v33, %v645_v33 }
  0x55   :  { %3445 = vmatprep.subr.bf16.mxu0 %v3817_v40  ;;  %3466 = vmatpush3.bf16.msra.mxu1 %v3816_v39  ;;  %v3866_v39 = vld [vmem:[%s4927_s1 + $0x448] sm:$0xff]  }
  0x56   :  { %3467 = vmatprep.subr.bf16.mxu1 %v3818_v42  ;;  %v3867_v40 = vld [vmem:[%s4927_s1 + $0x4c8] sm:$0xff]  }
  0x57   :  { %v3868_v42 = vld [vmem:[%s4927_s1 + $0x408] sm:$0xff]  }
  0x58   :  { %3446 = vmatpush3.bf16.msra.mxu0 %v3819_v43  ;;  %v3869_v43 = vld [vmem:[%s4927_s1 + $0x488] sm:$0xff]  }
  0x59   :  { %3447 = vmatprep.subr.bf16.mxu0 %v3821_v45  ;;  %3468 = vmatpush3.bf16.msra.mxu1 %v3820_v44  ;;  %v3870_v44 = vld [vmem:[%s4927_s1 + $0x450] sm:$0xff]  }
  0x5a   :  { %3469 = vmatprep.subr.bf16.mxu1 %v3822_v47  ;;  %v3871_v45 = vld [vmem:[%s4927_s1 + $0x4d0] sm:$0xff]  }
  0x5b   :  { %v3873_v47 = vld [vmem:[%s4927_s1 + $0x490] sm:$0xff]  }
  0x5c   :  { %3448 = vmatpush3.bf16.msra.mxu0 %v3823_v50  ;;  %v3876_v50 = vld [vmem:[%s4927_s1 + $0x418] sm:$0xff]  }
  0x5d   :  { %3449 = vmatprep.subr.bf16.mxu0 %v3825_v54  ;;  %3470 = vmatpush3.bf16.msra.mxu1 %v3824_v51  ;;  %v3877_v51 = vld [vmem:[%s4927_s1 + $0x498] sm:$0xff]   ;;  %v3880_v54 = vld [vmem:[%s4927_s1 + $0x420] sm:$0xff]  }
  0x5e   :  { %3471 = vmatprep.subr.bf16.mxu1 %v3826_v55  ;;  %v3881_v55 = vld [vmem:[%s4927_s1 + $0x4a0] sm:$0xff]  }
  0x60   :  { %3450 = vmatpush3.bf16.msra.mxu0 %v3827_v58  ;;  %v3884_v58 = vld [vmem:[%s4927_s1 + $0x428] sm:$0xff]  }
  0x61   :  { %3479 = vmatprep.subr.bf16.mxu0 %v3829_v62  ;;  %3472 = vmatpush3.bf16.msra.mxu1 %v3828_v59  ;;  %v3885_v59 = vld [vmem:[%s4927_s1 + $0x4a8] sm:$0xff]   ;;  %v3887_v62 = vld [vmem:[%s4927_s1 + $0x4f0] sm:$0xff]  }
  0x62   :  { %3501 = vmatprep.subr.bf16.mxu1 %v3830_v63 }
  0x63   :  { %2523 = vmatmul.mubr.bf16.vlgmr.msra.gmra.mrb[8].mxu0 %v638_v61  ;;  %v554_v61 = vld [vmem:[%s4926_s0 + $0x10] sm:$0xff] }
  0x64   :  { %3480 = vmatpush3.bf16.msra.mxu0 %v3831_v1  ;;  %2602 = vmatprep.mubr.bf16.mxu0 %v659_v0  ;;  %v671_v63 = vrot.slane %v554_v61, %v4163_v41  ;;  %v664_v0 = vcombine.high %v554_v61, %v554_v61  ;;  %v3888_v1 = vld [vmem:[%s4927_s1 + $0x430] sm:$0xff]  }
  0x65   :  { %2563 = vmatmul.mubr.bf16.vlgmr.msra.gmra.mrb[8].mxu1 %v660_v3  ;;  %3481 = vmatprep.subr.bf16.mxu0 %v3833_v4  ;;  %v3937_v61 = vld [vmem:[%s4927_s1 + $0x610] sm:$0xff]  }
  0x66   :  { %3502 = vmatpush3.bf16.msra.mxu1 %v3832_v2  ;;  %2642 = vmatprep.mubr.bf16.mxu1 %v663_v6  ;;  %v3889_v2 = vld [vmem:[%s4927_s1 + $0x4b0] sm:$0xff]   ;;  %v679_v3 = vcombine.high %v671_v63, %v671_v63  ;;  %v4561_v4 = vrot.slane %v664_v0, %v4163_v41  ;;  %v3891_v6 = vld [vmem:[%s4927_s1 + $0x4f8] sm:$0xff]  }
  0x67   :  { %3503 = vmatprep.subr.bf16.mxu1 %v3834_v5  ;;  %v3890_v5 = vld [vmem:[%s4927_s1 + $0x478] sm:$0xff]  }
  0x68   :  { %3482 = vmatpush3.bf16.msra.mxu0 %v3835_v7  ;;  %v701_v7 = vrot.slane %v679_v3, %v4163_v41  ;;  %v3940_v0 = vld [vmem:[%s4927_s1 + $0x6d8] sm:$0xff]   ;;  %v3943_v3 = vld [vmem:[%s4927_s1 + $0x660] sm:$0xff]  }
  0x69   :  { %3483 = vmatprep.subr.bf16.mxu0 %v3837_v9  ;;  %v3892_v9 = vld [vmem:[%s4927_s1 + $0x438] sm:$0xff]  }
  0x6a   :  { %3504 = vmatpush3.bf16.msra.mxu1 %v3836_v8  ;;  %v680_v8 = vcombine.high %v4561_v4, %v4561_v4 }
  0x6b   :  { %3505 = vmatprep.subr.bf16.mxu1 %v3838_v10  ;;  %v3893_v10 = vld [vmem:[%s4927_s1 + $0x4b8] sm:$0xff]  }
  0x6c   :  { %3484 = vmatpush3.bf16.msra.mxu0 %v3839_v11  ;;  %v711_v11 = vcombine.high %v701_v7, %v701_v7 }
  0x6d   :  { %3485 = vmatprep.subr.bf16.mxu0 %v3841_v13  ;;  %v3894_v13 = vld [vmem:[%s4927_s1 + $0x540] sm:$0xff]  }
  0x6e   :  { %3506 = vmatpush3.bf16.msra.mxu1 %v3840_v12  ;;  %v687_v12 = vrot.slane %v671_v63, %v4163_v41  ;;  %v3939_v63 = vld [vmem:[%s4927_s1 + $0x658] sm:$0xff]  }
  0x6f   :  { %3507 = vmatprep.subr.bf16.mxu1 %v3842_v14  ;;  %v3895_v14 = vld [vmem:[%s4927_s1 + $0x5c0] sm:$0xff]  }
  0x70   :  { %3486 = vmatpush3.bf16.msra.mxu0 %v3843_v15  ;;  %v708_v15 = vrot.slane %v680_v8, %v4163_v41  ;;  %v3948_v8 = vld [vmem:[%s4927_s1 + $0x6e8] sm:$0xff]  }
  0x71   :  { %3487 = vmatprep.subr.bf16.mxu0 %v3845_v17  ;;  %v3897_v17 = vld [vmem:[%s4927_s1 + $0x580] sm:$0xff]  }
  0x72   :  { %3508 = vmatpush3.bf16.msra.mxu1 %v3844_v16  ;;  %v3896_v16 = vld [vmem:[%s4927_s1 + $0x500] sm:$0xff]  }
  0x73   :  { %3509 = vmatprep.subr.bf16.mxu1 %v3846_v18  ;;  %v709_v18 = vcombine.high %v687_v12, %v687_v12 }
  0x74   :  { %3488 = vmatpush3.bf16.msra.mxu0 %v3847_v19  ;;  %v3898_v19 = vld [vmem:[%s4927_s1 + $0x548] sm:$0xff]  }
  0x75   :  { %3489 = vmatprep.subr.bf16.mxu0 %v3849_v21  ;;  %v712_v21 = vcombine.high %v708_v15, %v708_v15 }
  0x76   :  { %3510 = vmatpush3.bf16.msra.mxu1 %v3848_v20  ;;  %v3899_v20 = vld [vmem:[%s4927_s1 + $0x5c8] sm:$0xff]  }
  0x77   :  { %3511 = vmatprep.subr.bf16.mxu1 %v3850_v22  ;;  %v3900_v22 = vld [vmem:[%s4927_s1 + $0x508] sm:$0xff]  }
  0x78   :  { %3490 = vmatpush3.bf16.msra.mxu0 %v3851_v23  ;;  %v3901_v23 = vld [vmem:[%s4927_s1 + $0x588] sm:$0xff]  }
  0x79   :  { %3491 = vmatprep.subr.bf16.mxu0 %v3853_v25  ;;  %v3903_v25 = vld [vmem:[%s4927_s1 + $0x5d0] sm:$0xff]  }
  0x7a   :  { %3512 = vmatpush3.bf16.msra.mxu1 %v3852_v24  ;;  %v3902_v24 = vld [vmem:[%s4927_s1 + $0x550] sm:$0xff]  }
  0x7b   :  { %3513 = vmatprep.subr.bf16.mxu1 %v3854_v26  ;;  %v3904_v26 = vld [vmem:[%s4927_s1 + $0x510] sm:$0xff]  }
  0x7c   :  { %3492 = vmatpush3.bf16.msra.mxu0 %v3855_v27  ;;  %v3905_v27 = vld [vmem:[%s4927_s1 + $0x590] sm:$0xff]  }
  0x7d   :  { %3493 = vmatprep.subr.bf16.mxu0 %v3857_v29  ;;  %v3907_v29 = vld [vmem:[%s4927_s1 + $0x5d8] sm:$0xff]  }
  0x7e   :  { %3514 = vmatpush3.bf16.msra.mxu1 %v3856_v28  ;;  %v3906_v28 = vld [vmem:[%s4927_s1 + $0x558] sm:$0xff]  }
  0x7f   :  { %3515 = vmatprep.subr.bf16.mxu1 %v3858_v30  ;;  %v3908_v30 = vld [vmem:[%s4927_s1 + $0x518] sm:$0xff]  }
  0x80   :  { %3494 = vmatpush3.bf16.msra.mxu0 %v3859_v31  ;;  %v3909_v31 = vld [vmem:[%s4927_s1 + $0x598] sm:$0xff]  }
  0x81   :  { %3523 = vmatprep.subr.bf16.mxu0 %v3862_v34  ;;  %v3912_v34 = vld [vmem:[%s4927_s1 + $0x520] sm:$0xff]  }
  0x82   :  { %3516 = vmatpush3.bf16.msra.mxu1 %v3860_v32  ;;  %v3910_v32 = vld [vmem:[%s4927_s1 + $0x560] sm:$0xff]  }
  0x83   :  { %2603 = vmatmul.mubr.bf16.vlgmr.msra.gmra.mrb[12].mxu0 %v645_v33  ;;  %3545 = vmatprep.subr.bf16.mxu1 %v3863_v35  ;;  %v3911_v33 = vld [vmem:[%s4927_s1 + $0x5e0] sm:$0xff]  }
  0x84   :  { %3524 = vmatpush3.bf16.msra.mxu0 %v3864_v36  ;;  %2682 = vmatprep.mubr.bf16.mxu0 %v701_v7  ;;  %v3913_v35 = vld [vmem:[%s4927_s1 + $0x5a0] sm:$0xff]   ;;  %v3914_v36 = vld [vmem:[%s4927_s1 + $0x568] sm:$0xff]  }
  0x85   :  { %2643 = vmatmul.mubr.bf16.vlgmr.msra.gmra.mrb[12].mxu1 %v661_v38  ;;  %3525 = vmatprep.subr.bf16.mxu0 %v3866_v39  ;;  %v3916_v38 = vld [vmem:[%s4927_s1 + $0x528] sm:$0xff]  }
  0x86   :  { %3546 = vmatpush3.bf16.msra.mxu1 %v3865_v37  ;;  %2722 = vmatprep.mubr.bf16.mxu1 %v711_v11  ;;  %v3915_v37 = vld [vmem:[%s4927_s1 + $0x5e8] sm:$0xff]   ;;  %v3951_v11 = vld [vmem:[%s4927_s1 + $0x670] sm:$0xff]  }
  0x87   :  { %3547 = vmatprep.subr.bf16.mxu1 %v3867_v40  ;;  %v3917_v39 = vld [vmem:[%s4927_s1 + $0x5a8] sm:$0xff]   ;;  %v3918_v40 = vld [vmem:[%s4927_s1 + $0x570] sm:$0xff]  }
  0x88   :  { %3526 = vmatpush3.bf16.msra.mxu0 %v3868_v42  ;;  %v3919_v42 = vld [vmem:[%s4927_s1 + $0x5f0] sm:$0xff]   ;;  %v3947_v7 = vld [vmem:[%s4927_s1 + $0x668] sm:$0xff]  }
  0x89   :  { %3527 = vmatprep.subr.bf16.mxu0 %v3870_v44  ;;  %v3921_v44 = vld [vmem:[%s4927_s1 + $0x5b0] sm:$0xff]  }
  0x8a   :  { %3548 = vmatpush3.bf16.msra.mxu1 %v3869_v43  ;;  %v3920_v43 = vld [vmem:[%s4927_s1 + $0x530] sm:$0xff]  }
  0x8b   :  { %3549 = vmatprep.subr.bf16.mxu1 %v3871_v45  ;;  %v3922_v45 = vld [vmem:[%s4927_s1 + $0x578] sm:$0xff]  }
  0x8c   :  { %3528 = vmatpush3.bf16.msra.mxu0 %v3872_v46  ;;  %v3923_v46 = vld [vmem:[%s4927_s1 + $0x5f8] sm:$0xff]  }
  0x8d   :  { %3529 = vmatprep.subr.bf16.mxu0 %v3874_v48  ;;  %v3925_v48 = vld [vmem:[%s4927_s1 + $0x5b8] sm:$0xff]  }
  0x8e   :  { %3550 = vmatpush3.bf16.msra.mxu1 %v3873_v47  ;;  %v3924_v47 = vld [vmem:[%s4927_s1 + $0x538] sm:$0xff]  }
  0x8f   :  { %3551 = vmatprep.subr.bf16.mxu1 %v3875_v49  ;;  %v694_v49 = vrot.slane %v4561_v4, %v4163_v41  ;;  %v3944_v4 = vld [vmem:[%s4927_s1 + $0x6e0] sm:$0xff]  }
  0x90   :  { %3530 = vmatpush3.bf16.msra.mxu0 %v3876_v50  ;;  %v3927_v50 = vld [vmem:[%s4927_s1 + $0x640] sm:$0xff]  }
  0x91   :  { %3531 = vmatprep.subr.bf16.mxu0 %v3878_v52  ;;  %v3929_v52 = vld [vmem:[%s4927_s1 + $0x600] sm:$0xff]  }
  0x92   :  { %3552 = vmatpush3.bf16.msra.mxu1 %v3877_v51  ;;  %v3928_v51 = vld [vmem:[%s4927_s1 + $0x6c0] sm:$0xff]  }
  0x93   :  { %3553 = vmatprep.subr.bf16.mxu1 %v3879_v53  ;;  %v3930_v53 = vld [vmem:[%s4927_s1 + $0x680] sm:$0xff]  }
  0x94   :  { %3532 = vmatpush3.bf16.msra.mxu0 %v3880_v54  ;;  %v710_v54 = vcombine.high %v694_v49, %v694_v49 }
  0x95   :  { %3533 = vmatprep.subr.bf16.mxu0 %v3882_v56  ;;  %v3932_v56 = vld [vmem:[%s4927_s1 + $0x6c8] sm:$0xff]  }
  0x96   :  { %3554 = vmatpush3.bf16.msra.mxu1 %v3881_v55  ;;  %v3931_v55 = vld [vmem:[%s4927_s1 + $0x648] sm:$0xff]  }
  0x97   :  { %3555 = vmatprep.subr.bf16.mxu1 %v3883_v57  ;;  %v3933_v57 = vld [vmem:[%s4927_s1 + $0x608] sm:$0xff]  }
  0x98   :  { %3534 = vmatpush3.bf16.msra.mxu0 %v3884_v58  ;;  %v3934_v58 = vld [vmem:[%s4927_s1 + $0x688] sm:$0xff]  }
  0x99   :  { %3535 = vmatprep.subr.bf16.mxu0 %v3886_v60  ;;  %v3936_v60 = vld [vmem:[%s4927_s1 + $0x6d0] sm:$0xff]  }
  0x9a   :  { %3556 = vmatpush3.bf16.msra.mxu1 %v3885_v59  ;;  %v3935_v59 = vld [vmem:[%s4927_s1 + $0x650] sm:$0xff]  }
  0x9b   :  { %3557 = vmatprep.subr.bf16.mxu1 %v3887_v62  ;;  %v3938_v62 = vld [vmem:[%s4927_s1 + $0x690] sm:$0xff]  }
  0x9c   :  { %3536 = vmatpush3.bf16.msra.mxu0 %v3888_v1  ;;  %v3941_v1 = vld [vmem:[%s4927_s1 + $0x618] sm:$0xff]  }
  0x9d   :  { %3537 = vmatprep.subr.bf16.mxu0 %v3890_v5  ;;  %v3945_v5 = vld [vmem:[%s4927_s1 + $0x620] sm:$0xff]  }
  0x9e   :  { %3558 = vmatpush3.bf16.msra.mxu1 %v3889_v2  ;;  %v3942_v2 = vld [vmem:[%s4927_s1 + $0x698] sm:$0xff]  }
  0x9f   :  { %3559 = vmatprep.subr.bf16.mxu1 %v3891_v6  ;;  %v3946_v6 = vld [vmem:[%s4927_s1 + $0x6a0] sm:$0xff]  }
  0xa0   :  { %3538 = vmatpush3.bf16.msra.mxu0 %v3892_v9  ;;  %v3949_v9 = vld [vmem:[%s4927_s1 + $0x628] sm:$0xff]  }
  0xa1   :  { %3567 = vmatprep.subr.bf16.mxu0 %v3894_v13  ;;  %v3952_v13 = vld [vmem:[%s4927_s1 + $0x6f0] sm:$0xff]  }
  0xa2   :  { %3560 = vmatpush3.bf16.msra.mxu1 %v3893_v10  ;;  %v3950_v10 = vld [vmem:[%s4927_s1 + $0x6a8] sm:$0xff]  }
  0xa3   :  { %2683 = vmatmul.mubr.bf16.vlgmr.msra.gmra.mrb[16].mxu0 %v687_v12  ;;  %3589 = vmatprep.subr.bf16.mxu1 %v3895_v14  ;;  %v555_v12 = vld [vmem:[%s4926_s0 + $0x18] sm:$0xff] }
  0xa4   :  { %3568 = vmatpush3.bf16.msra.mxu0 %v3896_v16  ;;  %2762 = vmatprep.mubr.bf16.mxu0 %v708_v15  ;;  %v720_v14 = vrot.slane %v555_v12, %v4163_v41  ;;  %v713_v15 = vcombine.high %v555_v12, %v555_v12  ;;  %v3953_v16 = vld [vmem:[%s4927_s1 + $0x630] sm:$0xff]  }
  0xa5   :  { %2723 = vmatmul.mubr.bf16.vlgmr.msra.gmra.mrb[16].mxu1 %v709_v18  ;;  %3569 = vmatprep.subr.bf16.mxu0 %v3898_v19 }
  0xa6   :  { %3590 = vmatpush3.bf16.msra.mxu1 %v3897_v17  ;;  %2802 = vmatprep.mubr.bf16.mxu1 %v712_v21  ;;  %v3955_v17 = vld [vmem:[%s4927_s1 + $0x678] sm:$0xff]   ;;  %v728_v18 = vcombine.high %v720_v14, %v720_v14  ;;  %v4767_v19 = vrot.slane %v713_v15, %v4163_v41 }
  0xa7   :  { %3591 = vmatprep.subr.bf16.mxu1 %v3899_v20  ;;  %v3954_v20 = vld [vmem:[%s4927_s1 + $0x6b0] sm:$0xff]   ;;  %v3956_v21 = vld [vmem:[%s4927_s1 + $0x6f8] sm:$0xff]  }
  0xa8   :  { %3570 = vmatpush3.bf16.msra.mxu0 %v3900_v22  ;;  %v750_v22 = vrot.slane %v728_v18, %v4163_v41  ;;  %v743_v12 = vrot.slane %v4767_v19, %v4163_v41 }
  0xa9   :  { %3571 = vmatprep.subr.bf16.mxu0 %v3902_v24  ;;  %v3957_v24 = vld [vmem:[%s4927_s1 + $0x638] sm:$0xff]  }
  0xaa   :  { %3592 = vmatpush3.bf16.msra.mxu1 %v3901_v23  ;;  %v729_v23 = vcombine.high %v4767_v19, %v4767_v19 }
  0xab   :  { %3593 = vmatprep.subr.bf16.mxu1 %v3903_v25  ;;  %v760_v25 = vcombine.high %v750_v22, %v750_v22 }
  0xac   :  { %3572 = vmatpush3.bf16.msra.mxu0 %v3904_v26  ;;  %v736_v26 = vrot.slane %v720_v14, %v4163_v41 }
  0xad   :  { %3573 = vmatprep.subr.bf16.mxu0 %v3906_v28  ;;  %v3958_v28 = vld [vmem:[%s4927_s1 + $0x6b8] sm:$0xff]  }
  0xae   :  { %3594 = vmatpush3.bf16.msra.mxu1 %v3905_v27  ;;  %v3959_v27 = vld [vmem:[%s4927_s1 + $0x740] sm:$0xff]  }
  0xaf   :  { %3595 = vmatprep.subr.bf16.mxu1 %v3907_v29  ;;  %v757_v29 = vrot.slane %v729_v23, %v4163_v41 }
  0xb0   :  { %3574 = vmatpush3.bf16.msra.mxu0 %v3908_v30  ;;  %v3960_v30 = vld [vmem:[%s4927_s1 + $0x7c0] sm:$0xff]  }
  0xb1   :  { %3575 = vmatprep.subr.bf16.mxu0 %v3910_v32  ;;  %v758_v32 = vcombine.high %v736_v26, %v736_v26 }
  0xb2   :  { %3596 = vmatpush3.bf16.msra.mxu1 %v3909_v31  ;;  %v3961_v31 = vld [vmem:[%s4927_s1 + $0x700] sm:$0xff]  }
  0xb3   :  { %3597 = vmatprep.subr.bf16.mxu1 %v3911_v33  ;;  %v3963_v33 = vld [vmem:[%s4927_s1 + $0x748] sm:$0xff]  }
  0xb4   :  { %3576 = vmatpush3.bf16.msra.mxu0 %v3912_v34  ;;  %v3962_v34 = vld [vmem:[%s4927_s1 + $0x780] sm:$0xff]  }
  0xb5   :  { %3577 = vmatprep.subr.bf16.mxu0 %v3914_v36  ;;  %v3964_v36 = vld [vmem:[%s4927_s1 + $0x7c8] sm:$0xff]  }
  0xb6   :  { %3598 = vmatpush3.bf16.msra.mxu1 %v3913_v35  ;;  %v761_v35 = vcombine.high %v757_v29, %v757_v29 }
  0xb7   :  { %3599 = vmatprep.subr.bf16.mxu1 %v3915_v37  ;;  %v3965_v37 = vld [vmem:[%s4927_s1 + $0x708] sm:$0xff]  }
  0xb8   :  { %3578 = vmatpush3.bf16.msra.mxu0 %v3916_v38  ;;  %v3967_v38 = vld [vmem:[%s4927_s1 + $0x750] sm:$0xff]  }
  0xb9   :  { %3579 = vmatprep.subr.bf16.mxu0 %v3918_v40  ;;  %v3968_v40 = vld [vmem:[%s4927_s1 + $0x7d0] sm:$0xff]  }
  0xba   :  { %3600 = vmatpush3.bf16.msra.mxu1 %v3917_v39  ;;  %v3966_v39 = vld [vmem:[%s4927_s1 + $0x788] sm:$0xff]  }
  0xbb   :  { %3601 = vmatprep.subr.bf16.mxu1 %v3919_v42  ;;  %v3969_v42 = vld [vmem:[%s4927_s1 + $0x710] sm:$0xff]  }
  0xbc   :  { %3580 = vmatpush3.bf16.msra.mxu0 %v3920_v43  ;;  %v3971_v43 = vld [vmem:[%s4927_s1 + $0x758] sm:$0xff]  }
  0xbd   :  { %3581 = vmatprep.subr.bf16.mxu0 %v3922_v45  ;;  %v3972_v45 = vld [vmem:[%s4927_s1 + $0x7d8] sm:$0xff]  }
  0xbe   :  { %3602 = vmatpush3.bf16.msra.mxu1 %v3921_v44  ;;  %v3970_v44 = vld [vmem:[%s4927_s1 + $0x790] sm:$0xff]  }
  0xbf   :  { %3603 = vmatprep.subr.bf16.mxu1 %v3923_v46  ;;  %v3973_v46 = vld [vmem:[%s4927_s1 + $0x718] sm:$0xff]  }
  0xc0   :  { %3582 = vmatpush3.bf16.msra.mxu0 %v3924_v47  ;;  %v3974_v47 = vld [vmem:[%s4927_s1 + $0x798] sm:$0xff]  }
  0xc1   :  { %3611 = vmatprep.subr.bf16.mxu0 %v3927_v50  ;;  %v3977_v50 = vld [vmem:[%s4927_s1 + $0x720] sm:$0xff]  }
  0xc2   :  { %3604 = vmatpush3.bf16.msra.mxu1 %v3925_v48  ;;  %v3975_v48 = vld [vmem:[%s4927_s1 + $0x760] sm:$0xff]  }
  0xc3   :  { %2763 = vmatmul.mubr.bf16.vlgmr.msra.gmra.mrb[20].mxu0 %v694_v49  ;;  %3633 = vmatprep.subr.bf16.mxu1 %v3928_v51  ;;  %v3976_v49 = vld [vmem:[%s4927_s1 + $0x7e0] sm:$0xff]  }
  0xc4   :  { %3612 = vmatpush3.bf16.msra.mxu0 %v3929_v52  ;;  %2842 = vmatprep.mubr.bf16.mxu0 %v750_v22  ;;  %v3978_v51 = vld [vmem:[%s4927_s1 + $0x7a0] sm:$0xff]   ;;  %v3979_v52 = vld [vmem:[%s4927_s1 + $0x768] sm:$0xff]  }
  0xc5   :  { %2803 = vmatmul.mubr.bf16.vlgmr.msra.gmra.mrb[20].mxu1 %v710_v54  ;;  %3613 = vmatprep.subr.bf16.mxu0 %v3931_v55  ;;  %v3981_v54 = vld [vmem:[%s4927_s1 + $0x728] sm:$0xff]  }
  0xc6   :  { %3634 = vmatpush3.bf16.msra.mxu1 %v3930_v53  ;;  %2882 = vmatprep.mubr.bf16.mxu1 %v760_v25  ;;  %v3980_v53 = vld [vmem:[%s4927_s1 + $0x7e8] sm:$0xff]  }
  0xc7   :  { %3635 = vmatprep.subr.bf16.mxu1 %v3932_v56  ;;  %v3982_v55 = vld [vmem:[%s4927_s1 + $0x7a8] sm:$0xff]   ;;  %v3983_v56 = vld [vmem:[%s4927_s1 + $0x770] sm:$0xff]  }
  0xc8   :  { %3614 = vmatpush3.bf16.msra.mxu0 %v3933_v57  ;;  %v3081_v57 = vld [vmem:[%s4928_s2] ss:$0 sm:$0xff] }
  0xc9   :  { %3615 = vmatprep.subr.bf16.mxu0 %v3935_v59 }
  0xca   :  { %3636 = vmatpush3.bf16.msra.mxu1 %v3934_v58  ;;  %v3984_v58 = vld [vmem:[%s4927_s1 + $0x7f0] sm:$0xff]  }
  0xcb   :  { %3637 = vmatprep.subr.bf16.mxu1 %v3936_v60  ;;  %v3985_v60 = vld [vmem:[%s4927_s1 + $0x730] sm:$0xff]  }
  0xcc   :  { %3616 = vmatpush3.bf16.msra.mxu0 %v3937_v61 }
  0xcd   :  { %3617 = vmatprep.subr.bf16.mxu0 %v3939_v63 }
  0xce   :  { %3638 = vmatpush3.bf16.msra.mxu1 %v3938_v62  ;;  %v3987_v62 = vld [vmem:[%s4927_s1 + $0x778] sm:$0xff]  }
  0xcf   :  { %3639 = vmatprep.subr.bf16.mxu1 %v3940_v0 }
  0xd0   :  { %3618 = vmatpush3.bf16.msra.mxu0 %v3941_v1 }
  0xd1   :  { %3619 = vmatprep.subr.bf16.mxu0 %v3943_v3 }
  0xd2   :  { %3640 = vmatpush3.bf16.msra.mxu1 %v3942_v2  ;;  %v3986_v2 = vld [vmem:[%s4927_s1 + $0x7b0] sm:$0xff]  }
  0xd3   :  { %3641 = vmatprep.subr.bf16.mxu1 %v3944_v4 }
  0xd4   :  { %3620 = vmatpush3.bf16.msra.mxu0 %v3945_v5 }
  0xd5   :  { %3621 = vmatprep.subr.bf16.mxu0 %v3947_v7 }
  0xd6   :  { %3642 = vmatpush3.bf16.msra.mxu1 %v3946_v6 }
  0xd7   :  { %3643 = vmatprep.subr.bf16.mxu1 %v3948_v8  ;;  %v3988_v8 = vld [vmem:[%s4927_s1 + $0x7f8] sm:$0xff]  }
  0xd8   :  { %3622 = vmatpush3.bf16.msra.mxu0 %v3949_v9 }
  0xd9   :  { %3623 = vmatprep.subr.bf16.mxu0 %v3951_v11 }
  0xda   :  { %3644 = vmatpush3.bf16.msra.mxu1 %v3950_v10  ;;  %v3989_v10 = vld [vmem:[%s4927_s1 + $0x738] sm:$0xff]  }
  0xdb   :  { %3645 = vmatprep.subr.bf16.mxu1 %v3952_v13 }
  0xdc   :  { %3624 = vmatpush3.bf16.msra.mxu0 %v3953_v16 }
  0xdd   :  { %3625 = vmatprep.subr.bf16.mxu0 %v3955_v17 }
  0xde   :  { %3646 = vmatpush3.bf16.msra.mxu1 %v3954_v20 }
  0xdf   :  { %3647 = vmatprep.subr.bf16.mxu1 %v3956_v21 }
  0xe0   :  { %3626 = vmatpush3.bf16.msra.mxu0 %v3957_v24 }
  0xe1   :  { %3655 = vmatprep.subr.bf16.mxu0 %v3959_v27 }
  0xe2   :  { %3648 = vmatpush3.bf16.msra.mxu1 %v3958_v28 }
  0xe3   :  { %2843 = vmatmul.mubr.bf16.vlgmr.msra.gmra.mrb[24].mxu0 %v736_v26  ;;  %3677 = vmatprep.subr.bf16.mxu1 %v3960_v30 }
  0xe4   :  { %3656 = vmatpush3.bf16.msra.mxu0 %v3961_v31  ;;  %2922 = vmatprep.mubr.bf16.mxu0 %v757_v29 }
  0xe5   :  { %2883 = vmatmul.mubr.bf16.vlgmr.msra.gmra.mrb[24].mxu1 %v758_v32  ;;  %3657 = vmatprep.subr.bf16.mxu0 %v3963_v33 }
  0xe6   :  { %3678 = vmatpush3.bf16.msra.mxu1 %v3962_v34  ;;  %2962 = vmatprep.mubr.bf16.mxu1 %v761_v35 }
  0xe7   :  { %3679 = vmatprep.subr.bf16.mxu1 %v3964_v36 }
  0xe8   :  { %3658 = vmatpush3.bf16.msra.mxu0 %v3965_v37 }
  0xe9   :  { %3659 = vmatprep.subr.bf16.mxu0 %v3967_v38 }
  0xea   :  { %3680 = vmatpush3.bf16.msra.mxu1 %v3966_v39 }
  0xeb   :  { %3681 = vmatprep.subr.bf16.mxu1 %v3968_v40 }
  0xec   :  { %3660 = vmatpush3.bf16.msra.mxu0 %v3969_v42 }
  0xed   :  { %3661 = vmatprep.subr.bf16.mxu0 %v3971_v43 }
  0xee   :  { %3682 = vmatpush3.bf16.msra.mxu1 %v3970_v44 }
  0xef   :  { %3683 = vmatprep.subr.bf16.mxu1 %v3972_v45 }
  0xf0   :  { %3662 = vmatpush3.bf16.msra.mxu0 %v3973_v46 }
  0xf1   :  { %3663 = vmatprep.subr.bf16.mxu0 %v3975_v48 }
  0xf2   :  { %3684 = vmatpush3.bf16.msra.mxu1 %v3974_v47 }
  0xf3   :  { %3685 = vmatprep.subr.bf16.mxu1 %v3976_v49 }
  0xf4   :  { %3664 = vmatpush3.bf16.msra.mxu0 %v3977_v50 }
  0xf5   :  { %3665 = vmatprep.subr.bf16.mxu0 %v3979_v52 }
  0xf6   :  { %3686 = vmatpush3.bf16.msra.mxu1 %v3978_v51  ;;  %v3363_v59 = vpop.f32.mrb[0].mxu0 }
  0xf7   :  { %v3364_v61 = vpop.f32.mrb[1].mxu0  ;;  %3687 = vmatprep.subr.bf16.mxu1 %v3980_v53  ;;  %v3385_v63 = vpop.f32.mrb[0].mxu1 }
  0xf8   :  { %v3365_v0 = vadd.f32 %v3364_v61, %v3363_v59  ;;  %v3366_v1 = vpop.f32.mrb[2].mxu0  ;;  %3666 = vmatpush3.bf16.msra.mxu0 %v3981_v54  ;;  %v3386_v3 = vpop.f32.mrb[1].mxu1 }
  0xf9   :  { %v3367_v4 = vpop.f32.mrb[3].mxu0  ;;  %3667 = vmatprep.subr.bf16.mxu0 %v3983_v56  ;;  %v3387_v6 = vadd.f32 %v3386_v3, %v3385_v63  ;;  %v3388_v7 = vpop.f32.mrb[2].mxu1 }
  0xfa   :  { %v2365_v5 = vadd.f32 %v3365_v0, %v3081_v57  ;;  %3688 = vmatpush3.bf16.msra.mxu1 %v3982_v55  ;;  %v3389_v9 = vpop.f32.mrb[3].mxu1 }
  0xfb   :  { %3689 = vmatprep.subr.bf16.mxu1 %v3984_v58 }
  0xfc   :  { %v2405_v11 = vadd.f32 %v3387_v6, %v2365_v5  ;;  %3668 = vmatpush3.bf16.msra.mxu0 %v3985_v60 }
  0xfd   :  { %3669 = vmatprep.subr.bf16.mxu0 %v3987_v62 }
  0xfe   :  { %10 = vsyncpa [#allocation3], 0  ;;  %3690 = vmatpush3.bf16.msra.mxu1 %v3986_v2  ;;  %v3990_v13 = vld [vmem:[%s4927_s1 + $0x7b8] sm:$0xff]   ;;  %v759_v14 = vcombine.high %v743_v12, %v743_v12  ;;  %v3992_v38 = vld [vmem:[%s4929_s3] sm:$0xff]   ;;  %v4025_v39 = vmov 0.0   ;;  %vm4026_vm0 = vmmov 0  }
  0xff   :  { %3691 = vmatprep.subr.bf16.mxu1 %v3988_v8  ;;  %v3993_v40 = vld [vmem:[%s4929_s3 + $0x8] sm:$0xff]   ;;  %v3994_v42 = vld [vmem:[%s4929_s3 + $0x10] sm:$0xff]   ;;  %v3995_v43 = vld [vmem:[%s4929_s3 + $0x18] sm:$0xff]   ;;  %s4027_s26 = smov [#allocation2]  }
 0x100   :  { %3670 = vmatpush3.bf16.msra.mxu0 %v3989_v10  ;;  %v3996_v44 = vld [vmem:[%s4929_s3 + $0x20] sm:$0xff]   ;;  %v3997_v47 = vld [vmem:[%s4929_s3 + $0x28] sm:$0xff]   ;;  %v3998_v57 = vld [vmem:[%s4929_s3 + $0x30] sm:$0xff]   ;;  %s3073_s27 = sshll.u32 %s4027_s26, 4  ;;  %s3074_s27 = int_to_ptr.vmem [resolvable:$true] %s3073_s27 }
 0x101   :  { %3708 = vmatprep.subr.bf16.mxu0 %v4025_v39  ;;  %v3999_v59 = vld [vmem:[%s4929_s3 + $0x38] sm:$0xff]   ;;  %s4000_s28 = scalar_lea.vmem %s3074_s27, 32  ;;  %p4005_p1 = scmp.lt.s32.totalorder %s3074_s27, %s3074_s27 }
 0x102   :  { %3692 = vmatpush3.bf16.msra.mxu1 %v3990_v13  ;;  %p4001_p0 = scmp.ne.s32.totalorder %s3074_s27, %s4000_s28  ;;  %p4006_p2 = scmp.lt.s32.totalorder %s4000_s28, %s4000_s28 }
 0x103   :  { %2923 = vmatmul.mubr.bf16.vlgmr.msra.gmra.mrb[28].mxu0 %v743_v12 }
 0x104   :  { %3709 = vmatpush3.bf16.msra.mxu0 %v3992_v38  ;;  %3724 = vmatprep.mubr.msk.bf16.mxu0 %vm4026_vm0, %v4025_v39  ;;  %p4007_p3 = por %p4006_p2, %p4005_p1 }
 0x105   :  { %2963 = vmatmul.mubr.bf16.vlgmr.msra.gmra.mrb[28].mxu1 %v759_v14  ;;  %3710 = vmatprep.subr.bf16.mxu0 %v4025_v39 }
 0x106   :  { %p4008_p4 = pnand %p4007_p3, %p4001_p0 }
 0x108   :  { %3711 = vmatpush3.bf16.msra.mxu0 %v3993_v40 }
 0x109   :  { %3712 = vmatprep.subr.bf16.mxu0 %v4025_v39 }
 0x10c   :  { %3713 = vmatpush3.bf16.msra.mxu0 %v3994_v42 }
 0x10d   :  { %3714 = vmatprep.subr.bf16.mxu0 %v4025_v39 }
 0x110   :  { %3715 = vmatpush3.bf16.msra.mxu0 %v3995_v43 }
 0x111   :  { %3716 = vmatprep.subr.bf16.mxu0 %v4025_v39 }
 0x114   :  { %3717 = vmatpush3.bf16.msra.mxu0 %v3996_v44 }
 0x115   :  { %3718 = vmatprep.subr.bf16.mxu0 %v4025_v39 }
 0x116   :  { %v3407_v15 = vpop.f32.mrb[4].mxu0 }
 0x117   :  { %v3408_v16 = vpop.f32.mrb[5].mxu0  ;;  %v3429_v17 = vpop.f32.mrb[4].mxu1 }
 0x118   :  { %v3409_v18 = vadd.f32 %v3408_v16, %v3407_v15  ;;  %v3410_v20 = vpop.f32.mrb[6].mxu0  ;;  %v3430_v21 = vpop.f32.mrb[5].mxu1  ;;  %3719 = vmatpush3.bf16.msra.mxu0 %v3997_v47 }
 0x119   :  { %v3411_v22 = vpop.f32.mrb[7].mxu0  ;;  %v3431_v19 = vadd.f32 %v3430_v21, %v3429_v17  ;;  %v3432_v23 = vpop.f32.mrb[6].mxu1  ;;  %3720 = vmatprep.subr.bf16.mxu0 %v4025_v39 }
 0x11a   :  { %v2445_v41 = vadd.f32 %v3409_v18, %v2405_v11  ;;  %v3433_v24 = vpop.f32.mrb[7].mxu1 }
 0x11c   :  { %v2485_v25 = vadd.f32 %v3431_v19, %v2445_v41  ;;  %3721 = vmatpush3.bf16.msra.mxu0 %v3998_v57 }
 0x11d   :  { %3722 = vmatprep.subr.bf16.mxu0 %v4025_v39 }
 0x120   :  { %3723 = vmatpush3.bf16.msra.mxu0 %v3999_v59 }
 0x136   :  { %v3451_v26 = vpop.f32.mrb[8].mxu0 }
 0x137   :  { %v3452_v27 = vpop.f32.mrb[9].mxu0 }
 0x138   :  { %v3473_v28 = vpop.f32.mrb[8].mxu1  ;;  %v3453_v29 = vadd.f32 %v3452_v27, %v3451_v26  ;;  %v3454_v30 = vpop.f32.mrb[10].mxu0 }
 0x139   :  { %v3474_v31 = vpop.f32.mrb[9].mxu1  ;;  %v3455_v32 = vpop.f32.mrb[11].mxu0 }
 0x13a   :  { %v2525_v33 = vadd.f32 %v3453_v29, %v2485_v25  ;;  %v3475_v34 = vadd.f32 %v3474_v31, %v3473_v28  ;;  %v3476_v35 = vpop.f32.mrb[10].mxu1 }
 0x13b   :  { %v3477_v36 = vpop.f32.mrb[11].mxu1 }
 0x13c   :  { %v2565_v37 = vadd.f32 %v3475_v34, %v2525_v33 }
 0x156   :  { %v3495_v45 = vpop.f32.mrb[12].mxu0 }
 0x157   :  { %v3496_v46 = vpop.f32.mrb[13].mxu0 }
 0x158   :  { %v3517_v48 = vpop.f32.mrb[12].mxu1  ;;  %v3497_v49 = vadd.f32 %v3496_v46, %v3495_v45  ;;  %v3498_v50 = vpop.f32.mrb[14].mxu0  ;;  %v3338_v46 = vld [vmem:[%s4930_s4] ss:$0 sm:$0xff] }
 0x159   :  { %v3518_v51 = vpop.f32.mrb[13].mxu1  ;;  %v3499_v52 = vpop.f32.mrb[15].mxu0 }
 0x15a   :  { %v2605_v53 = vadd.f32 %v3497_v49, %v2565_v37  ;;  %v3519_v54 = vadd.f32 %v3518_v51, %v3517_v48  ;;  %v3520_v55 = vpop.f32.mrb[14].mxu1 }
 0x15b   :  { %v3521_v56 = vpop.f32.mrb[15].mxu1 }
 0x15c   :  { %v2645_v58 = vadd.f32 %v3519_v54, %v2605_v53 }
 0x176   :  { %v3539_v60 = vpop.f32.mrb[16].mxu0 }
 0x177   :  { %v3540_v61 = vpop.f32.mrb[17].mxu0 }
 0x178   :  { %v3561_v62 = vpop.f32.mrb[16].mxu1  ;;  %v3541_v63 = vadd.f32 %v3540_v61, %v3539_v60  ;;  %v3542_v0 = vpop.f32.mrb[18].mxu0 }
 0x179   :  { %v3562_v1 = vpop.f32.mrb[17].mxu1  ;;  %v3543_v2 = vpop.f32.mrb[19].mxu0 }
 0x17a   :  { %v2685_v3 = vadd.f32 %v3541_v63, %v2645_v58  ;;  %v3563_v4 = vadd.f32 %v3562_v1, %v3561_v62  ;;  %v3564_v5 = vpop.f32.mrb[18].mxu1 }
 0x17b   :  { %v3565_v6 = vpop.f32.mrb[19].mxu1 }
 0x17c   :  { %v2725_v7 = vadd.f32 %v3563_v4, %v2685_v3 }
 0x196   :  { %v3583_v8 = vpop.f32.mrb[20].mxu0 }
 0x197   :  { %v3584_v9 = vpop.f32.mrb[21].mxu0 }
 0x198   :  { %v3605_v10 = vpop.f32.mrb[20].mxu1  ;;  %v3585_v11 = vadd.f32 %v3584_v9, %v3583_v8  ;;  %v3586_v12 = vpop.f32.mrb[22].mxu0 }
 0x199   :  { %v3606_v13 = vpop.f32.mrb[21].mxu1  ;;  %v3587_v14 = vpop.f32.mrb[23].mxu0 }
 0x19a   :  { %v2765_v15 = vadd.f32 %v3585_v11, %v2725_v7  ;;  %v3607_v16 = vadd.f32 %v3606_v13, %v3605_v10  ;;  %v3608_v17 = vpop.f32.mrb[22].mxu1 }
 0x19b   :  { %v3609_v18 = vpop.f32.mrb[23].mxu1 }
 0x19c   :  { %v2805_v20 = vadd.f32 %v3607_v16, %v2765_v15 }
 0x1b6   :  { %v3627_v21 = vpop.f32.mrb[24].mxu0 }
 0x1b7   :  { %v3628_v22 = vpop.f32.mrb[25].mxu0 }
 0x1b8   :  { %v3649_v41 = vpop.f32.mrb[24].mxu1  ;;  %v3629_v19 = vadd.f32 %v3628_v22, %v3627_v21  ;;  %v3630_v23 = vpop.f32.mrb[26].mxu0 }
 0x1b9   :  { %v3650_v24 = vpop.f32.mrb[25].mxu1  ;;  %v3631_v25 = vpop.f32.mrb[27].mxu0 }
 0x1ba   :  { %v2845_v26 = vadd.f32 %v3629_v19, %v2805_v20  ;;  %v3651_v27 = vadd.f32 %v3650_v24, %v3649_v41  ;;  %v3652_v28 = vpop.f32.mrb[26].mxu1 }
 0x1bb   :  { %v3653_v29 = vpop.f32.mrb[27].mxu1 }
 0x1bc   :  { %v2885_v30 = vadd.f32 %v3651_v27, %v2845_v26 }
 0x1d6   :  { %v3671_v31 = vpop.f32.mrb[28].mxu0 }
 0x1d7   :  { %v3672_v32 = vpop.f32.mrb[29].mxu0 }
 0x1d8   :  { %v3693_v33 = vpop.f32.mrb[28].mxu1  ;;  %v3673_v34 = vadd.f32 %v3672_v32, %v3671_v31  ;;  %v3674_v35 = vpop.f32.mrb[30].mxu0 }
 0x1d9   :  { %v3694_v36 = vpop.f32.mrb[29].mxu1  ;;  %v3675_v37 = vpop.f32.mrb[31].mxu0 }
 0x1da   :  { %v2925_v38 = vadd.f32 %v3673_v34, %v2885_v30  ;;  %v3695_v39 = vadd.f32 %v3694_v36, %v3693_v33  ;;  %v3696_v40 = vpop.f32.mrb[30].mxu1 }
 0x1db   :  { %v3697_v42 = vpop.f32.mrb[31].mxu1 }
 0x1dc   :  { %v2965_v43 = vadd.f32 %v3695_v39, %v2925_v38 }
 0x1de   :  { %v2970_v44 = vmax.f32 %v2965_v43, 0.0 }
 0x1e0   :  { %v2971_v45 = vpack.c.bf16 %v2970_v44, %v2970_v44 }
 0x1e2   :  { %3725 = vmatmul.mubr.bf16.vlgmr.msra.gmra.mrb[32].mxu0 %v2971_v45 }
 0x2b5   :  { %v3060_v47 = vpop.f32.mrb[32].mxu0 }
 0x2b6   :  { %v3061_v48 = vadd.f32 %v3338_v46, %v3060_v47  ;;  %v3726_v49 = vpop.f32.mrb[33].mxu0 }
 0x2b7   :  { %v3063_v50 = vpop.f32.mrb[34].mxu0 }
 0x2b8   :  { %3066 = vst [vmem:[#allocation2] sm:$0x3] %v3061_v48  ;;  %v3727_v51 = vpop.f32.mrb[35].mxu0 }
 0x2b9   :  { %4011 = shalt.err (!%p4008_p4)
}
 0x2ba   :  { %s4012_s4 = scalar_lea.hbm %s4931_s5, 32 }
 0x2bb   :  { %p4013_p5 = scmp.ne.s32.totalorder %s4931_s5, %s4012_s4  ;;  %p4016_p6 = scmp.lt.u32.totalorder %s4012_s4, %s4931_s5 }
 0x2bd   :  { %p4018_p7 = pnand %p4016_p6, %p4013_p5 }
 0x2bf   :  { %4021 = shalt.err (!%p4018_p7)
}
 0x2c0   :  { %3076 = dma.vmem_to_hbm [thread:$0]  %s3074_s27, 32, %s4931_s5, [#allocation3]  }
 0x2c1   :  { %4022 = dma.done.wait [#allocation3], 32  }
 0x2c2   :  { %4023 = vsyncadd [#allocation3], 4294967264 }
 0x2c3   :  { %3080 = vsyncpa [#allocation3], 1 }

</bundles_post_ra>
